<compile_context>
chip_gen: v7x
topology: tpu7x:2x2x1
jax: 0.10.0
libtpu: 0.0.40
codegen_flags: <defaults>
</compile_context>

<pallas_src>
import jax
import jax.numpy as jnp
from jax import lax
from jax.experimental import pallas as pl
from jax.experimental.pallas import tpu as pltpu

# ---------------- small ViT config (consistent with the module's __init__) ----------------
B = 2                     # batch
C = 2                     # channels
IMG = 16                  # image_size
P = 8                     # patch_size
NH = IMG // P
NW = IMG // P
NUM_PATCHES = NH * NW     # 4
PATCH_DIM = C * P * P     # 128
DIM = 128                 # model dim
DEPTH = 2
HEADS = 4
DIM_HEAD = 32
INNER = HEADS * DIM_HEAD  # 128 (project_out=True since heads != 1)
MLP_DIM = 128
NUM_CLASSES = 10
N_PAD = 128               # classifier lane-padded to 128 columns
SEQ = NUM_PATCHES + 1     # 5  (cls token + patches)
S_PAD = 8                 # padded per-image sequence length inside the kernel
EPS = 1e-5                # PyTorch LayerNorm default eps


def _layernorm(x, g, b):
    # One-pass LN: sum(x) and sum(x*x) are two independent cross-lane reductions,
    # so the XLU can overlap them instead of serializing reduce->sub->square->reduce.
    n = x.shape[-1]
    s1 = jnp.sum(x, axis=-1, keepdims=True)
    s2 = jnp.sum(x * x, axis=-1, keepdims=True)
    m = s1 * (1.0 / n)
    v = s2 * (1.0 / n) - m * m
    return (x - m) * lax.rsqrt(v + EPS) * g + b


# ---------------------------------------------------------------------------
# Single fused kernel over the whole batched slab:
# patch-embed -> (+cls/pos) -> DEPTH transformer layers -> final LN -> classifier.
# ---------------------------------------------------------------------------
def _vit_kernel(p_ref, ln0g_ref, ln0b_ref, pew_ref, peb_ref, ln1g_ref, ln1b_ref,
                clspos_ref, rowmask_ref, mask_ref,
                ag_ref, ab_ref, wqkv_ref, wo_ref, bo_ref,
                fg_ref, fb_ref, w1_ref, b1_ref, w2_ref, b2_ref,
                ng_ref, nb_ref, hw_ref, hb_ref, o_ref):
    # ---- patch embedding (LN -> Linear -> LN) on the padded (R, PATCH_DIM) slab ----
    xp = _layernorm(p_ref[...], ln0g_ref[...], ln0b_ref[...])
    emb = jnp.dot(xp.astype(jnp.bfloat16), pew_ref[...],
                  preferred_element_type=jnp.float32) + peb_ref[...]
    emb = _layernorm(emb, ln1g_ref[...], ln1b_ref[...])                 # (R, DIM) f32

    # keep only real patch rows, add the folded (cls token + positional embedding) map
    x = emb * rowmask_ref[...] + clspos_ref[...]                        # (R, DIM)

    mask = mask_ref[...]                # (R, R): block-diagonal over batch + key-pad mask
    scale = DIM_HEAD ** -0.5

    for l in range(DEPTH):              # static unroll (DEPTH = 2)
        # -------- attention block: x = attn(x) + x --------
        xa = _layernorm(x, ag_ref[l], ab_ref[l])
        qkv = jnp.dot(xa.astype(jnp.bfloat16), wqkv_ref[l],
                      preferred_element_type=jnp.float32)               # (R, 3*INNER)
        qkv16 = qkv.astype(jnp.bfloat16)

        pv_heads = []
        for h in range(HEADS):          # static unroll over heads
            q_h = qkv16[:, h * DIM_HEAD:(h + 1) * DIM_HEAD]
            k_h = qkv16[:, INNER + h * DIM_HEAD:INNER + (h + 1) * DIM_HEAD]
            v_h = qkv16[:, 2 * INNER + h * DIM_HEAD:2 * INNER + (h + 1) * DIM_HEAD]
            dots = lax.dot_general(q_h, k_h, (((1,), (1,)), ((), ())),
                                   preferred_element_type=jnp.float32) * scale + mask
            dots = dots - jnp.max(dots, axis=-1, keepdims=True)
            e = jnp.exp(dots)
            pr = e / jnp.sum(e, axis=-1, keepdims=True)   # exact divide (VALU has slack)
            pv_heads.append(jnp.dot(pr.astype(jnp.bfloat16), v_h,
                                    preferred_element_type=jnp.float32))  # (R, DIM_HEAD)

        # Lane-concat the per-head PV results (XLU, which has slack) and do ONE
        # full-depth K=128 output-projection matmul instead of 4 K=32 matmuls.
        pv = jnp.concatenate(pv_heads, axis=-1).astype(jnp.bfloat16)     # (R, INNER)
        x = x + jnp.dot(pv, wo_ref[l], preferred_element_type=jnp.float32) + bo_ref[l]

        # -------- feed-forward block: x = ff(x) + x --------
        xf = _layernorm(x, fg_ref[l], fb_ref[l])
        h1 = jnp.dot(xf.astype(jnp.bfloat16), w1_ref[l],
                     preferred_element_type=jnp.float32) + b1_ref[l]
        # TODO(synk): PyTorch nn.GELU() default is exact erf GELU; tanh approximation used here.
        h1 = jax.nn.gelu(h1, approximate=True)
        h2 = jnp.dot(h1.astype(jnp.bfloat16), w2_ref[l],
                     preferred_element_type=jnp.float32) + b2_ref[l]
        x = x + h2

    # ---- final LayerNorm + classifier on all rows (lane-dense (R, 128) store);
    #      the wrapper picks out the cls row of each image ----
    xn = _layernorm(x, ng_ref[...], nb_ref[...])
    o_ref[...] = jnp.dot(xn.astype(jnp.bfloat16), hw_ref[...],
                         preferred_element_type=jnp.float32) + hb_ref[...]


# ---------------------------------------------------------------------------
# Wrapper: einops patch rearrange, batch folding into rows, cls+pos fold, masks.
# ---------------------------------------------------------------------------
@jax.jit
def vit_forward(img, params):
    b = img.shape[0]
    R = b * S_PAD

    # einops: 'b c (h p1) (w p2) -> b (h w) (p1 p2 c)'
    x = img.reshape(b, C, NH, P, NW, P)
    x = jnp.transpose(x, (0, 2, 4, 3, 5, 1))                    # b, h, w, p1, p2, c
    x = x.reshape(b, NUM_PATCHES, PATCH_DIM)
    # row 0 of each image reserved for the cls token, rows SEQ..S_PAD-1 are padding;
    # then fold batch into the row dimension -> one (R, PATCH_DIM) slab
    patches = jnp.pad(x, ((0, 0), (1, S_PAD - SEQ), (0, 0))).reshape(R, PATCH_DIM)

    # fold cls token + positional embedding into one additive (R, DIM) map
    cls_pos = jnp.concatenate(
        [params["cls_token"][0] + params["pos_embedding"][0, :1],
         params["pos_embedding"][0, 1:SEQ],
         jnp.zeros((S_PAD - SEQ, DIM), jnp.float32)], axis=0)    # (S_PAD, DIM)
    cls_pos = jnp.tile(cls_pos, (b, 1))                          # (R, DIM)
    # dropout(p=0.0) / emb_dropout(p=0.0) are identities (eval semantics)

    rid = jnp.arange(R)
    # 1.0 on real patch rows (1..SEQ-1 within each image), 0.0 on cls/pad rows
    rowmask = ((rid % S_PAD >= 1) & (rid % S_PAD < SEQ)).astype(jnp.float32)[:, None]

    # attention mask: block-diagonal over batch + padded keys masked (built ONCE)
    same_img = (rid[:, None] // S_PAD) == (rid[None, :] // S_PAD)
    valid_key = (rid[None, :] % S_PAD) < SEQ
    attn_mask = jnp.where(same_img & valid_key, 0.0, -1e9).astype(jnp.float32)  # (R, R)

    def spec(shape):
        return pl.BlockSpec(shape, lambda i: (0,) * len(shape))

    out = pl.pallas_call(
        _vit_kernel,
        out_shape=jax.ShapeDtypeStruct((R, N_PAD), jnp.float32),
        grid=(1,),   # single grid step; whole batched slab on one TensorCore
        in_specs=[
            spec((R, PATCH_DIM)),
            spec((1, PATCH_DIM)), spec((1, PATCH_DIM)),
            spec((PATCH_DIM, DIM)), spec((1, DIM)),
            spec((1, DIM)), spec((1, DIM)),
            spec((R, DIM)), spec((R, 1)), spec((R, R)),
            spec((DEPTH, 1, DIM)), spec((DEPTH, 1, DIM)),
            spec((DEPTH, DIM, 3 * INNER)),
            spec((DEPTH, INNER, DIM)), spec((DEPTH, 1, DIM)),
            spec((DEPTH, 1, DIM)), spec((DEPTH, 1, DIM)),
            spec((DEPTH, DIM, MLP_DIM)), spec((DEPTH, 1, MLP_DIM)),
            spec((DEPTH, MLP_DIM, DIM)), spec((DEPTH, 1, DIM)),
            spec((1, DIM)), spec((1, DIM)),
            spec((DIM, N_PAD)), spec((1, N_PAD)),
        ],
        out_specs=pl.BlockSpec((R, N_PAD), lambda i: (0, 0)),
        compiler_params=pltpu.CompilerParams(dimension_semantics=("arbitrary",)),
    )(patches,
      params["pe_ln0_g"], params["pe_ln0_b"], params["pe_w"], params["pe_b"],
      params["pe_ln1_g"], params["pe_ln1_b"],
      cls_pos, rowmask, attn_mask,
      params["a_ln_g"], params["a_ln_b"], params["wqkv"], params["wo"], params["bo"],
      params["f_ln_g"], params["f_ln_b"], params["w1"], params["b1"], params["w2"], params["b2"],
      params["final_ln_g"], params["final_ln_b"], params["head_w_pad"], params["head_b_pad"])

    # pool='cls': take row 0 of each image, slice back to NUM_CLASSES
    return out.reshape(b, S_PAD, N_PAD)[:, 0, :NUM_CLASSES]     # (B, NUM_CLASSES)


# ---------------------------------------------------------------------------
# Deterministic parameter init (shapes from the module's __init__); per-layer
# weights pre-stacked along a leading DEPTH axis; matmul weights stored in bf16
# (biases / LN params stay f32, accumulation is f32 inside the kernel).
# ---------------------------------------------------------------------------
def init_params(key):
    ks = iter(jax.random.split(key, 64))
    nrm = lambda shape, std=0.02: (std * jax.random.normal(next(ks), shape)).astype(jnp.float32)

    def stack(make):
        return jnp.stack([make() for _ in range(DEPTH)], axis=0)

    head_w = jnp.zeros((DIM, NUM_CLASSES), jnp.float32)          # torch.nn.init.zeros_(mlp_head.weight)
    head_b = nrm((1, NUM_CLASSES))

    params = {
        "pe_ln0_g": jnp.ones((1, PATCH_DIM), jnp.float32),
        "pe_ln0_b": jnp.zeros((1, PATCH_DIM), jnp.float32),
        "pe_w": nrm((PATCH_DIM, DIM)).astype(jnp.bfloat16),
        "pe_b": nrm((1, DIM)),
        "pe_ln1_g": jnp.ones((1, DIM), jnp.float32),
        "pe_ln1_b": jnp.zeros((1, DIM), jnp.float32),
        "pos_embedding": nrm((1, NUM_PATCHES + 1, DIM), 1.0),
        "cls_token": nrm((1, 1, DIM), 1.0),
        "final_ln_g": jnp.ones((1, DIM), jnp.float32),
        "final_ln_b": jnp.zeros((1, DIM), jnp.float32),
        # classifier lane-padded to 128 columns (extra columns are zero)
        "head_w_pad": jnp.pad(head_w, ((0, 0), (0, N_PAD - NUM_CLASSES))).astype(jnp.bfloat16),
        "head_b_pad": jnp.pad(head_b, ((0, 0), (0, N_PAD - NUM_CLASSES))),
        # transformer layers, stacked along DEPTH
        "a_ln_g": jnp.ones((DEPTH, 1, DIM), jnp.float32),
        "a_ln_b": jnp.zeros((DEPTH, 1, DIM), jnp.float32),
        "wqkv": stack(lambda: nrm((DIM, 3 * INNER))).astype(jnp.bfloat16),   # to_qkv has no bias
        "wo": stack(lambda: nrm((INNER, DIM))).astype(jnp.bfloat16),
        "bo": stack(lambda: nrm((1, DIM))),
        "f_ln_g": jnp.ones((DEPTH, 1, DIM), jnp.float32),
        "f_ln_b": jnp.zeros((DEPTH, 1, DIM), jnp.float32),
        "w1": stack(lambda: nrm((DIM, MLP_DIM))).astype(jnp.bfloat16),
        "b1": stack(lambda: nrm((1, MLP_DIM))),
        "w2": jnp.zeros((DEPTH, MLP_DIM, DIM), jnp.bfloat16),    # torch.nn.init.zeros_(ff.e.weight)
        "b2": stack(lambda: nrm((1, DIM))),
    }
    return params


if __name__ == "__main__":
    key = jax.random.PRNGKey(0)
    pkey, ikey = jax.random.split(key)
    params = init_params(pkey)
    img = jax.random.normal(ikey, (B, C, IMG, IMG), dtype=jnp.float32)  # NCHW like PyTorch

    logits = vit_forward(img, params)
    jax.block_until_ready(logits)
    assert logits.shape == (B, NUM_CLASSES) and logits.dtype == jnp.float32
    assert bool(jnp.all(jnp.isfinite(logits)))
    print("KERNEL_OK")
</pallas_src>

<mosaic_0001>
module attributes {stable_mosaic.version = 11 : i64} {
  func.func @_vit_kernel(%arg0: i32, %arg1: memref<16x128xf32, #tpu.memory_space<vmem>>, %arg2: memref<1x128xf32, #tpu.memory_space<vmem>>, %arg3: memref<1x128xf32, #tpu.memory_space<vmem>>, %arg4: memref<128x128xbf16, #tpu.memory_space<vmem>>, %arg5: memref<1x128xf32, #tpu.memory_space<vmem>>, %arg6: memref<1x128xf32, #tpu.memory_space<vmem>>, %arg7: memref<1x128xf32, #tpu.memory_space<vmem>>, %arg8: memref<16x128xf32, #tpu.memory_space<vmem>>, %arg9: memref<16x1xf32, #tpu.memory_space<vmem>>, %arg10: memref<16x16xf32, #tpu.memory_space<vmem>>, %arg11: memref<2x1x128xf32, #tpu.memory_space<vmem>>, %arg12: memref<2x1x128xf32, #tpu.memory_space<vmem>>, %arg13: memref<2x128x384xbf16, #tpu.memory_space<vmem>>, %arg14: memref<2x128x128xbf16, #tpu.memory_space<vmem>>, %arg15: memref<2x1x128xf32, #tpu.memory_space<vmem>>, %arg16: memref<2x1x128xf32, #tpu.memory_space<vmem>>, %arg17: memref<2x1x128xf32, #tpu.memory_space<vmem>>, %arg18: memref<2x128x128xbf16, #tpu.memory_space<vmem>>, %arg19: memref<2x1x128xf32, #tpu.memory_space<vmem>>, %arg20: memref<2x128x128xbf16, #tpu.memory_space<vmem>>, %arg21: memref<2x1x128xf32, #tpu.memory_space<vmem>>, %arg22: memref<1x128xf32, #tpu.memory_space<vmem>>, %arg23: memref<1x128xf32, #tpu.memory_space<vmem>>, %arg24: memref<128x128xbf16, #tpu.memory_space<vmem>>, %arg25: memref<1x128xf32, #tpu.memory_space<vmem>>, %arg26: memref<16x128xf32, #tpu.memory_space<vmem>>) attributes {dimension_semantics = [#tpu.dimension_semantics<arbitrary>], iteration_bounds = array<i64: 1>, scalar_prefetch = 0 : i64, scratch_operands = 0 : i64, tpu.core_type = #tpu.core_type<tc>, window_params = [{pipeline_mode = #tpu.pipeline_mode<synchronous>, transform_indices = @transform_0, window_bounds = array<i64: 16, 128>}, {pipeline_mode = #tpu.pipeline_mode<synchronous>, transform_indices = @transform_1, window_bounds = array<i64: 1, 128>}, {pipeline_mode = #tpu.pipeline_mode<synchronous>, transform_indices = @transform_2, window_bounds = array<i64: 1, 128>}, {pipeline_mode = #tpu.pipeline_mode<synchronous>, transform_indices = @transform_3, window_bounds = array<i64: 128, 128>}, {pipeline_mode = #tpu.pipeline_mode<synchronous>, transform_indices = @transform_4, window_bounds = array<i64: 1, 128>}, {pipeline_mode = #tpu.pipeline_mode<synchronous>, transform_indices = @transform_5, window_bounds = array<i64: 1, 128>}, {pipeline_mode = #tpu.pipeline_mode<synchronous>, transform_indices = @transform_6, window_bounds = array<i64: 1, 128>}, {pipeline_mode = #tpu.pipeline_mode<synchronous>, transform_indices = @transform_7, window_bounds = array<i64: 16, 128>}, {pipeline_mode = #tpu.pipeline_mode<synchronous>, transform_indices = @transform_8, window_bounds = array<i64: 16, 1>}, {pipeline_mode = #tpu.pipeline_mode<synchronous>, transform_indices = @transform_9, window_bounds = array<i64: 16, 16>}, {pipeline_mode = #tpu.pipeline_mode<synchronous>, transform_indices = @transform_10, window_bounds = array<i64: 2, 1, 128>}, {pipeline_mode = #tpu.pipeline_mode<synchronous>, transform_indices = @transform_11, window_bounds = array<i64: 2, 1, 128>}, {pipeline_mode = #tpu.pipeline_mode<synchronous>, transform_indices = @transform_12, window_bounds = array<i64: 2, 128, 384>}, {pipeline_mode = #tpu.pipeline_mode<synchronous>, transform_indices = @transform_13, window_bounds = array<i64: 2, 128, 128>}, {pipeline_mode = #tpu.pipeline_mode<synchronous>, transform_indices = @transform_14, window_bounds = array<i64: 2, 1, 128>}, {pipeline_mode = #tpu.pipeline_mode<synchronous>, transform_indices = @transform_15, window_bounds = array<i64: 2, 1, 128>}, {pipeline_mode = #tpu.pipeline_mode<synchronous>, transform_indices = @transform_16, window_bounds = array<i64: 2, 1, 128>}, {pipeline_mode = #tpu.pipeline_mode<synchronous>, transform_indices = @transform_17, window_bounds = array<i64: 2, 128, 128>}, {pipeline_mode = #tpu.pipeline_mode<synchronous>, transform_indices = @transform_18, window_bounds = array<i64: 2, 1, 128>}, {pipeline_mode = #tpu.pipeline_mode<synchronous>, transform_indices = @transform_19, window_bounds = array<i64: 2, 128, 128>}, {pipeline_mode = #tpu.pipeline_mode<synchronous>, transform_indices = @transform_20, window_bounds = array<i64: 2, 1, 128>}, {pipeline_mode = #tpu.pipeline_mode<synchronous>, transform_indices = @transform_21, window_bounds = array<i64: 1, 128>}, {pipeline_mode = #tpu.pipeline_mode<synchronous>, transform_indices = @transform_22, window_bounds = array<i64: 1, 128>}, {pipeline_mode = #tpu.pipeline_mode<synchronous>, transform_indices = @transform_23, window_bounds = array<i64: 128, 128>}, {pipeline_mode = #tpu.pipeline_mode<synchronous>, transform_indices = @transform_24, window_bounds = array<i64: 1, 128>}, {pipeline_mode = #tpu.pipeline_mode<synchronous>, transform_indices = @transform_25, window_bounds = array<i64: 16, 128>}]} {
    %c0 = arith.constant 0 : index
    %c0_0 = arith.constant 0 : index
    %0 = vector.load %arg1[%c0, %c0_0] : memref<16x128xf32, #tpu.memory_space<vmem>>, vector<16x128xf32>
    %c0_1 = arith.constant 0 : index
    %c0_2 = arith.constant 0 : index
    %1 = vector.load %arg2[%c0_1, %c0_2] : memref<1x128xf32, #tpu.memory_space<vmem>>, vector<1x128xf32>
    %c0_3 = arith.constant 0 : index
    %c0_4 = arith.constant 0 : index
    %2 = vector.load %arg3[%c0_3, %c0_4] : memref<1x128xf32, #tpu.memory_space<vmem>>, vector<1x128xf32>
    %cst = arith.constant dense<0.000000e+00> : vector<16xf32>
    %3 = vector.multi_reduction <add>, %0, %cst [1] : vector<16x128xf32> to vector<16xf32>
    %4 = vector.shape_cast %3 : vector<16xf32> to vector<16x1xf32>
    %5 = arith.mulf %0, %0 : vector<16x128xf32>
    %cst_5 = arith.constant dense<0.000000e+00> : vector<16xf32>
    %6 = vector.multi_reduction <add>, %5, %cst_5 [1] : vector<16x128xf32> to vector<16xf32>
    %7 = vector.shape_cast %6 : vector<16xf32> to vector<16x1xf32>
    %cst_6 = arith.constant 7.812500e-03 : f32
    %8 = vector.broadcast %cst_6 : f32 to vector<16x1xf32>
    %9 = arith.mulf %4, %8 : vector<16x1xf32>
    %cst_7 = arith.constant 7.812500e-03 : f32
    %10 = vector.broadcast %cst_7 : f32 to vector<16x1xf32>
    %11 = arith.mulf %7, %10 : vector<16x1xf32>
    %12 = arith.mulf %9, %9 : vector<16x1xf32>
    %13 = arith.subf %11, %12 : vector<16x1xf32>
    %14 = vector.broadcast %9 : vector<16x1xf32> to vector<16x128xf32>
    %15 = arith.subf %0, %14 : vector<16x128xf32>
    %cst_8 = arith.constant 9.99999974E-6 : f32
    %16 = vector.broadcast %cst_8 : f32 to vector<16x1xf32>
    %17 = arith.addf %13, %16 : vector<16x1xf32>
    %18 = math.rsqrt %17 : vector<16x1xf32>
    %19 = vector.broadcast %18 : vector<16x1xf32> to vector<16x128xf32>
    %20 = arith.mulf %15, %19 : vector<16x128xf32>
    %21 = vector.broadcast %1 : vector<1x128xf32> to vector<16x128xf32>
    %22 = arith.mulf %20, %21 : vector<16x128xf32>
    %23 = vector.broadcast %2 : vector<1x128xf32> to vector<16x128xf32>
    %24 = arith.addf %22, %23 : vector<16x128xf32>
    %25 = arith.truncf %24 : vector<16x128xf32> to vector<16x128xbf16>
    %c0_9 = arith.constant 0 : index
    %c0_10 = arith.constant 0 : index
    %26 = vector.load %arg4[%c0_9, %c0_10] : memref<128x128xbf16, #tpu.memory_space<vmem>>, vector<128x128xbf16>
    %cst_11 = arith.constant dense<0.000000e+00> : vector<16x128xf32>
    %27 = tpu.matmul %25, %26, %cst_11 {dimension_numbers = #tpu.dot_dimension_numbers<[1], [0], [0], [1], [0, 0, 1, 1], [], []>} : vector<16x128xbf16>, vector<128x128xbf16>, vector<16x128xf32> -> vector<16x128xf32>
    %c0_12 = arith.constant 0 : index
    %c0_13 = arith.constant 0 : index
    %28 = vector.load %arg5[%c0_12, %c0_13] : memref<1x128xf32, #tpu.memory_space<vmem>>, vector<1x128xf32>
    %29 = vector.broadcast %28 : vector<1x128xf32> to vector<16x128xf32>
    %30 = arith.addf %27, %29 : vector<16x128xf32>
    %c0_14 = arith.constant 0 : index
    %c0_15 = arith.constant 0 : index
    %31 = vector.load %arg6[%c0_14, %c0_15] : memref<1x128xf32, #tpu.memory_space<vmem>>, vector<1x128xf32>
    %c0_16 = arith.constant 0 : index
    %c0_17 = arith.constant 0 : index
    %32 = vector.load %arg7[%c0_16, %c0_17] : memref<1x128xf32, #tpu.memory_space<vmem>>, vector<1x128xf32>
    %cst_18 = arith.constant dense<0.000000e+00> : vector<16xf32>
    %33 = vector.multi_reduction <add>, %30, %cst_18 [1] : vector<16x128xf32> to vector<16xf32>
    %34 = vector.shape_cast %33 : vector<16xf32> to vector<16x1xf32>
    %35 = arith.mulf %30, %30 : vector<16x128xf32>
    %cst_19 = arith.constant dense<0.000000e+00> : vector<16xf32>
    %36 = vector.multi_reduction <add>, %35, %cst_19 [1] : vector<16x128xf32> to vector<16xf32>
    %37 = vector.shape_cast %36 : vector<16xf32> to vector<16x1xf32>
    %cst_20 = arith.constant 7.812500e-03 : f32
    %38 = vector.broadcast %cst_20 : f32 to vector<16x1xf32>
    %39 = arith.mulf %34, %38 : vector<16x1xf32>
    %cst_21 = arith.constant 7.812500e-03 : f32
    %40 = vector.broadcast %cst_21 : f32 to vector<16x1xf32>
    %41 = arith.mulf %37, %40 : vector<16x1xf32>
    %42 = arith.mulf %39, %39 : vector<16x1xf32>
    %43 = arith.subf %41, %42 : vector<16x1xf32>
    %44 = vector.broadcast %39 : vector<16x1xf32> to vector<16x128xf32>
    %45 = arith.subf %30, %44 : vector<16x128xf32>
    %cst_22 = arith.constant 9.99999974E-6 : f32
    %46 = vector.broadcast %cst_22 : f32 to vector<16x1xf32>
    %47 = arith.addf %43, %46 : vector<16x1xf32>
    %48 = math.rsqrt %47 : vector<16x1xf32>
    %49 = vector.broadcast %48 : vector<16x1xf32> to vector<16x128xf32>
    %50 = arith.mulf %45, %49 : vector<16x128xf32>
    %51 = vector.broadcast %31 : vector<1x128xf32> to vector<16x128xf32>
    %52 = arith.mulf %50, %51 : vector<16x128xf32>
    %53 = vector.broadcast %32 : vector<1x128xf32> to vector<16x128xf32>
    %54 = arith.addf %52, %53 : vector<16x128xf32>
    %c0_23 = arith.constant 0 : index
    %c0_24 = arith.constant 0 : index
    %55 = vector.load %arg9[%c0_23, %c0_24] : memref<16x1xf32, #tpu.memory_space<vmem>>, vector<16x1xf32>
    %56 = vector.broadcast %55 : vector<16x1xf32> to vector<16x128xf32>
    %57 = arith.mulf %54, %56 : vector<16x128xf32>
    %c0_25 = arith.constant 0 : index
    %c0_26 = arith.constant 0 : index
    %58 = vector.load %arg8[%c0_25, %c0_26] : memref<16x128xf32, #tpu.memory_space<vmem>>, vector<16x128xf32>
    %59 = arith.addf %57, %58 : vector<16x128xf32>
    %c0_27 = arith.constant 0 : index
    %c0_28 = arith.constant 0 : index
    %60 = vector.load %arg10[%c0_27, %c0_28] : memref<16x16xf32, #tpu.memory_space<vmem>>, vector<16x16xf32>
    %c0_29 = arith.constant 0 : index
    %c0_30 = arith.constant 0 : index
    %c0_31 = arith.constant 0 : index
    %61 = vector.load %arg11[%c0_29, %c0_30, %c0_31] : memref<2x1x128xf32, #tpu.memory_space<vmem>>, vector<1x1x128xf32>
    %62 = vector.shape_cast %61 : vector<1x1x128xf32> to vector<1x128xf32>
    %c0_32 = arith.constant 0 : index
    %c0_33 = arith.constant 0 : index
    %c0_34 = arith.constant 0 : index
    %63 = vector.load %arg12[%c0_32, %c0_33, %c0_34] : memref<2x1x128xf32, #tpu.memory_space<vmem>>, vector<1x1x128xf32>
    %64 = vector.shape_cast %63 : vector<1x1x128xf32> to vector<1x128xf32>
    %cst_35 = arith.constant dense<0.000000e+00> : vector<16xf32>
    %65 = vector.multi_reduction <add>, %59, %cst_35 [1] : vector<16x128xf32> to vector<16xf32>
    %66 = vector.shape_cast %65 : vector<16xf32> to vector<16x1xf32>
    %67 = arith.mulf %59, %59 : vector<16x128xf32>
    %cst_36 = arith.constant dense<0.000000e+00> : vector<16xf32>
    %68 = vector.multi_reduction <add>, %67, %cst_36 [1] : vector<16x128xf32> to vector<16xf32>
    %69 = vector.shape_cast %68 : vector<16xf32> to vector<16x1xf32>
    %cst_37 = arith.constant 7.812500e-03 : f32
    %70 = vector.broadcast %cst_37 : f32 to vector<16x1xf32>
    %71 = arith.mulf %66, %70 : vector<16x1xf32>
    %cst_38 = arith.constant 7.812500e-03 : f32
    %72 = vector.broadcast %cst_38 : f32 to vector<16x1xf32>
    %73 = arith.mulf %69, %72 : vector<16x1xf32>
    %74 = arith.mulf %71, %71 : vector<16x1xf32>
    %75 = arith.subf %73, %74 : vector<16x1xf32>
    %76 = vector.broadcast %71 : vector<16x1xf32> to vector<16x128xf32>
    %77 = arith.subf %59, %76 : vector<16x128xf32>
    %cst_39 = arith.constant 9.99999974E-6 : f32
    %78 = vector.broadcast %cst_39 : f32 to vector<16x1xf32>
    %79 = arith.addf %75, %78 : vector<16x1xf32>
    %80 = math.rsqrt %79 : vector<16x1xf32>
    %81 = vector.broadcast %80 : vector<16x1xf32> to vector<16x128xf32>
    %82 = arith.mulf %77, %81 : vector<16x128xf32>
    %83 = vector.broadcast %62 : vector<1x128xf32> to vector<16x128xf32>
    %84 = arith.mulf %82, %83 : vector<16x128xf32>
    %85 = vector.broadcast %64 : vector<1x128xf32> to vector<16x128xf32>
    %86 = arith.addf %84, %85 : vector<16x128xf32>
    %87 = arith.truncf %86 : vector<16x128xf32> to vector<16x128xbf16>
    %c0_40 = arith.constant 0 : index
    %c0_41 = arith.constant 0 : index
    %c0_42 = arith.constant 0 : index
    %88 = vector.load %arg13[%c0_40, %c0_41, %c0_42] : memref<2x128x384xbf16, #tpu.memory_space<vmem>>, vector<1x128x384xbf16>
    %89 = vector.shape_cast %88 : vector<1x128x384xbf16> to vector<128x384xbf16>
    %cst_43 = arith.constant dense<0.000000e+00> : vector<16x384xf32>
    %90 = tpu.matmul %87, %89, %cst_43 {dimension_numbers = #tpu.dot_dimension_numbers<[1], [0], [0], [1], [0, 0, 1, 1], [], []>} : vector<16x128xbf16>, vector<128x384xbf16>, vector<16x384xf32> -> vector<16x384xf32>
    %91 = arith.truncf %90 : vector<16x384xf32> to vector<16x384xbf16>
    %92 = vector.extract_strided_slice %91 {offsets = [0, 0], sizes = [16, 32], strides = [1, 1]} : vector<16x384xbf16> to vector<16x32xbf16>
    %93 = vector.extract_strided_slice %91 {offsets = [0, 128], sizes = [16, 32], strides = [1, 1]} : vector<16x384xbf16> to vector<16x32xbf16>
    %94 = vector.extract_strided_slice %91 {offsets = [0, 256], sizes = [16, 32], strides = [1, 1]} : vector<16x384xbf16> to vector<16x32xbf16>
    %cst_44 = arith.constant dense<0.000000e+00> : vector<16x16xf32>
    %95 = tpu.matmul %92, %93, %cst_44 {dimension_numbers = #tpu.dot_dimension_numbers<[1], [1], [0], [0], [0, 0, 1, 0], [], []>} : vector<16x32xbf16>, vector<16x32xbf16>, vector<16x16xf32> -> vector<16x16xf32>
    %cst_45 = arith.constant 0.176776692 : f32
    %96 = vector.broadcast %cst_45 : f32 to vector<16x16xf32>
    %97 = arith.mulf %95, %96 : vector<16x16xf32>
    %98 = arith.addf %97, %60 : vector<16x16xf32>
    %cst_46 = arith.constant dense<0xFF800000> : vector<16xf32>
    %99 = vector.multi_reduction <maximumf>, %98, %cst_46 [1] : vector<16x16xf32> to vector<16xf32>
    %100 = vector.shape_cast %99 : vector<16xf32> to vector<16x1xf32>
    %101 = vector.broadcast %100 : vector<16x1xf32> to vector<16x16xf32>
    %102 = arith.subf %98, %101 : vector<16x16xf32>
    %103 = math.exp %102 : vector<16x16xf32>
    %cst_47 = arith.constant dense<0.000000e+00> : vector<16xf32>
    %104 = vector.multi_reduction <add>, %103, %cst_47 [1] : vector<16x16xf32> to vector<16xf32>
    %105 = vector.shape_cast %104 : vector<16xf32> to vector<16x1xf32>
    %106 = vector.broadcast %105 : vector<16x1xf32> to vector<16x16xf32>
    %107 = arith.divf %103, %106 : vector<16x16xf32>
    %108 = arith.truncf %107 : vector<16x16xf32> to vector<16x16xbf16>
    %cst_48 = arith.constant dense<0.000000e+00> : vector<16x32xf32>
    %109 = tpu.matmul %108, %94, %cst_48 {dimension_numbers = #tpu.dot_dimension_numbers<[1], [0], [0], [1], [0, 0, 1, 1], [], []>} : vector<16x16xbf16>, vector<16x32xbf16>, vector<16x32xf32> -> vector<16x32xf32>
    %110 = vector.extract_strided_slice %91 {offsets = [0, 32], sizes = [16, 32], strides = [1, 1]} : vector<16x384xbf16> to vector<16x32xbf16>
    %111 = vector.extract_strided_slice %91 {offsets = [0, 160], sizes = [16, 32], strides = [1, 1]} : vector<16x384xbf16> to vector<16x32xbf16>
    %112 = vector.extract_strided_slice %91 {offsets = [0, 288], sizes = [16, 32], strides = [1, 1]} : vector<16x384xbf16> to vector<16x32xbf16>
    %cst_49 = arith.constant dense<0.000000e+00> : vector<16x16xf32>
    %113 = tpu.matmul %110, %111, %cst_49 {dimension_numbers = #tpu.dot_dimension_numbers<[1], [1], [0], [0], [0, 0, 1, 0], [], []>} : vector<16x32xbf16>, vector<16x32xbf16>, vector<16x16xf32> -> vector<16x16xf32>
    %cst_50 = arith.constant 0.176776692 : f32
    %114 = vector.broadcast %cst_50 : f32 to vector<16x16xf32>
    %115 = arith.mulf %113, %114 : vector<16x16xf32>
    %116 = arith.addf %115, %60 : vector<16x16xf32>
    %cst_51 = arith.constant dense<0xFF800000> : vector<16xf32>
    %117 = vector.multi_reduction <maximumf>, %116, %cst_51 [1] : vector<16x16xf32> to vector<16xf32>
    %118 = vector.shape_cast %117 : vector<16xf32> to vector<16x1xf32>
    %119 = vector.broadcast %118 : vector<16x1xf32> to vector<16x16xf32>
    %120 = arith.subf %116, %119 : vector<16x16xf32>
    %121 = math.exp %120 : vector<16x16xf32>
    %cst_52 = arith.constant dense<0.000000e+00> : vector<16xf32>
    %122 = vector.multi_reduction <add>, %121, %cst_52 [1] : vector<16x16xf32> to vector<16xf32>
    %123 = vector.shape_cast %122 : vector<16xf32> to vector<16x1xf32>
    %124 = vector.broadcast %123 : vector<16x1xf32> to vector<16x16xf32>
    %125 = arith.divf %121, %124 : vector<16x16xf32>
    %126 = arith.truncf %125 : vector<16x16xf32> to vector<16x16xbf16>
    %cst_53 = arith.constant dense<0.000000e+00> : vector<16x32xf32>
    %127 = tpu.matmul %126, %112, %cst_53 {dimension_numbers = #tpu.dot_dimension_numbers<[1], [0], [0], [1], [0, 0, 1, 1], [], []>} : vector<16x16xbf16>, vector<16x32xbf16>, vector<16x32xf32> -> vector<16x32xf32>
    %128 = vector.extract_strided_slice %91 {offsets = [0, 64], sizes = [16, 32], strides = [1, 1]} : vector<16x384xbf16> to vector<16x32xbf16>
    %129 = vector.extract_strided_slice %91 {offsets = [0, 192], sizes = [16, 32], strides = [1, 1]} : vector<16x384xbf16> to vector<16x32xbf16>
    %130 = vector.extract_strided_slice %91 {offsets = [0, 320], sizes = [16, 32], strides = [1, 1]} : vector<16x384xbf16> to vector<16x32xbf16>
    %cst_54 = arith.constant dense<0.000000e+00> : vector<16x16xf32>
    %131 = tpu.matmul %128, %129, %cst_54 {dimension_numbers = #tpu.dot_dimension_numbers<[1], [1], [0], [0], [0, 0, 1, 0], [], []>} : vector<16x32xbf16>, vector<16x32xbf16>, vector<16x16xf32> -> vector<16x16xf32>
    %cst_55 = arith.constant 0.176776692 : f32
    %132 = vector.broadcast %cst_55 : f32 to vector<16x16xf32>
    %133 = arith.mulf %131, %132 : vector<16x16xf32>
    %134 = arith.addf %133, %60 : vector<16x16xf32>
    %cst_56 = arith.constant dense<0xFF800000> : vector<16xf32>
    %135 = vector.multi_reduction <maximumf>, %134, %cst_56 [1] : vector<16x16xf32> to vector<16xf32>
    %136 = vector.shape_cast %135 : vector<16xf32> to vector<16x1xf32>
    %137 = vector.broadcast %136 : vector<16x1xf32> to vector<16x16xf32>
    %138 = arith.subf %134, %137 : vector<16x16xf32>
    %139 = math.exp %138 : vector<16x16xf32>
    %cst_57 = arith.constant dense<0.000000e+00> : vector<16xf32>
    %140 = vector.multi_reduction <add>, %139, %cst_57 [1] : vector<16x16xf32> to vector<16xf32>
    %141 = vector.shape_cast %140 : vector<16xf32> to vector<16x1xf32>
    %142 = vector.broadcast %141 : vector<16x1xf32> to vector<16x16xf32>
    %143 = arith.divf %139, %142 : vector<16x16xf32>
    %144 = arith.truncf %143 : vector<16x16xf32> to vector<16x16xbf16>
    %cst_58 = arith.constant dense<0.000000e+00> : vector<16x32xf32>
    %145 = tpu.matmul %144, %130, %cst_58 {dimension_numbers = #tpu.dot_dimension_numbers<[1], [0], [0], [1], [0, 0, 1, 1], [], []>} : vector<16x16xbf16>, vector<16x32xbf16>, vector<16x32xf32> -> vector<16x32xf32>
    %146 = vector.extract_strided_slice %91 {offsets = [0, 96], sizes = [16, 32], strides = [1, 1]} : vector<16x384xbf16> to vector<16x32xbf16>
    %147 = vector.extract_strided_slice %91 {offsets = [0, 224], sizes = [16, 32], strides = [1, 1]} : vector<16x384xbf16> to vector<16x32xbf16>
    %148 = vector.extract_strided_slice %91 {offsets = [0, 352], sizes = [16, 32], strides = [1, 1]} : vector<16x384xbf16> to vector<16x32xbf16>
    %cst_59 = arith.constant dense<0.000000e+00> : vector<16x16xf32>
    %149 = tpu.matmul %146, %147, %cst_59 {dimension_numbers = #tpu.dot_dimension_numbers<[1], [1], [0], [0], [0, 0, 1, 0], [], []>} : vector<16x32xbf16>, vector<16x32xbf16>, vector<16x16xf32> -> vector<16x16xf32>
    %cst_60 = arith.constant 0.176776692 : f32
    %150 = vector.broadcast %cst_60 : f32 to vector<16x16xf32>
    %151 = arith.mulf %149, %150 : vector<16x16xf32>
    %152 = arith.addf %151, %60 : vector<16x16xf32>
    %cst_61 = arith.constant dense<0xFF800000> : vector<16xf32>
    %153 = vector.multi_reduction <maximumf>, %152, %cst_61 [1] : vector<16x16xf32> to vector<16xf32>
    %154 = vector.shape_cast %153 : vector<16xf32> to vector<16x1xf32>
    %155 = vector.broadcast %154 : vector<16x1xf32> to vector<16x16xf32>
    %156 = arith.subf %152, %155 : vector<16x16xf32>
    %157 = math.exp %156 : vector<16x16xf32>
    %cst_62 = arith.constant dense<0.000000e+00> : vector<16xf32>
    %158 = vector.multi_reduction <add>, %157, %cst_62 [1] : vector<16x16xf32> to vector<16xf32>
    %159 = vector.shape_cast %158 : vector<16xf32> to vector<16x1xf32>
    %160 = vector.broadcast %159 : vector<16x1xf32> to vector<16x16xf32>
    %161 = arith.divf %157, %160 : vector<16x16xf32>
    %162 = arith.truncf %161 : vector<16x16xf32> to vector<16x16xbf16>
    %cst_63 = arith.constant dense<0.000000e+00> : vector<16x32xf32>
    %163 = tpu.matmul %162, %148, %cst_63 {dimension_numbers = #tpu.dot_dimension_numbers<[1], [0], [0], [1], [0, 0, 1, 1], [], []>} : vector<16x16xbf16>, vector<16x32xbf16>, vector<16x32xf32> -> vector<16x32xf32>
    %164 = tpu.concatenate %109, %127, %145, %163 in 1 : vector<16x32xf32>, vector<16x32xf32>, vector<16x32xf32>, vector<16x32xf32> -> vector<16x128xf32>
    %165 = arith.truncf %164 : vector<16x128xf32> to vector<16x128xbf16>
    %c0_64 = arith.constant 0 : index
    %c0_65 = arith.constant 0 : index
    %c0_66 = arith.constant 0 : index
    %166 = vector.load %arg14[%c0_64, %c0_65, %c0_66] : memref<2x128x128xbf16, #tpu.memory_space<vmem>>, vector<1x128x128xbf16>
    %167 = vector.shape_cast %166 : vector<1x128x128xbf16> to vector<128x128xbf16>
    %cst_67 = arith.constant dense<0.000000e+00> : vector<16x128xf32>
    %168 = tpu.matmul %165, %167, %cst_67 {dimension_numbers = #tpu.dot_dimension_numbers<[1], [0], [0], [1], [0, 0, 1, 1], [], []>} : vector<16x128xbf16>, vector<128x128xbf16>, vector<16x128xf32> -> vector<16x128xf32>
    %169 = arith.addf %59, %168 : vector<16x128xf32>
    %c0_68 = arith.constant 0 : index
    %c0_69 = arith.constant 0 : index
    %c0_70 = arith.constant 0 : index
    %170 = vector.load %arg15[%c0_68, %c0_69, %c0_70] : memref<2x1x128xf32, #tpu.memory_space<vmem>>, vector<1x1x128xf32>
    %171 = vector.shape_cast %170 : vector<1x1x128xf32> to vector<1x128xf32>
    %172 = vector.broadcast %171 : vector<1x128xf32> to vector<16x128xf32>
    %173 = arith.addf %169, %172 : vector<16x128xf32>
    %c0_71 = arith.constant 0 : index
    %c0_72 = arith.constant 0 : index
    %c0_73 = arith.constant 0 : index
    %174 = vector.load %arg16[%c0_71, %c0_72, %c0_73] : memref<2x1x128xf32, #tpu.memory_space<vmem>>, vector<1x1x128xf32>
    %175 = vector.shape_cast %174 : vector<1x1x128xf32> to vector<1x128xf32>
    %c0_74 = arith.constant 0 : index
    %c0_75 = arith.constant 0 : index
    %c0_76 = arith.constant 0 : index
    %176 = vector.load %arg17[%c0_74, %c0_75, %c0_76] : memref<2x1x128xf32, #tpu.memory_space<vmem>>, vector<1x1x128xf32>
    %177 = vector.shape_cast %176 : vector<1x1x128xf32> to vector<1x128xf32>
    %cst_77 = arith.constant dense<0.000000e+00> : vector<16xf32>
    %178 = vector.multi_reduction <add>, %173, %cst_77 [1] : vector<16x128xf32> to vector<16xf32>
    %179 = vector.shape_cast %178 : vector<16xf32> to vector<16x1xf32>
    %180 = arith.mulf %173, %173 : vector<16x128xf32>
    %cst_78 = arith.constant dense<0.000000e+00> : vector<16xf32>
    %181 = vector.multi_reduction <add>, %180, %cst_78 [1] : vector<16x128xf32> to vector<16xf32>
    %182 = vector.shape_cast %181 : vector<16xf32> to vector<16x1xf32>
    %cst_79 = arith.constant 7.812500e-03 : f32
    %183 = vector.broadcast %cst_79 : f32 to vector<16x1xf32>
    %184 = arith.mulf %179, %183 : vector<16x1xf32>
    %cst_80 = arith.constant 7.812500e-03 : f32
    %185 = vector.broadcast %cst_80 : f32 to vector<16x1xf32>
    %186 = arith.mulf %182, %185 : vector<16x1xf32>
    %187 = arith.mulf %184, %184 : vector<16x1xf32>
    %188 = arith.subf %186, %187 : vector<16x1xf32>
    %189 = vector.broadcast %184 : vector<16x1xf32> to vector<16x128xf32>
    %190 = arith.subf %173, %189 : vector<16x128xf32>
    %cst_81 = arith.constant 9.99999974E-6 : f32
    %191 = vector.broadcast %cst_81 : f32 to vector<16x1xf32>
    %192 = arith.addf %188, %191 : vector<16x1xf32>
    %193 = math.rsqrt %192 : vector<16x1xf32>
    %194 = vector.broadcast %193 : vector<16x1xf32> to vector<16x128xf32>
    %195 = arith.mulf %190, %194 : vector<16x128xf32>
    %196 = vector.broadcast %175 : vector<1x128xf32> to vector<16x128xf32>
    %197 = arith.mulf %195, %196 : vector<16x128xf32>
    %198 = vector.broadcast %177 : vector<1x128xf32> to vector<16x128xf32>
    %199 = arith.addf %197, %198 : vector<16x128xf32>
    %200 = arith.truncf %199 : vector<16x128xf32> to vector<16x128xbf16>
    %c0_82 = arith.constant 0 : index
    %c0_83 = arith.constant 0 : index
    %c0_84 = arith.constant 0 : index
    %201 = vector.load %arg18[%c0_82, %c0_83, %c0_84] : memref<2x128x128xbf16, #tpu.memory_space<vmem>>, vector<1x128x128xbf16>
    %202 = vector.shape_cast %201 : vector<1x128x128xbf16> to vector<128x128xbf16>
    %cst_85 = arith.constant dense<0.000000e+00> : vector<16x128xf32>
    %203 = tpu.matmul %200, %202, %cst_85 {dimension_numbers = #tpu.dot_dimension_numbers<[1], [0], [0], [1], [0, 0, 1, 1], [], []>} : vector<16x128xbf16>, vector<128x128xbf16>, vector<16x128xf32> -> vector<16x128xf32>
    %c0_86 = arith.constant 0 : index
    %c0_87 = arith.constant 0 : index
    %c0_88 = arith.constant 0 : index
    %204 = vector.load %arg19[%c0_86, %c0_87, %c0_88] : memref<2x1x128xf32, #tpu.memory_space<vmem>>, vector<1x1x128xf32>
    %205 = vector.shape_cast %204 : vector<1x1x128xf32> to vector<1x128xf32>
    %206 = vector.broadcast %205 : vector<1x128xf32> to vector<16x128xf32>
    %207 = arith.addf %203, %206 : vector<16x128xf32>
    %208 = arith.mulf %207, %207 : vector<16x128xf32>
    %209 = arith.mulf %207, %208 : vector<16x128xf32>
    %cst_89 = arith.constant 4.471500e-02 : f32
    %210 = vector.broadcast %cst_89 : f32 to vector<16x128xf32>
    %211 = arith.mulf %210, %209 : vector<16x128xf32>
    %212 = arith.addf %207, %211 : vector<16x128xf32>
    %cst_90 = arith.constant 0.797884583 : f32
    %213 = vector.broadcast %cst_90 : f32 to vector<16x128xf32>
    %214 = arith.mulf %213, %212 : vector<16x128xf32>
    %215 = math.tanh %214 : vector<16x128xf32>
    %cst_91 = arith.constant 1.000000e+00 : f32
    %216 = vector.broadcast %cst_91 : f32 to vector<16x128xf32>
    %217 = arith.addf %216, %215 : vector<16x128xf32>
    %cst_92 = arith.constant 5.000000e-01 : f32
    %218 = vector.broadcast %cst_92 : f32 to vector<16x128xf32>
    %219 = arith.mulf %218, %217 : vector<16x128xf32>
    %220 = arith.mulf %207, %219 : vector<16x128xf32>
    %221 = arith.truncf %220 : vector<16x128xf32> to vector<16x128xbf16>
    %c0_93 = arith.constant 0 : index
    %c0_94 = arith.constant 0 : index
    %c0_95 = arith.constant 0 : index
    %222 = vector.load %arg20[%c0_93, %c0_94, %c0_95] : memref<2x128x128xbf16, #tpu.memory_space<vmem>>, vector<1x128x128xbf16>
    %223 = vector.shape_cast %222 : vector<1x128x128xbf16> to vector<128x128xbf16>
    %cst_96 = arith.constant dense<0.000000e+00> : vector<16x128xf32>
    %224 = tpu.matmul %221, %223, %cst_96 {dimension_numbers = #tpu.dot_dimension_numbers<[1], [0], [0], [1], [0, 0, 1, 1], [], []>} : vector<16x128xbf16>, vector<128x128xbf16>, vector<16x128xf32> -> vector<16x128xf32>
    %c0_97 = arith.constant 0 : index
    %c0_98 = arith.constant 0 : index
    %c0_99 = arith.constant 0 : index
    %225 = vector.load %arg21[%c0_97, %c0_98, %c0_99] : memref<2x1x128xf32, #tpu.memory_space<vmem>>, vector<1x1x128xf32>
    %226 = vector.shape_cast %225 : vector<1x1x128xf32> to vector<1x128xf32>
    %227 = vector.broadcast %226 : vector<1x128xf32> to vector<16x128xf32>
    %228 = arith.addf %224, %227 : vector<16x128xf32>
    %229 = arith.addf %173, %228 : vector<16x128xf32>
    %c1 = arith.constant 1 : index
    %c0_100 = arith.constant 0 : index
    %c0_101 = arith.constant 0 : index
    %230 = vector.load %arg11[%c1, %c0_100, %c0_101] : memref<2x1x128xf32, #tpu.memory_space<vmem>>, vector<1x1x128xf32>
    %231 = vector.shape_cast %230 : vector<1x1x128xf32> to vector<1x128xf32>
    %c1_102 = arith.constant 1 : index
    %c0_103 = arith.constant 0 : index
    %c0_104 = arith.constant 0 : index
    %232 = vector.load %arg12[%c1_102, %c0_103, %c0_104] : memref<2x1x128xf32, #tpu.memory_space<vmem>>, vector<1x1x128xf32>
    %233 = vector.shape_cast %232 : vector<1x1x128xf32> to vector<1x128xf32>
    %cst_105 = arith.constant dense<0.000000e+00> : vector<16xf32>
    %234 = vector.multi_reduction <add>, %229, %cst_105 [1] : vector<16x128xf32> to vector<16xf32>
    %235 = vector.shape_cast %234 : vector<16xf32> to vector<16x1xf32>
    %236 = arith.mulf %229, %229 : vector<16x128xf32>
    %cst_106 = arith.constant dense<0.000000e+00> : vector<16xf32>
    %237 = vector.multi_reduction <add>, %236, %cst_106 [1] : vector<16x128xf32> to vector<16xf32>
    %238 = vector.shape_cast %237 : vector<16xf32> to vector<16x1xf32>
    %cst_107 = arith.constant 7.812500e-03 : f32
    %239 = vector.broadcast %cst_107 : f32 to vector<16x1xf32>
    %240 = arith.mulf %235, %239 : vector<16x1xf32>
    %cst_108 = arith.constant 7.812500e-03 : f32
    %241 = vector.broadcast %cst_108 : f32 to vector<16x1xf32>
    %242 = arith.mulf %238, %241 : vector<16x1xf32>
    %243 = arith.mulf %240, %240 : vector<16x1xf32>
    %244 = arith.subf %242, %243 : vector<16x1xf32>
    %245 = vector.broadcast %240 : vector<16x1xf32> to vector<16x128xf32>
    %246 = arith.subf %229, %245 : vector<16x128xf32>
    %cst_109 = arith.constant 9.99999974E-6 : f32
    %247 = vector.broadcast %cst_109 : f32 to vector<16x1xf32>
    %248 = arith.addf %244, %247 : vector<16x1xf32>
    %249 = math.rsqrt %248 : vector<16x1xf32>
    %250 = vector.broadcast %249 : vector<16x1xf32> to vector<16x128xf32>
    %251 = arith.mulf %246, %250 : vector<16x128xf32>
    %252 = vector.broadcast %231 : vector<1x128xf32> to vector<16x128xf32>
    %253 = arith.mulf %251, %252 : vector<16x128xf32>
    %254 = vector.broadcast %233 : vector<1x128xf32> to vector<16x128xf32>
    %255 = arith.addf %253, %254 : vector<16x128xf32>
    %256 = arith.truncf %255 : vector<16x128xf32> to vector<16x128xbf16>
    %c1_110 = arith.constant 1 : index
    %c0_111 = arith.constant 0 : index
    %c0_112 = arith.constant 0 : index
    %257 = vector.load %arg13[%c1_110, %c0_111, %c0_112] : memref<2x128x384xbf16, #tpu.memory_space<vmem>>, vector<1x128x384xbf16>
    %258 = vector.shape_cast %257 : vector<1x128x384xbf16> to vector<128x384xbf16>
    %cst_113 = arith.constant dense<0.000000e+00> : vector<16x384xf32>
    %259 = tpu.matmul %256, %258, %cst_113 {dimension_numbers = #tpu.dot_dimension_numbers<[1], [0], [0], [1], [0, 0, 1, 1], [], []>} : vector<16x128xbf16>, vector<128x384xbf16>, vector<16x384xf32> -> vector<16x384xf32>
    %260 = arith.truncf %259 : vector<16x384xf32> to vector<16x384xbf16>
    %261 = vector.extract_strided_slice %260 {offsets = [0, 0], sizes = [16, 32], strides = [1, 1]} : vector<16x384xbf16> to vector<16x32xbf16>
    %262 = vector.extract_strided_slice %260 {offsets = [0, 128], sizes = [16, 32], strides = [1, 1]} : vector<16x384xbf16> to vector<16x32xbf16>
    %263 = vector.extract_strided_slice %260 {offsets = [0, 256], sizes = [16, 32], strides = [1, 1]} : vector<16x384xbf16> to vector<16x32xbf16>
    %cst_114 = arith.constant dense<0.000000e+00> : vector<16x16xf32>
    %264 = tpu.matmul %261, %262, %cst_114 {dimension_numbers = #tpu.dot_dimension_numbers<[1], [1], [0], [0], [0, 0, 1, 0], [], []>} : vector<16x32xbf16>, vector<16x32xbf16>, vector<16x16xf32> -> vector<16x16xf32>
    %cst_115 = arith.constant 0.176776692 : f32
    %265 = vector.broadcast %cst_115 : f32 to vector<16x16xf32>
    %266 = arith.mulf %264, %265 : vector<16x16xf32>
    %267 = arith.addf %266, %60 : vector<16x16xf32>
    %cst_116 = arith.constant dense<0xFF800000> : vector<16xf32>
    %268 = vector.multi_reduction <maximumf>, %267, %cst_116 [1] : vector<16x16xf32> to vector<16xf32>
    %269 = vector.shape_cast %268 : vector<16xf32> to vector<16x1xf32>
    %270 = vector.broadcast %269 : vector<16x1xf32> to vector<16x16xf32>
    %271 = arith.subf %267, %270 : vector<16x16xf32>
    %272 = math.exp %271 : vector<16x16xf32>
    %cst_117 = arith.constant dense<0.000000e+00> : vector<16xf32>
    %273 = vector.multi_reduction <add>, %272, %cst_117 [1] : vector<16x16xf32> to vector<16xf32>
    %274 = vector.shape_cast %273 : vector<16xf32> to vector<16x1xf32>
    %275 = vector.broadcast %274 : vector<16x1xf32> to vector<16x16xf32>
    %276 = arith.divf %272, %275 : vector<16x16xf32>
    %277 = arith.truncf %276 : vector<16x16xf32> to vector<16x16xbf16>
    %cst_118 = arith.constant dense<0.000000e+00> : vector<16x32xf32>
    %278 = tpu.matmul %277, %263, %cst_118 {dimension_numbers = #tpu.dot_dimension_numbers<[1], [0], [0], [1], [0, 0, 1, 1], [], []>} : vector<16x16xbf16>, vector<16x32xbf16>, vector<16x32xf32> -> vector<16x32xf32>
    %279 = vector.extract_strided_slice %260 {offsets = [0, 32], sizes = [16, 32], strides = [1, 1]} : vector<16x384xbf16> to vector<16x32xbf16>
    %280 = vector.extract_strided_slice %260 {offsets = [0, 160], sizes = [16, 32], strides = [1, 1]} : vector<16x384xbf16> to vector<16x32xbf16>
    %281 = vector.extract_strided_slice %260 {offsets = [0, 288], sizes = [16, 32], strides = [1, 1]} : vector<16x384xbf16> to vector<16x32xbf16>
    %cst_119 = arith.constant dense<0.000000e+00> : vector<16x16xf32>
    %282 = tpu.matmul %279, %280, %cst_119 {dimension_numbers = #tpu.dot_dimension_numbers<[1], [1], [0], [0], [0, 0, 1, 0], [], []>} : vector<16x32xbf16>, vector<16x32xbf16>, vector<16x16xf32> -> vector<16x16xf32>
    %cst_120 = arith.constant 0.176776692 : f32
    %283 = vector.broadcast %cst_120 : f32 to vector<16x16xf32>
    %284 = arith.mulf %282, %283 : vector<16x16xf32>
    %285 = arith.addf %284, %60 : vector<16x16xf32>
    %cst_121 = arith.constant dense<0xFF800000> : vector<16xf32>
    %286 = vector.multi_reduction <maximumf>, %285, %cst_121 [1] : vector<16x16xf32> to vector<16xf32>
    %287 = vector.shape_cast %286 : vector<16xf32> to vector<16x1xf32>
    %288 = vector.broadcast %287 : vector<16x1xf32> to vector<16x16xf32>
    %289 = arith.subf %285, %288 : vector<16x16xf32>
    %290 = math.exp %289 : vector<16x16xf32>
    %cst_122 = arith.constant dense<0.000000e+00> : vector<16xf32>
    %291 = vector.multi_reduction <add>, %290, %cst_122 [1] : vector<16x16xf32> to vector<16xf32>
    %292 = vector.shape_cast %291 : vector<16xf32> to vector<16x1xf32>
    %293 = vector.broadcast %292 : vector<16x1xf32> to vector<16x16xf32>
    %294 = arith.divf %290, %293 : vector<16x16xf32>
    %295 = arith.truncf %294 : vector<16x16xf32> to vector<16x16xbf16>
    %cst_123 = arith.constant dense<0.000000e+00> : vector<16x32xf32>
    %296 = tpu.matmul %295, %281, %cst_123 {dimension_numbers = #tpu.dot_dimension_numbers<[1], [0], [0], [1], [0, 0, 1, 1], [], []>} : vector<16x16xbf16>, vector<16x32xbf16>, vector<16x32xf32> -> vector<16x32xf32>
    %297 = vector.extract_strided_slice %260 {offsets = [0, 64], sizes = [16, 32], strides = [1, 1]} : vector<16x384xbf16> to vector<16x32xbf16>
    %298 = vector.extract_strided_slice %260 {offsets = [0, 192], sizes = [16, 32], strides = [1, 1]} : vector<16x384xbf16> to vector<16x32xbf16>
    %299 = vector.extract_strided_slice %260 {offsets = [0, 320], sizes = [16, 32], strides = [1, 1]} : vector<16x384xbf16> to vector<16x32xbf16>
    %cst_124 = arith.constant dense<0.000000e+00> : vector<16x16xf32>
    %300 = tpu.matmul %297, %298, %cst_124 {dimension_numbers = #tpu.dot_dimension_numbers<[1], [1], [0], [0], [0, 0, 1, 0], [], []>} : vector<16x32xbf16>, vector<16x32xbf16>, vector<16x16xf32> -> vector<16x16xf32>
    %cst_125 = arith.constant 0.176776692 : f32
    %301 = vector.broadcast %cst_125 : f32 to vector<16x16xf32>
    %302 = arith.mulf %300, %301 : vector<16x16xf32>
    %303 = arith.addf %302, %60 : vector<16x16xf32>
    %cst_126 = arith.constant dense<0xFF800000> : vector<16xf32>
    %304 = vector.multi_reduction <maximumf>, %303, %cst_126 [1] : vector<16x16xf32> to vector<16xf32>
    %305 = vector.shape_cast %304 : vector<16xf32> to vector<16x1xf32>
    %306 = vector.broadcast %305 : vector<16x1xf32> to vector<16x16xf32>
    %307 = arith.subf %303, %306 : vector<16x16xf32>
    %308 = math.exp %307 : vector<16x16xf32>
    %cst_127 = arith.constant dense<0.000000e+00> : vector<16xf32>
    %309 = vector.multi_reduction <add>, %308, %cst_127 [1] : vector<16x16xf32> to vector<16xf32>
    %310 = vector.shape_cast %309 : vector<16xf32> to vector<16x1xf32>
    %311 = vector.broadcast %310 : vector<16x1xf32> to vector<16x16xf32>
    %312 = arith.divf %308, %311 : vector<16x16xf32>
    %313 = arith.truncf %312 : vector<16x16xf32> to vector<16x16xbf16>
    %cst_128 = arith.constant dense<0.000000e+00> : vector<16x32xf32>
    %314 = tpu.matmul %313, %299, %cst_128 {dimension_numbers = #tpu.dot_dimension_numbers<[1], [0], [0], [1], [0, 0, 1, 1], [], []>} : vector<16x16xbf16>, vector<16x32xbf16>, vector<16x32xf32> -> vector<16x32xf32>
    %315 = vector.extract_strided_slice %260 {offsets = [0, 96], sizes = [16, 32], strides = [1, 1]} : vector<16x384xbf16> to vector<16x32xbf16>
    %316 = vector.extract_strided_slice %260 {offsets = [0, 224], sizes = [16, 32], strides = [1, 1]} : vector<16x384xbf16> to vector<16x32xbf16>
    %317 = vector.extract_strided_slice %260 {offsets = [0, 352], sizes = [16, 32], strides = [1, 1]} : vector<16x384xbf16> to vector<16x32xbf16>
    %cst_129 = arith.constant dense<0.000000e+00> : vector<16x16xf32>
    %318 = tpu.matmul %315, %316, %cst_129 {dimension_numbers = #tpu.dot_dimension_numbers<[1], [1], [0], [0], [0, 0, 1, 0], [], []>} : vector<16x32xbf16>, vector<16x32xbf16>, vector<16x16xf32> -> vector<16x16xf32>
    %cst_130 = arith.constant 0.176776692 : f32
    %319 = vector.broadcast %cst_130 : f32 to vector<16x16xf32>
    %320 = arith.mulf %318, %319 : vector<16x16xf32>
    %321 = arith.addf %320, %60 : vector<16x16xf32>
    %cst_131 = arith.constant dense<0xFF800000> : vector<16xf32>
    %322 = vector.multi_reduction <maximumf>, %321, %cst_131 [1] : vector<16x16xf32> to vector<16xf32>
    %323 = vector.shape_cast %322 : vector<16xf32> to vector<16x1xf32>
    %324 = vector.broadcast %323 : vector<16x1xf32> to vector<16x16xf32>
    %325 = arith.subf %321, %324 : vector<16x16xf32>
    %326 = math.exp %325 : vector<16x16xf32>
    %cst_132 = arith.constant dense<0.000000e+00> : vector<16xf32>
    %327 = vector.multi_reduction <add>, %326, %cst_132 [1] : vector<16x16xf32> to vector<16xf32>
    %328 = vector.shape_cast %327 : vector<16xf32> to vector<16x1xf32>
    %329 = vector.broadcast %328 : vector<16x1xf32> to vector<16x16xf32>
    %330 = arith.divf %326, %329 : vector<16x16xf32>
    %331 = arith.truncf %330 : vector<16x16xf32> to vector<16x16xbf16>
    %cst_133 = arith.constant dense<0.000000e+00> : vector<16x32xf32>
    %332 = tpu.matmul %331, %317, %cst_133 {dimension_numbers = #tpu.dot_dimension_numbers<[1], [0], [0], [1], [0, 0, 1, 1], [], []>} : vector<16x16xbf16>, vector<16x32xbf16>, vector<16x32xf32> -> vector<16x32xf32>
    %333 = tpu.concatenate %278, %296, %314, %332 in 1 : vector<16x32xf32>, vector<16x32xf32>, vector<16x32xf32>, vector<16x32xf32> -> vector<16x128xf32>
    %334 = arith.truncf %333 : vector<16x128xf32> to vector<16x128xbf16>
    %c1_134 = arith.constant 1 : index
    %c0_135 = arith.constant 0 : index
    %c0_136 = arith.constant 0 : index
    %335 = vector.load %arg14[%c1_134, %c0_135, %c0_136] : memref<2x128x128xbf16, #tpu.memory_space<vmem>>, vector<1x128x128xbf16>
    %336 = vector.shape_cast %335 : vector<1x128x128xbf16> to vector<128x128xbf16>
    %cst_137 = arith.constant dense<0.000000e+00> : vector<16x128xf32>
    %337 = tpu.matmul %334, %336, %cst_137 {dimension_numbers = #tpu.dot_dimension_numbers<[1], [0], [0], [1], [0, 0, 1, 1], [], []>} : vector<16x128xbf16>, vector<128x128xbf16>, vector<16x128xf32> -> vector<16x128xf32>
    %338 = arith.addf %229, %337 : vector<16x128xf32>
    %c1_138 = arith.constant 1 : index
    %c0_139 = arith.constant 0 : index
    %c0_140 = arith.constant 0 : index
    %339 = vector.load %arg15[%c1_138, %c0_139, %c0_140] : memref<2x1x128xf32, #tpu.memory_space<vmem>>, vector<1x1x128xf32>
    %340 = vector.shape_cast %339 : vector<1x1x128xf32> to vector<1x128xf32>
    %341 = vector.broadcast %340 : vector<1x128xf32> to vector<16x128xf32>
    %342 = arith.addf %338, %341 : vector<16x128xf32>
    %c1_141 = arith.constant 1 : index
    %c0_142 = arith.constant 0 : index
    %c0_143 = arith.constant 0 : index
    %343 = vector.load %arg16[%c1_141, %c0_142, %c0_143] : memref<2x1x128xf32, #tpu.memory_space<vmem>>, vector<1x1x128xf32>
    %344 = vector.shape_cast %343 : vector<1x1x128xf32> to vector<1x128xf32>
    %c1_144 = arith.constant 1 : index
    %c0_145 = arith.constant 0 : index
    %c0_146 = arith.constant 0 : index
    %345 = vector.load %arg17[%c1_144, %c0_145, %c0_146] : memref<2x1x128xf32, #tpu.memory_space<vmem>>, vector<1x1x128xf32>
    %346 = vector.shape_cast %345 : vector<1x1x128xf32> to vector<1x128xf32>
    %cst_147 = arith.constant dense<0.000000e+00> : vector<16xf32>
    %347 = vector.multi_reduction <add>, %342, %cst_147 [1] : vector<16x128xf32> to vector<16xf32>
    %348 = vector.shape_cast %347 : vector<16xf32> to vector<16x1xf32>
    %349 = arith.mulf %342, %342 : vector<16x128xf32>
    %cst_148 = arith.constant dense<0.000000e+00> : vector<16xf32>
    %350 = vector.multi_reduction <add>, %349, %cst_148 [1] : vector<16x128xf32> to vector<16xf32>
    %351 = vector.shape_cast %350 : vector<16xf32> to vector<16x1xf32>
    %cst_149 = arith.constant 7.812500e-03 : f32
    %352 = vector.broadcast %cst_149 : f32 to vector<16x1xf32>
    %353 = arith.mulf %348, %352 : vector<16x1xf32>
    %cst_150 = arith.constant 7.812500e-03 : f32
    %354 = vector.broadcast %cst_150 : f32 to vector<16x1xf32>
    %355 = arith.mulf %351, %354 : vector<16x1xf32>
    %356 = arith.mulf %353, %353 : vector<16x1xf32>
    %357 = arith.subf %355, %356 : vector<16x1xf32>
    %358 = vector.broadcast %353 : vector<16x1xf32> to vector<16x128xf32>
    %359 = arith.subf %342, %358 : vector<16x128xf32>
    %cst_151 = arith.constant 9.99999974E-6 : f32
    %360 = vector.broadcast %cst_151 : f32 to vector<16x1xf32>
    %361 = arith.addf %357, %360 : vector<16x1xf32>
    %362 = math.rsqrt %361 : vector<16x1xf32>
    %363 = vector.broadcast %362 : vector<16x1xf32> to vector<16x128xf32>
    %364 = arith.mulf %359, %363 : vector<16x128xf32>
    %365 = vector.broadcast %344 : vector<1x128xf32> to vector<16x128xf32>
    %366 = arith.mulf %364, %365 : vector<16x128xf32>
    %367 = vector.broadcast %346 : vector<1x128xf32> to vector<16x128xf32>
    %368 = arith.addf %366, %367 : vector<16x128xf32>
    %369 = arith.truncf %368 : vector<16x128xf32> to vector<16x128xbf16>
    %c1_152 = arith.constant 1 : index
    %c0_153 = arith.constant 0 : index
    %c0_154 = arith.constant 0 : index
    %370 = vector.load %arg18[%c1_152, %c0_153, %c0_154] : memref<2x128x128xbf16, #tpu.memory_space<vmem>>, vector<1x128x128xbf16>
    %371 = vector.shape_cast %370 : vector<1x128x128xbf16> to vector<128x128xbf16>
    %cst_155 = arith.constant dense<0.000000e+00> : vector<16x128xf32>
    %372 = tpu.matmul %369, %371, %cst_155 {dimension_numbers = #tpu.dot_dimension_numbers<[1], [0], [0], [1], [0, 0, 1, 1], [], []>} : vector<16x128xbf16>, vector<128x128xbf16>, vector<16x128xf32> -> vector<16x128xf32>
    %c1_156 = arith.constant 1 : index
    %c0_157 = arith.constant 0 : index
    %c0_158 = arith.constant 0 : index
    %373 = vector.load %arg19[%c1_156, %c0_157, %c0_158] : memref<2x1x128xf32, #tpu.memory_space<vmem>>, vector<1x1x128xf32>
    %374 = vector.shape_cast %373 : vector<1x1x128xf32> to vector<1x128xf32>
    %375 = vector.broadcast %374 : vector<1x128xf32> to vector<16x128xf32>
    %376 = arith.addf %372, %375 : vector<16x128xf32>
    %377 = arith.mulf %376, %376 : vector<16x128xf32>
    %378 = arith.mulf %376, %377 : vector<16x128xf32>
    %cst_159 = arith.constant 4.471500e-02 : f32
    %379 = vector.broadcast %cst_159 : f32 to vector<16x128xf32>
    %380 = arith.mulf %379, %378 : vector<16x128xf32>
    %381 = arith.addf %376, %380 : vector<16x128xf32>
    %cst_160 = arith.constant 0.797884583 : f32
    %382 = vector.broadcast %cst_160 : f32 to vector<16x128xf32>
    %383 = arith.mulf %382, %381 : vector<16x128xf32>
    %384 = math.tanh %383 : vector<16x128xf32>
    %cst_161 = arith.constant 1.000000e+00 : f32
    %385 = vector.broadcast %cst_161 : f32 to vector<16x128xf32>
    %386 = arith.addf %385, %384 : vector<16x128xf32>
    %cst_162 = arith.constant 5.000000e-01 : f32
    %387 = vector.broadcast %cst_162 : f32 to vector<16x128xf32>
    %388 = arith.mulf %387, %386 : vector<16x128xf32>
    %389 = arith.mulf %376, %388 : vector<16x128xf32>
    %390 = arith.truncf %389 : vector<16x128xf32> to vector<16x128xbf16>
    %c1_163 = arith.constant 1 : index
    %c0_164 = arith.constant 0 : index
    %c0_165 = arith.constant 0 : index
    %391 = vector.load %arg20[%c1_163, %c0_164, %c0_165] : memref<2x128x128xbf16, #tpu.memory_space<vmem>>, vector<1x128x128xbf16>
    %392 = vector.shape_cast %391 : vector<1x128x128xbf16> to vector<128x128xbf16>
    %cst_166 = arith.constant dense<0.000000e+00> : vector<16x128xf32>
    %393 = tpu.matmul %390, %392, %cst_166 {dimension_numbers = #tpu.dot_dimension_numbers<[1], [0], [0], [1], [0, 0, 1, 1], [], []>} : vector<16x128xbf16>, vector<128x128xbf16>, vector<16x128xf32> -> vector<16x128xf32>
    %c1_167 = arith.constant 1 : index
    %c0_168 = arith.constant 0 : index
    %c0_169 = arith.constant 0 : index
    %394 = vector.load %arg21[%c1_167, %c0_168, %c0_169] : memref<2x1x128xf32, #tpu.memory_space<vmem>>, vector<1x1x128xf32>
    %395 = vector.shape_cast %394 : vector<1x1x128xf32> to vector<1x128xf32>
    %396 = vector.broadcast %395 : vector<1x128xf32> to vector<16x128xf32>
    %397 = arith.addf %393, %396 : vector<16x128xf32>
    %398 = arith.addf %342, %397 : vector<16x128xf32>
    %c0_170 = arith.constant 0 : index
    %c0_171 = arith.constant 0 : index
    %399 = vector.load %arg22[%c0_170, %c0_171] : memref<1x128xf32, #tpu.memory_space<vmem>>, vector<1x128xf32>
    %c0_172 = arith.constant 0 : index
    %c0_173 = arith.constant 0 : index
    %400 = vector.load %arg23[%c0_172, %c0_173] : memref<1x128xf32, #tpu.memory_space<vmem>>, vector<1x128xf32>
    %cst_174 = arith.constant dense<0.000000e+00> : vector<16xf32>
    %401 = vector.multi_reduction <add>, %398, %cst_174 [1] : vector<16x128xf32> to vector<16xf32>
    %402 = vector.shape_cast %401 : vector<16xf32> to vector<16x1xf32>
    %403 = arith.mulf %398, %398 : vector<16x128xf32>
    %cst_175 = arith.constant dense<0.000000e+00> : vector<16xf32>
    %404 = vector.multi_reduction <add>, %403, %cst_175 [1] : vector<16x128xf32> to vector<16xf32>
    %405 = vector.shape_cast %404 : vector<16xf32> to vector<16x1xf32>
    %cst_176 = arith.constant 7.812500e-03 : f32
    %406 = vector.broadcast %cst_176 : f32 to vector<16x1xf32>
    %407 = arith.mulf %402, %406 : vector<16x1xf32>
    %cst_177 = arith.constant 7.812500e-03 : f32
    %408 = vector.broadcast %cst_177 : f32 to vector<16x1xf32>
    %409 = arith.mulf %405, %408 : vector<16x1xf32>
    %410 = arith.mulf %407, %407 : vector<16x1xf32>
    %411 = arith.subf %409, %410 : vector<16x1xf32>
    %412 = vector.broadcast %407 : vector<16x1xf32> to vector<16x128xf32>
    %413 = arith.subf %398, %412 : vector<16x128xf32>
    %cst_178 = arith.constant 9.99999974E-6 : f32
    %414 = vector.broadcast %cst_178 : f32 to vector<16x1xf32>
    %415 = arith.addf %411, %414 : vector<16x1xf32>
    %416 = math.rsqrt %415 : vector<16x1xf32>
    %417 = vector.broadcast %416 : vector<16x1xf32> to vector<16x128xf32>
    %418 = arith.mulf %413, %417 : vector<16x128xf32>
    %419 = vector.broadcast %399 : vector<1x128xf32> to vector<16x128xf32>
    %420 = arith.mulf %418, %419 : vector<16x128xf32>
    %421 = vector.broadcast %400 : vector<1x128xf32> to vector<16x128xf32>
    %422 = arith.addf %420, %421 : vector<16x128xf32>
    %423 = arith.truncf %422 : vector<16x128xf32> to vector<16x128xbf16>
    %c0_179 = arith.constant 0 : index
    %c0_180 = arith.constant 0 : index
    %424 = vector.load %arg24[%c0_179, %c0_180] : memref<128x128xbf16, #tpu.memory_space<vmem>>, vector<128x128xbf16>
    %cst_181 = arith.constant dense<0.000000e+00> : vector<16x128xf32>
    %425 = tpu.matmul %423, %424, %cst_181 {dimension_numbers = #tpu.dot_dimension_numbers<[1], [0], [0], [1], [0, 0, 1, 1], [], []>} : vector<16x128xbf16>, vector<128x128xbf16>, vector<16x128xf32> -> vector<16x128xf32>
    %c0_182 = arith.constant 0 : index
    %c0_183 = arith.constant 0 : index
    %426 = vector.load %arg25[%c0_182, %c0_183] : memref<1x128xf32, #tpu.memory_space<vmem>>, vector<1x128xf32>
    %427 = vector.broadcast %426 : vector<1x128xf32> to vector<16x128xf32>
    %428 = arith.addf %425, %427 : vector<16x128xf32>
    %c0_184 = arith.constant 0 : index
    %c0_185 = arith.constant 0 : index
    %429 = vector.load %arg26[%c0_184, %c0_185] : memref<16x128xf32, #tpu.memory_space<vmem>>, vector<16x128xf32>
    tpu.vector_store %arg26[%c0_184, %c0_185], %428 {strides = array<i32>} : memref<16x128xf32, #tpu.memory_space<vmem>>, vector<16x128xf32>,
    return
  }
  func.func @transform_0(%arg0: i32) -> (i32, i32) {
    %c0_i32 = arith.constant 0 : i32
    %c0_i32_0 = arith.constant 0 : i32
    %c0_i32_1 = arith.constant 0 : i32
    return %c0_i32, %c0_i32_0 : i32, i32
  }
  func.func @transform_1(%arg0: i32) -> (i32, i32) {
    %c0_i32 = arith.constant 0 : i32
    %c0_i32_0 = arith.constant 0 : i32
    %c0_i32_1 = arith.constant 0 : i32
    return %c0_i32, %c0_i32_0 : i32, i32
  }
  func.func @transform_2(%arg0: i32) -> (i32, i32) {
    %c0_i32 = arith.constant 0 : i32
    %c0_i32_0 = arith.constant 0 : i32
    %c0_i32_1 = arith.constant 0 : i32
    return %c0_i32, %c0_i32_0 : i32, i32
  }
  func.func @transform_3(%arg0: i32) -> (i32, i32) {
    %c0_i32 = arith.constant 0 : i32
    %c0_i32_0 = arith.constant 0 : i32
    %c0_i32_1 = arith.constant 0 : i32
    return %c0_i32, %c0_i32_0 : i32, i32
  }
  func.func @transform_4(%arg0: i32) -> (i32, i32) {
    %c0_i32 = arith.constant 0 : i32
    %c0_i32_0 = arith.constant 0 : i32
    %c0_i32_1 = arith.constant 0 : i32
    return %c0_i32, %c0_i32_0 : i32, i32
  }
  func.func @transform_5(%arg0: i32) -> (i32, i32) {
    %c0_i32 = arith.constant 0 : i32
    %c0_i32_0 = arith.constant 0 : i32
    %c0_i32_1 = arith.constant 0 : i32
    return %c0_i32, %c0_i32_0 : i32, i32
  }
  func.func @transform_6(%arg0: i32) -> (i32, i32) {
    %c0_i32 = arith.constant 0 : i32
    %c0_i32_0 = arith.constant 0 : i32
    %c0_i32_1 = arith.constant 0 : i32
    return %c0_i32, %c0_i32_0 : i32, i32
  }
  func.func @transform_7(%arg0: i32) -> (i32, i32) {
    %c0_i32 = arith.constant 0 : i32
    %c0_i32_0 = arith.constant 0 : i32
    %c0_i32_1 = arith.constant 0 : i32
    return %c0_i32, %c0_i32_0 : i32, i32
  }
  func.func @transform_8(%arg0: i32) -> (i32, i32) {
    %c0_i32 = arith.constant 0 : i32
    %c0_i32_0 = arith.constant 0 : i32
    %c0_i32_1 = arith.constant 0 : i32
    return %c0_i32, %c0_i32_0 : i32, i32
  }
  func.func @transform_9(%arg0: i32) -> (i32, i32) {
    %c0_i32 = arith.constant 0 : i32
    %c0_i32_0 = arith.constant 0 : i32
    %c0_i32_1 = arith.constant 0 : i32
    return %c0_i32, %c0_i32_0 : i32, i32
  }
  func.func @transform_10(%arg0: i32) -> (i32, i32, i32) {
    %c0_i32 = arith.constant 0 : i32
    %c0_i32_0 = arith.constant 0 : i32
    %c0_i32_1 = arith.constant 0 : i32
    %c0_i32_2 = arith.constant 0 : i32
    return %c0_i32, %c0_i32_0, %c0_i32_1 : i32, i32, i32
  }
  func.func @transform_11(%arg0: i32) -> (i32, i32, i32) {
    %c0_i32 = arith.constant 0 : i32
    %c0_i32_0 = arith.constant 0 : i32
    %c0_i32_1 = arith.constant 0 : i32
    %c0_i32_2 = arith.constant 0 : i32
    return %c0_i32, %c0_i32_0, %c0_i32_1 : i32, i32, i32
  }
  func.func @transform_12(%arg0: i32) -> (i32, i32, i32) {
    %c0_i32 = arith.constant 0 : i32
    %c0_i32_0 = arith.constant 0 : i32
    %c0_i32_1 = arith.constant 0 : i32
    %c0_i32_2 = arith.constant 0 : i32
    return %c0_i32, %c0_i32_0, %c0_i32_1 : i32, i32, i32
  }
  func.func @transform_13(%arg0: i32) -> (i32, i32, i32) {
    %c0_i32 = arith.constant 0 : i32
    %c0_i32_0 = arith.constant 0 : i32
    %c0_i32_1 = arith.constant 0 : i32
    %c0_i32_2 = arith.constant 0 : i32
    return %c0_i32, %c0_i32_0, %c0_i32_1 : i32, i32, i32
  }
  func.func @transform_14(%arg0: i32) -> (i32, i32, i32) {
    %c0_i32 = arith.constant 0 : i32
    %c0_i32_0 = arith.constant 0 : i32
    %c0_i32_1 = arith.constant 0 : i32
    %c0_i32_2 = arith.constant 0 : i32
    return %c0_i32, %c0_i32_0, %c0_i32_1 : i32, i32, i32
  }
  func.func @transform_15(%arg0: i32) -> (i32, i32, i32) {
    %c0_i32 = arith.constant 0 : i32
    %c0_i32_0 = arith.constant 0 : i32
    %c0_i32_1 = arith.constant 0 : i32
    %c0_i32_2 = arith.constant 0 : i32
    return %c0_i32, %c0_i32_0, %c0_i32_1 : i32, i32, i32
  }
  func.func @transform_16(%arg0: i32) -> (i32, i32, i32) {
    %c0_i32 = arith.constant 0 : i32
    %c0_i32_0 = arith.constant 0 : i32
    %c0_i32_1 = arith.constant 0 : i32
    %c0_i32_2 = arith.constant 0 : i32
    return %c0_i32, %c0_i32_0, %c0_i32_1 : i32, i32, i32
  }
  func.func @transform_17(%arg0: i32) -> (i32, i32, i32) {
    %c0_i32 = arith.constant 0 : i32
    %c0_i32_0 = arith.constant 0 : i32
    %c0_i32_1 = arith.constant 0 : i32
    %c0_i32_2 = arith.constant 0 : i32
    return %c0_i32, %c0_i32_0, %c0_i32_1 : i32, i32, i32
  }
  func.func @transform_18(%arg0: i32) -> (i32, i32, i32) {
    %c0_i32 = arith.constant 0 : i32
    %c0_i32_0 = arith.constant 0 : i32
    %c0_i32_1 = arith.constant 0 : i32
    %c0_i32_2 = arith.constant 0 : i32
    return %c0_i32, %c0_i32_0, %c0_i32_1 : i32, i32, i32
  }
  func.func @transform_19(%arg0: i32) -> (i32, i32, i32) {
    %c0_i32 = arith.constant 0 : i32
    %c0_i32_0 = arith.constant 0 : i32
    %c0_i32_1 = arith.constant 0 : i32
    %c0_i32_2 = arith.constant 0 : i32
    return %c0_i32, %c0_i32_0, %c0_i32_1 : i32, i32, i32
  }
  func.func @transform_20(%arg0: i32) -> (i32, i32, i32) {
    %c0_i32 = arith.constant 0 : i32
    %c0_i32_0 = arith.constant 0 : i32
    %c0_i32_1 = arith.constant 0 : i32
    %c0_i32_2 = arith.constant 0 : i32
    return %c0_i32, %c0_i32_0, %c0_i32_1 : i32, i32, i32
  }
  func.func @transform_21(%arg0: i32) -> (i32, i32) {
    %c0_i32 = arith.constant 0 : i32
    %c0_i32_0 = arith.constant 0 : i32
    %c0_i32_1 = arith.constant 0 : i32
    return %c0_i32, %c0_i32_0 : i32, i32
  }
  func.func @transform_22(%arg0: i32) -> (i32, i32) {
    %c0_i32 = arith.constant 0 : i32
    %c0_i32_0 = arith.constant 0 : i32
    %c0_i32_1 = arith.constant 0 : i32
    return %c0_i32, %c0_i32_0 : i32, i32
  }
  func.func @transform_23(%arg0: i32) -> (i32, i32) {
    %c0_i32 = arith.constant 0 : i32
    %c0_i32_0 = arith.constant 0 : i32
    %c0_i32_1 = arith.constant 0 : i32
    return %c0_i32, %c0_i32_0 : i32, i32
  }
  func.func @transform_24(%arg0: i32) -> (i32, i32) {
    %c0_i32 = arith.constant 0 : i32
    %c0_i32_0 = arith.constant 0 : i32
    %c0_i32_1 = arith.constant 0 : i32
    return %c0_i32, %c0_i32_0 : i32, i32
  }
  func.func @transform_25(%arg0: i32) -> (i32, i32) {
    %c0_i32 = arith.constant 0 : i32
    %c0_i32_0 = arith.constant 0 : i32
    %c0_i32_1 = arith.constant 0 : i32
    return %c0_i32, %c0_i32_0 : i32, i32
  }
}

</mosaic_0001>

<bundles_post_ra>
// kernel: vit_forward.1
= control target key start
LH: loop header
LB: loop body
LE: loop exit
PB: predicated region body
PF: predicated region fallthrough
CT: control target
= control target key end

     0   :  { %v3855_v2 = vmov 0.0   ;;  %vm3856_vm0 = vmmov 0   ;;  %v3857_v40 = vmov 0   ;;  %vm596_vm1 = vcmask 261120   ;;  %s4777_s0 = inlined_call_operand.vmem [shape: f32[16,128], index: 0, kind: input, shape index: {}]   ;;  %s4778_s3 = inlined_call_operand.vmem [shape: bf16[128,128], index: 3, kind: input, shape index: {}]   ;;  %s4779_s1 = inlined_call_operand.vmem [shape: f32[1,128], index: 1, kind: input, shape index: {}]   ;;  %s4780_s2 = inlined_call_operand.vmem [shape: f32[1,128], index: 2, kind: input, shape index: {}]   ;;  %s4781_s4 = inlined_call_operand.vmem [shape: f32[1,128], index: 4, kind: input, shape index: {}]   ;;  %s4782_s8 = inlined_call_operand.vmem [shape: f32[16,1], index: 8, kind: input, shape index: {}]   ;;  %s4783_s5 = inlined_call_operand.vmem [shape: f32[1,128], index: 5, kind: input, shape index: {}]   ;;  %s4784_s6 = inlined_call_operand.vmem [shape: f32[1,128], index: 6, kind: input, shape index: {}]   ;;  %s4785_s7 = inlined_call_operand.vmem [shape: f32[16,128], index: 7, kind: input, shape index: {}]   ;;  %s4786_s12 = inlined_call_operand.vmem [shape: bf16[2,128,384], index: 12, kind: input, shape index: {}]   ;;  %s4787_s10 = inlined_call_operand.vmem [shape: f32[2,1,128], index: 10, kind: input, shape index: {}]   ;;  %s4788_s11 = inlined_call_operand.vmem [shape: f32[2,1,128], index: 11, kind: input, shape index: {}]   ;;  %s4789_s9 = inlined_call_operand.vmem [shape: f32[16,16], index: 9, kind: input, shape index: {}]   ;;  %s4790_s13 = inlined_call_operand.vmem [shape: bf16[2,128,128], index: 13, kind: input, shape index: {}]   ;;  %s4791_s14 = inlined_call_operand.vmem [shape: f32[2,1,128], index: 14, kind: input, shape index: {}]   ;;  %s4792_s17 = inlined_call_operand.vmem [shape: bf16[2,128,128], index: 17, kind: input, shape index: {}]   ;;  %s4793_s15 = inlined_call_operand.vmem [shape: f32[2,1,128], index: 15, kind: input, shape index: {}]   ;;  %s4794_s16 = inlined_call_operand.vmem [shape: f32[2,1,128], index: 16, kind: input, shape index: {}]   ;;  %s4795_s19 = inlined_call_operand.vmem [shape: bf16[2,128,128], index: 19, kind: input, shape index: {}]   ;;  %s4796_s18 = inlined_call_operand.vmem [shape: f32[2,1,128], index: 18, kind: input, shape index: {}]   ;;  %s4797_s20 = inlined_call_operand.vmem [shape: f32[2,1,128], index: 20, kind: input, shape index: {}]   ;;  %s4798_s23 = inlined_call_operand.vmem [shape: bf16[128,128], index: 23, kind: input, shape index: {}]   ;;  %s4799_s21 = inlined_call_operand.vmem [shape: f32[1,128], index: 21, kind: input, shape index: {}]   ;;  %s4800_s22 = inlined_call_operand.vmem [shape: f32[1,128], index: 22, kind: input, shape index: {}]   ;;  %s4801_s24 = inlined_call_operand.vmem [shape: f32[1,128], index: 24, kind: input, shape index: {}]   ;;  %s4802_s25 = inlined_call_operand.vmem [shape: f32[16,128], index: 25, kind: output, shape index: {}]  }
   0x1   :  { %4808 = sst [smem:[#allocation2_spill]] %s4777_s0  ;;  %3291 = vmatprep.subr.bf16.mxu0 %v3855_v2  ;;  %3307 = vmatprep.mubr.msk.bf16.mxu0 %vm3856_vm0, %v3855_v2  ;;  %vm648_vm2 = vcmask 130048   ;;  %vm1120_vm3 = vcmask 523264   ;;  %vm1123_vm4 = vcmask 785408  }
   0x2   :  { %4809 = sst [smem:[#allocation3_spill]] %s4778_s3  ;;  %3593 = vset.pattern.permute.xlu0 %v3857_v40  ;;  %3594 = vset.pattern.permute.xlu1 %v3857_v40 }
   0x3   :  { %4810 = sst [smem:[#allocation4_spill]] %s4779_s1  ;;  %s4819_s3 = sld [smem:[#allocation3_spill]]  ;;  %541 = vmatprep.mubr.bf16.mxu1 %v3857_v40 }
   0x4   :  { %4811 = sst [smem:[#allocation5_spill]] %s4780_s2  ;;  %s4820_s27 = sld [smem:[#allocation4_spill]] }
   0x5   :  { %4812 = sst [smem:[#allocation6_spill]] %s4781_s4 }
   0x6   :  { %4813 = sst [smem:[#allocation7_spill]] %s4782_s8  ;;  %s4822_s29 = sld [smem:[#allocation6_spill]] }
   0x7   :  { %4814 = sst [smem:[#allocation8_spill]] %s4783_s5  ;;  %s4818_s5 = sld [smem:[#allocation2_spill]] }
   0x8   :  { %4815 = sst [smem:[#allocation9_spill]] %s4784_s6  ;;  %s4823_s30 = sld [smem:[#allocation7_spill]] }
   0x9   :  { %4816 = sst [smem:[#allocation10_spill]] %s4785_s7  ;;  %v3625_v5 = vld [vmem:[%s4819_s3] sm:$0xff]   ;;  %v3626_v6 = vld [vmem:[%s4819_s3 + $0x8] sm:$0xff]   ;;  %v3627_v7 = vld [vmem:[%s4819_s3 + $0x10] sm:$0xff]   ;;  %s4824_s7 = sld [smem:[#allocation8_spill]] }
   0xa   :  { %4817 = sst [smem:[#allocation11_spill]] %s4786_s12  ;;  %3292 = vmatpush3.bf16.msra.mxu0 %v3625_v5  ;;  %v3628_v8 = vld [vmem:[%s4819_s3 + $0x18] sm:$0xff]   ;;  %v3629_v9 = vld [vmem:[%s4819_s3 + $0x20] sm:$0xff]   ;;  %v3630_v10 = vld [vmem:[%s4819_s3 + $0x28] sm:$0xff]   ;;  %s4821_s12 = sld [smem:[#allocation5_spill]] }
   0xb   :  { %3293 = vmatprep.subr.bf16.mxu0 %v3855_v2  ;;  %v3631_v11 = vld [vmem:[%s4819_s3 + $0x30] sm:$0xff]   ;;  %v3632_v12 = vld [vmem:[%s4819_s3 + $0x38] sm:$0xff]   ;;  %v2932_v30 = vld [vmem:[%s4820_s27] ss:$0 sm:$0xff]  ;;  %s4825_s28 = sld [smem:[#allocation9_spill]]  ;;  %s4826_s0 = sld [smem:[#allocation10_spill]] }
   0xc   :  { %v2934_v41 = vld [vmem:[%s4822_s29] ss:$0 sm:$0xff]  ;;  %s4827_s6 = sld [smem:[#allocation11_spill]]  ;;  %s3858_s8 = smov 96  }
   0xd   :  { %v81_v0 = vld [vmem:[%s4818_s5] sm:$0xff]  ;;  %v82_v1 = vld [vmem:[%s4818_s5 + $0x8] sm:$0xff]  ;;  %s3860_s29 = smov 32  }
   0xe   :  { %85 = vadd.xlane.f32.xlu0 %v81_v0  ;;  %v89_v3 = vmul.f32 %v81_v0, %v81_v0  ;;  %v90_v4 = vmul.f32 %v82_v1, %v82_v1  ;;  %3294 = vmatpush3.bf16.msra.mxu0 %v3626_v6  ;;  %v285_v50 = vld [vmem:[%s4823_s30 + $0x8] sm:$0xff]  ;;  %v284_v51 = vld [vmem:[%s4823_s30] sm:$0xff] }
   0xf   :  { %3295 = vmatprep.subr.bf16.mxu0 %v3855_v2  ;;  %v2943_v5 = vld [vmem:[%s4824_s7] ss:$0 sm:$0xff] }
  0x10   :  { %91 = vadd.xlane.f32.xlu1 %v89_v3  ;;  %v2933_v35 = vld [vmem:[%s4821_s12] ss:$0 sm:$0xff] }
  0x12   :  { %87 = vadd.xlane.f32.xlu0 %v82_v1  ;;  %3296 = vmatpush3.bf16.msra.mxu0 %v3627_v7 }
  0x13   :  { %3297 = vmatprep.subr.bf16.mxu0 %v3855_v2 }
  0x14   :  { %93 = vadd.xlane.f32.xlu1 %v90_v4 }
  0x16   :  { %3298 = vmatpush3.bf16.msra.mxu0 %v3628_v8 }
  0x17   :  { %3299 = vmatprep.subr.bf16.mxu0 %v3855_v2 }
  0x1a   :  { %3300 = vmatpush3.bf16.msra.mxu0 %v3629_v9  ;;  %v2944_v9 = vld [vmem:[%s4825_s28] ss:$0 sm:$0xff] }
  0x1b   :  { %3301 = vmatprep.subr.bf16.mxu0 %v3855_v2 }
  0x1e   :  { %3302 = vmatpush3.bf16.msra.mxu0 %v3630_v10 }
  0x1f   :  { %3303 = vmatprep.subr.bf16.mxu0 %v3855_v2 }
  0x22   :  { %3304 = vmatpush3.bf16.msra.mxu0 %v3631_v11 }
  0x23   :  { %3305 = vmatprep.subr.bf16.mxu0 %v3855_v2 }
  0x26   :  { %3306 = vmatpush3.bf16.msra.mxu0 %v3632_v12 }
  0x27   :  { %3311 = vmatprep.subr.bf16.mxu0 %v3855_v2 }
  0x9b   :  { %v86_v13 = vpop.xlane.xlu0 %85 }
  0x9c   :  { %v95_v14 = vmul.f32 0.0078125, %v86_v13 }
  0x9d   :  { %v92_v15 = vpop.xlane.xlu1 %91 }
  0x9e   :  { %v99_v16 = vmul.f32 %v95_v14, %v95_v14  ;;  %v97_v17 = vmul.f32 0.0078125, %v92_v15  ;;  %v103_v27 = vsub.f32 %v81_v0, %v95_v14  ;;  %v298_v15 = vld [vmem:[%s4826_s0] sm:$0xff] }
  0x9f   :  { %v88_v18 = vpop.xlane.xlu0 %87 }
  0xa0   :  { %v101_v19 = vsub.f32 %v97_v17, %v99_v16  ;;  %v96_v20 = vmul.f32 0.0078125, %v88_v18 }
  0xa1   :  { %v94_v21 = vpop.xlane.xlu1 %93 }
  0xa2   :  { %v105_v22 = vadd.f32 1e-05, %v101_v19  ;;  %v100_v23 = vmul.f32 %v96_v20, %v96_v20  ;;  %v98_v24 = vmul.f32 0.0078125, %v94_v21  ;;  %v104_v31 = vsub.f32 %v82_v1, %v96_v20  ;;  %v299_v19 = vld [vmem:[%s4826_s0 + $0x8] sm:$0xff]  ;;  %s3859_s0 = smov 64  }
  0xa4   :  { %3753 = vrsqrt.f32 %v105_v22  ;;  %v102_v25 = vsub.f32 %v98_v24, %v100_v23 }
  0xa6   :  { %v106_v26 = vadd.f32 1e-05, %v102_v25  ;;  %v3633_v25 = vld [vmem:[%s4827_s6 + $0x4] ss:$12 sps:$4 sm:$0xff]  }
  0xa7   :  { %509 = vmatprep.subr.bf16.mxu1 %v3633_v25 }
  0xa8   :  { %3755 = vrsqrt.f32 %v106_v26  ;;  %v3635_v26 = vld [vmem:[%s4827_s6] ss:$12 sps:$4 sm:$0xff]  }
  0xa9   :  { %510 = vmatpush1.bf16.msra.mxu1 %v3635_v26 }
  0xae   :  { %v3754_v28 = vpop.eup %3753 }
  0xaf   :  { %v109_v29 = vmul.f32 %v3754_v28, %v103_v27  ;;  %v3636_v27 = vld [vmem:[%s4827_s6 + $0x8] ss:$12 sps:$4 sm:$0xff]  }
  0xb0   :  { %v3637_v28 = vld [vmem:[%s4827_s6 + $0x1c] ss:$12 sps:$4 sm:$0xff]  }
  0xb1   :  { %v117_v34 = vmul.f32 %v2932_v30, %v109_v29  ;;  %v3639_v29 = vld [vmem:[%s4827_s6 + $0x18] ss:$12 sps:$4 sm:$0xff]   ;;  %511 = vmatprep.subr.bf16.mxu1 %v3637_v28 }
  0xb2   :  { %v3756_v32 = vpop.eup %3755  ;;  %512 = vmatpush1.bf16.msra.mxu1 %v3639_v29  ;;  %v4182_v29 = vld [vmem:[%s4789_s9] sm:$0xff] }
  0xb3   :  { %v110_v33 = vmul.f32 %v3756_v32, %v104_v31  ;;  %v125_v37 = vadd.f32 %v2933_v35, %v117_v34  ;;  %v3641_v31 = vld [vmem:[%s4827_s6 + $0x34] ss:$12 sps:$4 sm:$0xff]   ;;  %v3643_v32 = vld [vmem:[%s4827_s6 + $0x30] ss:$12 sps:$4 sm:$0xff]   ;;  %v3645_v34 = vld [vmem:[%s4827_s6 + $0x4c] ss:$12 sps:$4 sm:$0xff]  }
  0xb4   :  { %513 = vmatprep.subr.bf16.mxu1 %v3641_v31 }
  0xb5   :  { %v118_v36 = vmul.f32 %v2932_v30, %v110_v33  ;;  %v3640_v30 = vld [vmem:[%s4827_s6 + $0x20] ss:$12 sps:$4 sm:$0xff]   ;;  %v3644_v33 = vld [vmem:[%s4827_s6 + $0x38] ss:$12 sps:$4 sm:$0xff]  }
  0xb6   :  { %514 = vmatpush1.bf16.msra.mxu1 %v3643_v32 }
  0xb7   :  { %v126_v38 = vadd.f32 %v2933_v35, %v118_v36  ;;  %v3647_v35 = vld [vmem:[%s4827_s6 + $0x48] ss:$12 sps:$4 sm:$0xff]   ;;  %v3648_v36 = vld [vmem:[%s4827_s6 + $0x50] ss:$12 sps:$4 sm:$0xff]   ;;  %515 = vmatprep.subr.bf16.mxu1 %v3645_v34 }
  0xb9   :  { %v127_v39 = vpack.c.bf16 %v126_v38, %v125_v37  ;;  %v3649_v37 = vld [vmem:[%s4827_s6 + $0x64] ss:$12 sps:$4 sm:$0xff]   ;;  %v3651_v38 = vld [vmem:[%s4827_s6 + $0x60] ss:$12 sps:$4 sm:$0xff]  }
  0xba   :  { %516 = vmatpush1.bf16.msra.mxu1 %v3647_v35 }
  0xbb   :  { %3308 = vmatmul.mubr.bf16.vlgmr.msra.gmra.mrb[0].mxu0 %v127_v39  ;;  %v3652_v39 = vld [vmem:[%s4827_s6 + $0x68] ss:$12 sps:$4 sm:$0xff]   ;;  %517 = vmatprep.subr.bf16.mxu1 %v3649_v37 }
  0xbc   :  { %3327 = vmatprep.mubr.msk.bf16.mxu0 %vm3856_vm0, %v3855_v2  ;;  %3312 = vmatpush3.bf16.msra.mxu0 %v3636_v27 }
  0xbd   :  { %3313 = vmatprep.subr.bf16.mxu0 %v3855_v2 }
  0xbe   :  { %518 = vmatpush1.bf16.msra.mxu1 %v3651_v38 }
  0xc0   :  { %3314 = vmatpush3.bf16.msra.mxu0 %v3640_v30 }
  0xc1   :  { %3315 = vmatprep.subr.bf16.mxu0 %v3855_v2 }
  0xc4   :  { %3316 = vmatpush3.bf16.msra.mxu0 %v3644_v33  ;;  %v4187_v33 = vld [vmem:[%s4789_s9 + $0x8] sm:$0xff] }
  0xc5   :  { %3317 = vmatprep.subr.bf16.mxu0 %v3855_v2 }
  0xc8   :  { %3318 = vmatpush3.bf16.msra.mxu0 %v3648_v36 }
  0xc9   :  { %3319 = vmatprep.subr.bf16.mxu0 %v3855_v2 }
  0xcc   :  { %3320 = vmatpush3.bf16.msra.mxu0 %v3652_v39 }
  0xcd   :  { %3321 = vmatprep.subr.bf16.mxu0 %v3855_v2 }
 0x18e   :  { %v233_v42 = vpop.f32.mrb[0].mxu0 }
 0x18f   :  { %v234_v43 = vadd.f32 %v2934_v41, %v233_v42  ;;  %v3309_v44 = vpop.f32.mrb[1].mxu0  ;;  %v3655_v42 = vld [vmem:[%s4827_s6 + $0x78] ss:$12 sps:$4 sm:$0xff]  }
 0x190   :  { %v236_v45 = vpop.f32.mrb[2].mxu0  ;;  %v3657_v44 = vld [vmem:[%s4827_s6 + $0x94] ss:$12 sps:$4 sm:$0xff]  }
 0x191   :  { %v237_v46 = vadd.f32 %v2934_v41, %v236_v45  ;;  %242 = vadd.xlane.f32.xlu0 %v234_v43  ;;  %v3310_v47 = vpop.f32.mrb[3].mxu0  ;;  %v246_v48 = vmul.f32 %v234_v43, %v234_v43  ;;  %v3653_v41 = vld [vmem:[%s4827_s6 + $0x7c] ss:$12 sps:$4 sm:$0xff]  }
 0x192   :  { %519 = vmatprep.subr.bf16.mxu1 %v3653_v41  ;;  %v3659_v45 = vld [vmem:[%s4827_s6 + $0x90] ss:$12 sps:$4 sm:$0xff]   ;;  %v3661_v47 = vld [vmem:[%s4827_s6 + $0xac] ss:$12 sps:$4 sm:$0xff]  }
 0x193   :  { %244 = vadd.xlane.f32.xlu1 %v237_v46  ;;  %v247_v49 = vmul.f32 %v237_v46, %v237_v46  ;;  %520 = vmatpush1.bf16.msra.mxu1 %v3655_v42 }
 0x194   :  { %521 = vmatprep.subr.bf16.mxu1 %v3657_v44 }
 0x195   :  { %248 = vadd.xlane.f32.xlu0 %v246_v48  ;;  %v3663_v48 = vld [vmem:[%s4827_s6 + $0xa8] ss:$12 sps:$4 sm:$0xff]  }
 0x197   :  { %250 = vadd.xlane.f32.xlu1 %v247_v49  ;;  %v3664_v49 = vld [vmem:[%s4827_s6 + $0xb0] ss:$12 sps:$4 sm:$0xff]   ;;  %522 = vmatpush1.bf16.msra.mxu1 %v3659_v45 }
 0x198   :  { %523 = vmatprep.subr.bf16.mxu1 %v3661_v47 }
 0x19b   :  { %524 = vmatpush1.bf16.msra.mxu1 %v3663_v48 }
 0x19c   :  { %3331 = vmatprep.subr.bf16.mxu1 %v3855_v2 }
 0x1a8   :  { %293 = vperm.xlu1 %3594, %v285_v50  }
 0x1ab   :  { %288 = vperm.xlu0 %3593, %v284_v51  }
 0x21e   :  { %v243_v52 = vpop.xlane.xlu0 %242 }
 0x21f   :  { %v252_v53 = vmul.f32 0.0078125, %v243_v52 }
 0x220   :  { %v245_v54 = vpop.xlane.xlu1 %244 }
 0x221   :  { %v253_v55 = vmul.f32 0.0078125, %v245_v54  ;;  %v256_v57 = vmul.f32 %v252_v53, %v252_v53  ;;  %v260_v3 = vsub.f32 %v234_v43, %v252_v53  ;;  %v3656_v43 = vld [vmem:[%s4827_s6 + $0x80] ss:$12 sps:$4 sm:$0xff]  }
 0x222   :  { %v249_v56 = vpop.xlane.xlu0 %248  ;;  %3322 = vmatpush3.bf16.msra.mxu0 %v3656_v43 }
 0x223   :  { %v254_v58 = vmul.f32 0.0078125, %v249_v56  ;;  %v257_v60 = vmul.f32 %v253_v55, %v253_v55  ;;  %v261_v6 = vsub.f32 %v237_v46, %v253_v55  ;;  %v3660_v46 = vld [vmem:[%s4827_s6 + $0x98] ss:$12 sps:$4 sm:$0xff]   ;;  %3323 = vmatprep.subr.bf16.mxu0 %v3855_v2 }
 0x224   :  { %v251_v59 = vpop.xlane.xlu1 %250 }
 0x225   :  { %v258_v61 = vsub.f32 %v254_v58, %v256_v57  ;;  %v255_v62 = vmul.f32 0.0078125, %v251_v59 }
 0x226   :  { %3324 = vmatpush3.bf16.msra.mxu0 %v3660_v46 }
 0x227   :  { %v262_v63 = vadd.f32 1e-05, %v258_v61  ;;  %v259_v0 = vsub.f32 %v255_v62, %v257_v60  ;;  %3325 = vmatprep.subr.bf16.mxu0 %v3855_v2 }
 0x228   :  { %v294_v16 = vpop.permute.xlu1 %293 }
 0x229   :  { %3757 = vrsqrt.f32 %v262_v63  ;;  %v263_v1 = vadd.f32 1e-05, %v259_v0 }
 0x22a   :  { %v289_v12 = vpop.permute.xlu0 %288  ;;  %3326 = vmatpush3.bf16.msra.mxu0 %v3664_v49 }
 0x22b   :  { %3759 = vrsqrt.f32 %v263_v1  ;;  %3355 = vmatprep.subr.bf16.mxu0 %v3855_v2 }
 0x233   :  { %v3758_v4 = vpop.eup %3757 }
 0x234   :  { %v266_v7 = vmul.f32 %v3758_v4, %v260_v3  ;;  %v2945_v4 = vld [vmem:[%s4787_s10] ss:$0 sm:$0xff] }
 0x235   :  { %v3760_v8 = vpop.eup %3759 }
 0x236   :  { %v274_v10 = vmul.f32 %v2943_v5, %v266_v7  ;;  %v267_v11 = vmul.f32 %v3760_v8, %v261_v6 }
 0x238   :  { %v282_v13 = vadd.f32 %v2944_v9, %v274_v10  ;;  %v275_v14 = vmul.f32 %v2943_v5, %v267_v11 }
 0x23a   :  { %v296_v17 = vmul.f32 %v289_v12, %v282_v13  ;;  %v283_v18 = vadd.f32 %v2944_v9, %v275_v14  ;;  %v2946_v9 = vld [vmem:[%s4788_s11] ss:$0 sm:$0xff] }
 0x23c   :  { %v4064_v20 = vadd.f32 %v298_v15, %v296_v17  ;;  %v297_v21 = vmul.f32 %v294_v16, %v283_v18 }
 0x23e   :  { %v4066_v22 = vadd.f32 %v299_v19, %v297_v21  ;;  %306 = vadd.xlane.f32.xlu1 %v4064_v20  ;;  %v310_v23 = vmul.f32 %v4064_v20, %v4064_v20 }
 0x240   :  { %308 = vadd.xlane.f32.xlu0 %v4066_v22  ;;  %v311_v24 = vmul.f32 %v4066_v22, %v4066_v22 }
 0x242   :  { %312 = vadd.xlane.f32.xlu1 %v310_v23 }
 0x246   :  { %314 = vadd.xlane.f32.xlu1 %v311_v24 }
 0x2cb   :  { %v307_v50 = vpop.xlane.xlu1 %306 }
 0x2cc   :  { %v316_v51 = vmul.f32 0.0078125, %v307_v50 }
 0x2cd   :  { %v309_v52 = vpop.xlane.xlu0 %308 }
 0x2ce   :  { %v320_v54 = vmul.f32 %v316_v51, %v316_v51  ;;  %v317_v55 = vmul.f32 0.0078125, %v309_v52  ;;  %v324_v0 = vsub.f32 %v4064_v20, %v316_v51 }
 0x2cf   :  { %v313_v53 = vpop.xlane.xlu1 %312 }
 0x2d0   :  { %v318_v56 = vmul.f32 0.0078125, %v313_v53  ;;  %v321_v59 = vmul.f32 %v317_v55, %v317_v55  ;;  %v325_v5 = vsub.f32 %v4066_v22, %v317_v55 }
 0x2d2   :  { %v322_v57 = vsub.f32 %v318_v56, %v320_v54 }
 0x2d3   :  { %v315_v58 = vpop.xlane.xlu1 %314 }
 0x2d4   :  { %v326_v60 = vadd.f32 1e-05, %v322_v57  ;;  %v319_v61 = vmul.f32 0.0078125, %v315_v58 }
 0x2d6   :  { %3761 = vrsqrt.f32 %v326_v60  ;;  %v323_v62 = vsub.f32 %v319_v61, %v321_v59 }
 0x2d8   :  { %v327_v63 = vadd.f32 1e-05, %v323_v62 }
 0x2da   :  { %3763 = vrsqrt.f32 %v327_v63 }
 0x2e0   :  { %v3762_v1 = vpop.eup %3761 }
 0x2e1   :  { %v330_v3 = vmul.f32 %v3762_v1, %v324_v0 }
 0x2e3   :  { %v338_v8 = vmul.f32 %v2945_v4, %v330_v3 }
 0x2e4   :  { %v3764_v6 = vpop.eup %3763 }
 0x2e5   :  { %v331_v7 = vmul.f32 %v3764_v6, %v325_v5  ;;  %v346_v11 = vadd.f32 %v2946_v9, %v338_v8 }
 0x2e7   :  { %v339_v10 = vmul.f32 %v2945_v4, %v331_v7 }
 0x2e9   :  { %v347_v12 = vadd.f32 %v2946_v9, %v339_v10 }
 0x2eb   :  { %v348_v13 = vpack.c.bf16 %v347_v12, %v346_v11 }
 0x2ed   :  { %542 = vmatmul.mubr.bf16.vlgmr.msra.gmra.mrb[0].mxu1 %v348_v13  ;;  %3328 = vmatmul.mubr.bf16.vlgmr.msra.gmra.mrb[4].mxu0 %v348_v13 }
 0x2ee   :  { %3333 = vmatprep.mubr.msk.bf16.mxu1 %vm3856_vm0, %v3855_v2  ;;  %3357 = vmatprep.mubr.msk.bf16.mxu0 %vm3856_vm0, %v3855_v2 }
 0x3c0   :  { %v543_v14 = vpop.f32.mrb[0].mxu1  ;;  %v586_v15 = vpop.f32.mrb[4].mxu0 }
 0x3c1   :  { %v545_v16 = vpop.f32.mrb[1].mxu1  ;;  %v3329_v17 = vpop.f32.mrb[5].mxu0 }
 0x3c2   :  { %v547_v18 = vpop.f32.mrb[2].mxu1  ;;  %v589_v19 = vpop.f32.mrb[6].mxu0 }
 0x3c3   :  { %v593_v21 = vpack.c.bf16 %v547_v18, %v543_v14  ;;  %v4167_v23 = vpack.c.bf16 %v589_v19, %v586_v15  ;;  %v549_v24 = vpop.f32.mrb[3].mxu1  ;;  %v3330_v25 = vpop.f32.mrb[7].mxu0 }
 0x3c4   :  { %v594_v26 = vpack.c.bf16 %v549_v24, %v545_v16 }
 0x3c6   :  { %720 = vrot.lane.b32.xlu0 %v594_v26, %s3858_s8  ;;  %v601_v27 = vsel %vm596_vm1, %v594_v26, 0 }
 0x3c7   :  { %3332 = vmatpush3.bf16.xpose.msra.mxu1 %v601_v27 }
 0x3c8   :  { %3337 = vmatprep.subr.bf16.mxu1 %v3855_v2 }
 0x3ca   :  { %844 = vrot.lane.b32.xlu0 %v593_v21, %s3859_s0 }
 0x3ce   :  { %969 = vrot.lane.b32.xlu0 %v593_v21, %s3860_s29  ;;  %3334 = vmatmul.mubr.msk.bf16.vlgmr.msra.gmra.mrb[4].mxu1 %vm596_vm1, %v593_v21 }
 0x3cf   :  { %3338 = vmatpush3.bf16.msra.mxu1 %v4167_v23  ;;  %3339 = vmatprep.mubr.msk.bf16.mxu1 %vm3856_vm0, %v3855_v2 }
 0x3d0   :  { %3343 = vmatprep.subr.bf16.mxu1 %v3855_v2 }
 0x438   :  { %v721_v57 = vpop.permute.xlu0 %720 }
 0x439   :  { %v726_v63 = vsel %vm596_vm1, %v721_v57, 0 }
 0x43c   :  { %v845_v0 = vpop.permute.xlu0 %844 }
 0x440   :  { %v970_v3 = vpop.permute.xlu0 %969 }
 0x4a1   :  { %v637_v28 = vpop.f32.mrb[4].mxu1 }
 0x4a2   :  { %v644_v30 = vmul.f32 0.17677669, %v637_v28  ;;  %v3335_v31 = vpop.f32.mrb[5].mxu1 }
 0x4a3   :  { %v640_v32 = vpop.f32.mrb[6].mxu1 }
 0x4a4   :  { %v645_v34 = vmul.f32 0.17677669, %v640_v32  ;;  %v3336_v35 = vpop.f32.mrb[7].mxu1  ;;  %v646_v36 = vadd.f32 %v644_v30, %v4182_v29 }
 0x4a6   :  { %v649_v37 = vsel %vm648_vm2, %v646_v36, -inf  ;;  %v647_v38 = vadd.f32 %v645_v34, %v4187_v33 }
 0x4a7   :  { %650 = vmax.xlane.f32.xlu1 %v649_v37 }
 0x4a8   :  { %v652_v39 = vsel %vm648_vm2, %v647_v38, -inf }
 0x4ab   :  { %653 = vmax.xlane.f32.xlu1 %v652_v39 }
 0x534   :  { %v651_v41 = vpop.xlane.xlu1 %650 }
 0x535   :  { %v655_v42 = vsub.f32 %v646_v36, %v651_v41 }
 0x537   :  { %v657_v43 = vmul.f32 1.442695, %v655_v42 }
 0x538   :  { %v654_v44 = vpop.xlane.xlu1 %653 }
 0x539   :  { %3765 = vpow2.f32 %v657_v43  ;;  %v656_v45 = vsub.f32 %v647_v38, %v654_v44 }
 0x53b   :  { %v659_v46 = vmul.f32 1.442695, %v656_v45 }
 0x53d   :  { %3767 = vpow2.f32 %v659_v46 }
 0x543   :  { %v3766_v47 = vpop.eup %3765 }
 0x544   :  { %v661_v48 = vsel %vm648_vm2, %v3766_v47, 0.0 }
 0x545   :  { %662 = vadd.xlane.f32.xlu1 %v661_v48 }
 0x547   :  { %v3768_v49 = vpop.eup %3767 }
 0x548   :  { %v664_v50 = vsel %vm648_vm2, %v3768_v49, 0.0 }
 0x549   :  { %665 = vadd.xlane.f32.xlu1 %v664_v50 }
 0x55a   :  { %717 = vrot.lane.b32.xlu1 %v593_v21, %s3858_s8 }
 0x55e   :  { %846 = vrot.lane.b32.xlu1 %v594_v26, %s3859_s0 }
 0x562   :  { %971 = vrot.lane.b32.xlu1 %v594_v26, %s3860_s29 }
 0x5d2   :  { %v663_v51 = vpop.xlane.xlu1 %662 }
 0x5d3   :  { %3769 = vrcp.f32 %v663_v51 }
 0x5d6   :  { %v666_v52 = vpop.xlane.xlu1 %665 }
 0x5d7   :  { %3771 = vrcp.f32 %v666_v52 }
 0x5da   :  { %v718_v53 = vpop.permute.xlu1 %717 }
 0x5dd   :  { %v3770_v55 = vpop.eup %3769 }
 0x5de   :  { %v847_v54 = vpop.permute.xlu1 %846  ;;  %v668_v59 = vmul.f32 %v3770_v55, %v3766_v47 }
 0x5df   :  { %v852_v56 = vsel %vm596_vm1, %v847_v54, 0 }
 0x5e0   :  { %3356 = vmatpush3.bf16.xpose.msra.mxu0 %v852_v56 }
 0x5e1   :  { %v3772_v58 = vpop.eup %3771  ;;  %3367 = vmatprep.subr.bf16.mxu0 %v3855_v2 }
 0x5e2   :  { %v670_v60 = vmul.f32 %v3772_v58, %v3768_v49  ;;  %v972_v61 = vpop.permute.xlu1 %971 }
 0x5e3   :  { %v977_v1 = vsel %vm596_vm1, %v972_v61, 0 }
 0x5e4   :  { %v671_v62 = vpack.c.bf16 %v670_v60, %v668_v59 }
 0x5e6   :  { %3340 = vmatmul.mubr.msk.bf16.vlgmr.msra.gmra.mrb[8].mxu1 %vm648_vm2, %v671_v62 }
 0x5e7   :  { %3344 = vmatpush3.bf16.xpose.msra.mxu1 %v726_v63  ;;  %3358 = vmatmul.mubr.msk.bf16.vlgmr.msra.gmra.mrb[8].mxu0 %vm596_vm1, %v845_v0 }
 0x5e8   :  { %3368 = vmatpush3.bf16.xpose.msra.mxu0 %v977_v1  ;;  %3345 = vmatprep.mubr.msk.bf16.mxu1 %vm3856_vm0, %v3855_v2 }
 0x5e9   :  { %3369 = vmatprep.mubr.msk.bf16.mxu0 %vm3856_vm0, %v3855_v2  ;;  %3349 = vmatprep.subr.bf16.mxu1 %v3855_v2 }
 0x5ea   :  { %3379 = vmatprep.subr.bf16.mxu0 %v3855_v2 }
 0x5ee   :  { %3346 = vmatmul.mubr.msk.bf16.vlgmr.msra.gmra.mrb[12].mxu1 %vm596_vm1, %v718_v53 }
 0x5ef   :  { %3370 = vmatmul.mubr.msk.bf16.vlgmr.msra.gmra.mrb[12].mxu0 %vm596_vm1, %v970_v3  ;;  %3351 = vmatprep.mubr.msk.bf16.mxu1 %vm3856_vm0, %v3855_v2 }
 0x5f0   :  { %3395 = vmatprep.mubr.msk.bf16.mxu0 %vm3856_vm0, %v3855_v2 }
 0x6b9   :  { %v4216_v4 = vpop.f32.mrb[8].mxu1 }
 0x6ba   :  { %v3341_v5 = vpop.f32.mrb[9].mxu1  ;;  %v888_v6 = vpop.f32.mrb[8].mxu0 }
 0x6bb   :  { %v4218_v7 = vpop.f32.mrb[10].mxu1  ;;  %v3359_v8 = vpop.f32.mrb[9].mxu0  ;;  %v895_v19 = vmul.f32 0.17677669, %v888_v6 }
 0x6bc   :  { %v3342_v9 = vpop.f32.mrb[11].mxu1  ;;  %v891_v10 = vpop.f32.mrb[10].mxu0 }
 0x6bd   :  { %v3360_v11 = vpop.f32.mrb[11].mxu0  ;;  %v896_v13 = vmul.f32 0.17677669, %v891_v10  ;;  %v897_v36 = vadd.f32 %v895_v19, %v4182_v29 }
 0x6bf   :  { %v898_v32 = vadd.f32 %v896_v13, %v4187_v33  ;;  %v899_v39 = vsel %vm648_vm2, %v897_v36, -inf }
 0x6c1   :  { %v762_v12 = vpop.f32.mrb[12].mxu1  ;;  %v902_v37 = vsel %vm648_vm2, %v898_v32, -inf }
 0x6c2   :  { %v769_v14 = vmul.f32 0.17677669, %v762_v12  ;;  %v3347_v15 = vpop.f32.mrb[13].mxu1  ;;  %v1013_v16 = vpop.f32.mrb[12].mxu0 }
 0x6c3   :  { %v765_v17 = vpop.f32.mrb[14].mxu1  ;;  %v3371_v18 = vpop.f32.mrb[13].mxu0  ;;  %v1020_v34 = vmul.f32 0.17677669, %v1013_v16 }
 0x6c4   :  { %v770_v21 = vmul.f32 0.17677669, %v765_v17  ;;  %v3348_v24 = vpop.f32.mrb[15].mxu1  ;;  %v1016_v25 = vpop.f32.mrb[14].mxu0  ;;  %v771_v26 = vadd.f32 %v769_v14, %v4182_v29 }
 0x6c5   :  { %v3372_v27 = vpop.f32.mrb[15].mxu0  ;;  %v1021_v28 = vmul.f32 0.17677669, %v1016_v25  ;;  %v1022_v41 = vadd.f32 %v1020_v34, %v4182_v29 }
 0x6c6   :  { %v773_v30 = vsel %vm648_vm2, %v771_v26, -inf  ;;  %v772_v31 = vadd.f32 %v770_v21, %v4187_v33 }
 0x6c7   :  { %774 = vmax.xlane.f32.xlu1 %v773_v30  ;;  %v1023_v38 = vadd.f32 %v1021_v28, %v4187_v33  ;;  %v1024_v43 = vsel %vm648_vm2, %v1022_v41, -inf }
 0x6c8   :  { %v776_v35 = vsel %vm648_vm2, %v772_v31, -inf }
 0x6c9   :  { %777 = vmax.xlane.f32.xlu0 %v776_v35  ;;  %v1027_v42 = vsel %vm648_vm2, %v1023_v38, -inf }
 0x6cb   :  { %903 = vmax.xlane.f32.xlu1 %v902_v37 }
 0x6cd   :  { %900 = vmax.xlane.f32.xlu0 %v899_v39  ;;  %v3665_v39 = vld [vmem:[%s4790_s13] sm:$0xff]  }
 0x6ce   :  { %3380 = vmatpush3.bf16.msra.mxu0 %v3665_v39 }
 0x6cf   :  { %1028 = vmax.xlane.f32.xlu1 %v1027_v42  ;;  %3381 = vmatprep.subr.bf16.mxu0 %v3855_v2  ;;  %v3667_v42 = vld [vmem:[%s4790_s13 + $0x10] sm:$0xff]  }
 0x6d1   :  { %1025 = vmax.xlane.f32.xlu0 %v1024_v43  ;;  %v3668_v43 = vld [vmem:[%s4790_s13 + $0x18] sm:$0xff]  }
 0x754   :  { %v775_v44 = vpop.xlane.xlu1 %774 }
 0x755   :  { %v779_v52 = vsub.f32 %v771_v26, %v775_v44  ;;  %v3669_v44 = vld [vmem:[%s4790_s13 + $0x20] sm:$0xff]  }
 0x756   :  { %v778_v45 = vpop.xlane.xlu0 %777 }
 0x757   :  { %v780_v48 = vsub.f32 %v772_v31, %v778_v45  ;;  %v781_v58 = vmul.f32 1.442695, %v779_v52 }
 0x758   :  { %v904_v46 = vpop.xlane.xlu1 %903 }
 0x759   :  { %v906_v47 = vsub.f32 %v898_v32, %v904_v46  ;;  %v783_v54 = vmul.f32 1.442695, %v780_v48 }
 0x75a   :  { %v901_v49 = vpop.xlane.xlu0 %900 }
 0x75b   :  { %v909_v50 = vmul.f32 1.442695, %v906_v47  ;;  %v905_v33 = vsub.f32 %v897_v36, %v901_v49  ;;  %v3670_v47 = vld [vmem:[%s4790_s13 + $0x28] sm:$0xff]  }
 0x75c   :  { %v1029_v51 = vpop.xlane.xlu1 %1028 }
 0x75d   :  { %3773 = vpow2.f32 %v909_v50  ;;  %v907_v53 = vmul.f32 1.442695, %v905_v33  ;;  %v1031_v29 = vsub.f32 %v1023_v38, %v1029_v51  ;;  %v3671_v33 = vld [vmem:[%s4790_s13 + $0x30] sm:$0xff]  }
 0x75e   :  { %v1026_v55 = vpop.xlane.xlu0 %1025 }
 0x75f   :  { %3775 = vpow2.f32 %v907_v53  ;;  %v1034_v56 = vmul.f32 1.442695, %v1031_v29  ;;  %v1030_v57 = vsub.f32 %v1022_v41, %v1026_v55  ;;  %v3666_v41 = vld [vmem:[%s4790_s13 + $0x8] sm:$0xff]   ;;  %v3672_v53 = vld [vmem:[%s4790_s13 + $0x38] sm:$0xff]  }
 0x760   :  { %3382 = vmatpush3.bf16.msra.mxu0 %v3666_v41 }
 0x761   :  { %3777 = vpow2.f32 %v1034_v56  ;;  %v1032_v59 = vmul.f32 1.442695, %v1030_v57  ;;  %3383 = vmatprep.subr.bf16.mxu0 %v3855_v2 }
 0x762   :  { %3779 = vpow2.f32 %v783_v54 }
 0x763   :  { %3781 = vpow2.f32 %v1032_v59 }
 0x764   :  { %3783 = vpow2.f32 %v781_v58  ;;  %3384 = vmatpush3.bf16.msra.mxu0 %v3667_v42 }
 0x765   :  { %3385 = vmatprep.subr.bf16.mxu0 %v3855_v2 }
 0x767   :  { %v3774_v60 = vpop.eup %3773 }
 0x768   :  { %v914_v61 = vsel %vm648_vm2, %v3774_v60, 0.0  ;;  %3386 = vmatpush3.bf16.msra.mxu0 %v3668_v43 }
 0x769   :  { %v3776_v62 = vpop.eup %3775  ;;  %915 = vadd.xlane.f32.xlu1 %v914_v61  ;;  %3387 = vmatprep.subr.bf16.mxu0 %v3855_v2 }
 0x76a   :  { %v911_v63 = vsel %vm648_vm2, %v3776_v62, 0.0 }
 0x76b   :  { %v3778_v0 = vpop.eup %3777  ;;  %912 = vadd.xlane.f32.xlu0 %v911_v63 }
 0x76c   :  { %v3780_v1 = vpop.eup %3779  ;;  %v1039_v3 = vsel %vm648_vm2, %v3778_v0, 0.0  ;;  %3388 = vmatpush3.bf16.msra.mxu0 %v3669_v44 }
 0x76d   :  { %v3782_v5 = vpop.eup %3781  ;;  %1040 = vadd.xlane.f32.xlu1 %v1039_v3  ;;  %v788_v9 = vsel %vm648_vm2, %v3780_v1, 0.0  ;;  %3389 = vmatprep.subr.bf16.mxu0 %v3855_v2 }
 0x76e   :  { %v1036_v6 = vsel %vm648_vm2, %v3782_v5, 0.0  ;;  %v3784_v8 = vpop.eup %3783 }
 0x76f   :  { %1037 = vadd.xlane.f32.xlu0 %v1036_v6  ;;  %v785_v10 = vsel %vm648_vm2, %v3784_v8, 0.0 }
 0x770   :  { %3390 = vmatpush3.bf16.msra.mxu0 %v3670_v47 }
 0x771   :  { %789 = vadd.xlane.f32.xlu1 %v788_v9  ;;  %3391 = vmatprep.subr.bf16.mxu0 %v3855_v2 }
 0x773   :  { %786 = vadd.xlane.f32.xlu0 %v785_v10 }
 0x774   :  { %3392 = vmatpush3.bf16.msra.mxu0 %v3671_v33 }
 0x775   :  { %3393 = vmatprep.subr.bf16.mxu0 %v3855_v2 }
 0x778   :  { %3394 = vmatpush3.bf16.msra.mxu0 %v3672_v53 }
 0x779   :  { %3419 = vmatprep.subr.bf16.mxu0 %v3855_v2 }
 0x782   :  { %922 = vrot.lane.b32.xlu1 %v4167_v23, %s3859_s0 }
 0x786   :  { %1047 = vrot.lane.b32.xlu1 %v4167_v23, %s3860_s29 }
 0x789   :  { %797 = vrot.lane.b32.xlu0 %v4167_v23, %s3858_s8 }
 0x7f6   :  { %v916_v11 = vpop.xlane.xlu1 %915 }
 0x7f8   :  { %v913_v12 = vpop.xlane.xlu0 %912 }
 0x7fa   :  { %v1041_v13 = vpop.xlane.xlu1 %1040 }
 0x7fc   :  { %v1038_v14 = vpop.xlane.xlu0 %1037 }
 0x7fe   :  { %v790_v15 = vpop.xlane.xlu1 %789 }
 0x7ff   :  { %3785 = vrcp.f32 %v790_v15 }
 0x800   :  { %v787_v16 = vpop.xlane.xlu0 %786 }
 0x801   :  { %3787 = vrcp.f32 %v787_v16 }
 0x802   :  { %3789 = vrcp.f32 %v913_v12  ;;  %v923_v26 = vpop.permute.xlu1 %922 }
 0x803   :  { %3791 = vrcp.f32 %v916_v11 }
 0x804   :  { %v798_v17 = vpop.permute.xlu0 %797  ;;  %3793 = vrcp.f32 %v1038_v14 }
 0x805   :  { %3350 = vmatpush3.bf16.msra.mxu1 %v798_v17  ;;  %3795 = vrcp.f32 %v1041_v13 }
 0x806   :  { %3361 = vmatprep.subr.bf16.mxu1 %v3855_v2  ;;  %v1048_v34 = vpop.permute.xlu1 %1047 }
 0x809   :  { %v3786_v18 = vpop.eup %3785 }
 0x80a   :  { %v794_v21 = vmul.f32 %v3786_v18, %v3780_v1 }
 0x80b   :  { %v3788_v19 = vpop.eup %3787 }
 0x80c   :  { %v792_v24 = vmul.f32 %v3788_v19, %v3784_v8  ;;  %v3790_v25 = vpop.eup %3789 }
 0x80d   :  { %v3792_v27 = vpop.eup %3791  ;;  %v918_v28 = vmul.f32 %v3790_v25, %v3776_v62 }
 0x80e   :  { %v795_v23 = vpack.c.bf16 %v794_v21, %v792_v24  ;;  %v920_v30 = vmul.f32 %v3792_v27, %v3774_v60  ;;  %v3794_v32 = vpop.eup %3793  ;;  %v3675_v27 = vld [vmem:[%s4792_s17 + $0x10] sm:$0xff]  }
 0x80f   :  { %v3796_v35 = vpop.eup %3795  ;;  %v1043_v36 = vmul.f32 %v3794_v32, %v3782_v5  ;;  %v3679_v32 = vld [vmem:[%s4792_s17 + $0x30] sm:$0xff]  }
 0x810   :  { %3352 = vmatmul.mubr.msk.bf16.vlgmr.msra.gmra.mrb[16].mxu1 %vm648_vm2, %v795_v23  ;;  %v921_v31 = vpack.c.bf16 %v920_v30, %v918_v28  ;;  %v1045_v37 = vmul.f32 %v3796_v35, %v3778_v0  ;;  %v3676_v28 = vld [vmem:[%s4792_s17 + $0x18] sm:$0xff]   ;;  %v3677_v30 = vld [vmem:[%s4792_s17 + $0x20] sm:$0xff]  }
 0x811   :  { %3362 = vmatpush3.bf16.msra.mxu1 %v923_v26  ;;  %3363 = vmatprep.mubr.msk.bf16.mxu1 %vm3856_vm0, %v3855_v2  ;;  %v3673_v26 = vld [vmem:[%s4792_s17] sm:$0xff]  }
 0x812   :  { %3373 = vmatprep.subr.bf16.mxu1 %v3855_v2  ;;  %v1046_v38 = vpack.c.bf16 %v1045_v37, %v1043_v36 }
 0x818   :  { %3364 = vmatmul.mubr.msk.bf16.vlgmr.msra.gmra.mrb[20].mxu1 %vm648_vm2, %v921_v31  ;;  %v3678_v31 = vld [vmem:[%s4792_s17 + $0x28] sm:$0xff]  }
 0x819   :  { %3374 = vmatpush3.bf16.msra.mxu1 %v1048_v34  ;;  %3375 = vmatprep.mubr.msk.bf16.mxu1 %vm3856_vm0, %v3855_v2  ;;  %v3680_v34 = vld [vmem:[%s4792_s17 + $0x38] sm:$0xff]  }
 0x81a   :  { %3399 = vmatprep.subr.bf16.mxu1 %v3855_v2 }
 0x820   :  { %3376 = vmatmul.mubr.msk.bf16.vlgmr.msra.gmra.mrb[24].mxu1 %vm648_vm2, %v1046_v38 }
 0x821   :  { %3415 = vmatprep.mubr.msk.bf16.mxu1 %vm3856_vm0, %v3855_v2  ;;  %3400 = vmatpush3.bf16.msra.mxu1 %v3673_v26 }
 0x822   :  { %3401 = vmatprep.subr.bf16.mxu1 %v3855_v2 }
 0x8e3   :  { %v837_v45 = vpop.f32.mrb[16].mxu1 }
 0x8e4   :  { %v3353_v46 = vpop.f32.mrb[17].mxu1 }
 0x8e5   :  { %v840_v48 = vpop.f32.mrb[18].mxu1 }
 0x8e6   :  { %v3595_v49 = vpack.i.bf16 %v840_v48, %v837_v45  ;;  %v3354_v50 = vpop.f32.mrb[19].mxu1 }
 0x8e8   :  { %3596 = vrot.lane.b32.xlu0 %v3595_v49, %s3860_s29 }
 0x8eb   :  { %v962_v51 = vpop.f32.mrb[20].mxu1 }
 0x8ec   :  { %v3365_v52 = vpop.f32.mrb[21].mxu1 }
 0x8ed   :  { %v965_v29 = vpop.f32.mrb[22].mxu1 }
 0x8ee   :  { %v3600_v54 = vpack.i.bf16 %v965_v29, %v962_v51  ;;  %v3366_v55 = vpop.f32.mrb[23].mxu1  ;;  %v2988_v51 = vld [vmem:[%s4793_s15] ss:$0 sm:$0xff] }
 0x8f0   :  { %3601 = vrot.lane.b32.xlu1 %v3600_v54, %s3859_s0 }
 0x8f3   :  { %v1087_v56 = vpop.f32.mrb[24].mxu1 }
 0x8f4   :  { %v3377_v57 = vpop.f32.mrb[25].mxu1 }
 0x8f5   :  { %v1090_v58 = vpop.f32.mrb[26].mxu1 }
 0x8f6   :  { %v3605_v59 = vpack.i.bf16 %v1090_v58, %v1087_v56  ;;  %v3378_v60 = vpop.f32.mrb[27].mxu1  ;;  %v2989_v56 = vld [vmem:[%s4794_s16] ss:$0 sm:$0xff] }
 0x8f8   :  { %3606 = vrot.lane.b32.xlu0 %v3605_v59, %s3858_s8 }
 0x95a   :  { %v3597_v61 = vpop.permute.xlu0 %3596 }
 0x95b   :  { %v3599_v63 = vunpack.i.h.bf16 %v3597_v61  ;;  %v3598_v0 = vunpack.i.l.bf16 %v3597_v61  ;;  %v3681_v61 = vld [vmem:[%s4795_s19] sm:$0xff]  }
 0x95d   :  { %v1119_v6 = vsel %vm596_vm1, %v4218_v7, %v3599_v63  ;;  %v1118_v8 = vsel %vm596_vm1, %v4216_v4, %v3598_v0  ;;  %v2987_v4 = vld [vmem:[%s4791_s14] ss:$0 sm:$0xff]  ;;  %v3683_v63 = vld [vmem:[%s4795_s19 + $0x10] sm:$0xff]  }
 0x95e   :  { %v3685_v0 = vld [vmem:[%s4795_s19 + $0x20] sm:$0xff]  }
 0x962   :  { %v3602_v62 = vpop.permute.xlu1 %3601 }
 0x963   :  { %v3604_v1 = vunpack.i.h.bf16 %v3602_v62  ;;  %v3603_v3 = vunpack.i.l.bf16 %v3602_v62  ;;  %v3682_v62 = vld [vmem:[%s4795_s19 + $0x8] sm:$0xff]  }
 0x965   :  { %v1122_v11 = vsel %vm1120_vm3, %v1119_v6, %v3604_v1  ;;  %v1121_v12 = vsel %vm1120_vm3, %v1118_v8, %v3603_v3  ;;  %v3686_v1 = vld [vmem:[%s4795_s19 + $0x28] sm:$0xff]   ;;  %v3687_v3 = vld [vmem:[%s4795_s19 + $0x30] sm:$0xff]   ;;  %v2990_v6 = vld [vmem:[%s4796_s18] ss:$0 sm:$0xff] }
 0x96a   :  { %v3607_v5 = vpop.permute.xlu0 %3606 }
 0x96b   :  { %v3609_v9 = vunpack.i.h.bf16 %v3607_v5  ;;  %v3608_v10 = vunpack.i.l.bf16 %v3607_v5  ;;  %v3688_v5 = vld [vmem:[%s4795_s19 + $0x38] sm:$0xff]  }
 0x96d   :  { %v1124_v13 = vsel %vm1123_vm4, %v1121_v12, %v3608_v10  ;;  %v1125_v14 = vsel %vm1123_vm4, %v1122_v11, %v3609_v9 }
 0x96e   :  { %v1126_v15 = vpack.c.bf16 %v1125_v14, %v1124_v13 }
 0x970   :  { %3396 = vmatmul.mubr.bf16.vlgmr.msra.gmra.mrb[16].mxu0 %v1126_v15 }
 0x971   :  { %3435 = vmatprep.mubr.msk.bf16.mxu0 %vm3856_vm0, %v3855_v2  ;;  %3420 = vmatpush3.bf16.msra.mxu0 %v3681_v61  ;;  %v3715_v61 = vld [vmem:[%s4827_s6 + $0x154] ss:$12 sps:$4 sm:$0xff]  }
 0x972   :  { %3421 = vmatprep.subr.bf16.mxu0 %v3855_v2 }
 0x975   :  { %3422 = vmatpush3.bf16.msra.mxu0 %v3682_v62  ;;  %v3713_v62 = vld [vmem:[%s4827_s6 + $0x150] ss:$12 sps:$4 sm:$0xff]  }
 0x976   :  { %3423 = vmatprep.subr.bf16.mxu0 %v3855_v2 }
 0x979   :  { %3424 = vmatpush3.bf16.msra.mxu0 %v3683_v63  ;;  %v3716_v63 = vld [vmem:[%s4827_s6 + $0x158] ss:$12 sps:$4 sm:$0xff]  }
 0x97a   :  { %3425 = vmatprep.subr.bf16.mxu0 %v3855_v2 }
 0xa43   :  { %v1225_v16 = vpop.f32.mrb[16].mxu0 }
 0xa44   :  { %v1232_v7 = vadd.f32 %v1225_v16, %v4064_v20  ;;  %v3397_v17 = vpop.f32.mrb[17].mxu0 }
 0xa45   :  { %v1228_v18 = vpop.f32.mrb[18].mxu0 }
 0xa46   :  { %v4305_v19 = vadd.f32 %v2987_v4, %v1232_v7  ;;  %v1233_v21 = vadd.f32 %v1228_v18, %v4066_v22  ;;  %v3398_v24 = vpop.f32.mrb[19].mxu0  ;;  %v3674_v22 = vld [vmem:[%s4792_s17 + $0x8] sm:$0xff]  }
 0xa47   :  { %3402 = vmatpush3.bf16.msra.mxu1 %v3674_v22 }
 0xa48   :  { %v4308_v23 = vadd.f32 %v2987_v4, %v1233_v21  ;;  %1245 = vadd.xlane.f32.xlu1 %v4305_v19  ;;  %v1249_v20 = vmul.f32 %v4305_v19, %v4305_v19  ;;  %3403 = vmatprep.subr.bf16.mxu1 %v3855_v2 }
 0xa4a   :  { %1247 = vadd.xlane.f32.xlu0 %v4308_v23  ;;  %v1250_v25 = vmul.f32 %v4308_v23, %v4308_v23 }
 0xa4b   :  { %3404 = vmatpush3.bf16.msra.mxu1 %v3675_v27 }
 0xa4c   :  { %1253 = vadd.xlane.f32.xlu1 %v1250_v25  ;;  %3405 = vmatprep.subr.bf16.mxu1 %v3855_v2 }
 0xa4e   :  { %1251 = vadd.xlane.f32.xlu0 %v1249_v20 }
 0xa4f   :  { %3406 = vmatpush3.bf16.msra.mxu1 %v3676_v28 }
 0xa50   :  { %3407 = vmatprep.subr.bf16.mxu1 %v3855_v2 }
 0xa53   :  { %3408 = vmatpush3.bf16.msra.mxu1 %v3677_v30 }
 0xa54   :  { %3409 = vmatprep.subr.bf16.mxu1 %v3855_v2 }
 0xa57   :  { %3410 = vmatpush3.bf16.msra.mxu1 %v3678_v31 }
 0xa58   :  { %3411 = vmatprep.subr.bf16.mxu1 %v3855_v2 }
 0xa5b   :  { %3412 = vmatpush3.bf16.msra.mxu1 %v3679_v32 }
 0xa5c   :  { %3413 = vmatprep.subr.bf16.mxu1 %v3855_v2 }
 0xa5f   :  { %3414 = vmatpush3.bf16.msra.mxu1 %v3680_v34 }
 0xad5   :  { %v1246_v35 = vpop.xlane.xlu1 %1245 }
 0xad6   :  { %v1255_v37 = vmul.f32 0.0078125, %v1246_v35  ;;  %v3689_v35 = vld [vmem:[%s4827_s6 + $0xc0] ss:$12 sps:$4 sm:$0xff]  }
 0xad7   :  { %v1248_v36 = vpop.xlane.xlu0 %1247 }
 0xad8   :  { %v1256_v38 = vmul.f32 0.0078125, %v1248_v36  ;;  %v1259_v44 = vmul.f32 %v1255_v37, %v1255_v37  ;;  %v1263_v52 = vsub.f32 %v4305_v19, %v1255_v37  ;;  %v3691_v36 = vld [vmem:[%s4827_s6 + $0xc4] ss:$12 sps:$4 sm:$0xff]   ;;  %v2999_v37 = vld [vmem:[%s4797_s20] ss:$0 sm:$0xff] }
 0xad9   :  { %v1254_v39 = vpop.xlane.xlu1 %1253  ;;  %1741 = vmatprep.subr.bf16.mxu1 %v3691_v36 }
 0xada   :  { %v1260_v41 = vmul.f32 %v1256_v38, %v1256_v38  ;;  %v1258_v42 = vmul.f32 0.0078125, %v1254_v39  ;;  %v1264_v50 = vsub.f32 %v4308_v23, %v1256_v38 }
 0xadb   :  { %v1252_v43 = vpop.xlane.xlu0 %1251 }
 0xadc   :  { %v1262_v45 = vsub.f32 %v1258_v42, %v1260_v41  ;;  %v1257_v46 = vmul.f32 0.0078125, %v1252_v43 }
 0xade   :  { %v1266_v47 = vadd.f32 1e-05, %v1262_v45  ;;  %v1261_v48 = vsub.f32 %v1257_v46, %v1259_v44 }
 0xae0   :  { %3797 = vrsqrt.f32 %v1266_v47  ;;  %v1265_v49 = vadd.f32 1e-05, %v1261_v48 }
 0xae2   :  { %3799 = vrsqrt.f32 %v1265_v49  ;;  %v3693_v49 = vld [vmem:[%s4827_s6 + $0xd8] ss:$12 sps:$4 sm:$0xff]  }
 0xaea   :  { %v3798_v33 = vpop.eup %3797 }
 0xaeb   :  { %v1270_v53 = vmul.f32 %v3798_v33, %v1264_v50  ;;  %v3696_v50 = vld [vmem:[%s4827_s6 + $0xe0] ss:$12 sps:$4 sm:$0xff]  }
 0xaec   :  { %v3800_v29 = vpop.eup %3799  ;;  %v3699_v33 = vld [vmem:[%s4827_s6 + $0xf4] ss:$12 sps:$4 sm:$0xff]  }
 0xaed   :  { %v1269_v54 = vmul.f32 %v3800_v29, %v1263_v52  ;;  %v1278_v55 = vmul.f32 %v2988_v51, %v1270_v53  ;;  %v3700_v52 = vld [vmem:[%s4827_s6 + $0xf8] ss:$12 sps:$4 sm:$0xff]   ;;  %v3701_v29 = vld [vmem:[%s4827_s6 + $0x108] ss:$12 sps:$4 sm:$0xff]  }
 0xaee   :  { %v3703_v53 = vld [vmem:[%s4827_s6 + $0x10c] ss:$12 sps:$4 sm:$0xff]  }
 0xaef   :  { %v1277_v57 = vmul.f32 %v2988_v51, %v1269_v54  ;;  %v1286_v59 = vadd.f32 %v2989_v56, %v1278_v55  ;;  %v3697_v51 = vld [vmem:[%s4827_s6 + $0xf0] ss:$12 sps:$4 sm:$0xff]  }
 0xaf0   :  { %v3704_v54 = vld [vmem:[%s4827_s6 + $0x110] ss:$12 sps:$4 sm:$0xff]  }
 0xaf1   :  { %v1285_v58 = vadd.f32 %v2989_v56, %v1277_v57  ;;  %v3707_v55 = vld [vmem:[%s4827_s6 + $0x124] ss:$12 sps:$4 sm:$0xff]   ;;  %v3705_v56 = vld [vmem:[%s4827_s6 + $0x120] ss:$12 sps:$4 sm:$0xff]   ;;  %v3708_v57 = vld [vmem:[%s4827_s6 + $0x128] ss:$12 sps:$4 sm:$0xff]  }
 0xaf3   :  { %v1287_v60 = vpack.c.bf16 %v1286_v59, %v1285_v58  ;;  %v3711_v58 = vld [vmem:[%s4827_s6 + $0x13c] ss:$12 sps:$4 sm:$0xff]   ;;  %v3709_v59 = vld [vmem:[%s4827_s6 + $0x138] ss:$12 sps:$4 sm:$0xff]  }
 0xaf5   :  { %3416 = vmatmul.mubr.bf16.vlgmr.msra.gmra.mrb[28].mxu1 %v1287_v60  ;;  %v3712_v60 = vld [vmem:[%s4827_s6 + $0x140] ss:$12 sps:$4 sm:$0xff]  }
 0xaf6   :  { %1773 = vmatprep.mubr.bf16.mxu1 %v3857_v40  ;;  %v3684_v40 = vld [vmem:[%s4795_s19 + $0x18] sm:$0xff]   ;;  %1742 = vmatpush1.bf16.msra.mxu1 %v3689_v35 }
 0xaf7   :  { %3426 = vmatpush3.bf16.msra.mxu0 %v3684_v40  ;;  %v3719_v40 = vld [vmem:[%s4827_s6 + $0x16c] ss:$12 sps:$4 sm:$0xff]  }
 0xaf8   :  { %3427 = vmatprep.subr.bf16.mxu0 %v3855_v2 }
 0xafb   :  { %3428 = vmatpush3.bf16.msra.mxu0 %v3685_v0  ;;  %v3717_v0 = vld [vmem:[%s4827_s6 + $0x168] ss:$12 sps:$4 sm:$0xff]  }
 0xafc   :  { %3429 = vmatprep.subr.bf16.mxu0 %v3855_v2 }
 0xaff   :  { %3430 = vmatpush3.bf16.msra.mxu0 %v3686_v1  ;;  %v3720_v1 = vld [vmem:[%s4827_s6 + $0x170] ss:$12 sps:$4 sm:$0xff]  }
 0xb00   :  { %3431 = vmatprep.subr.bf16.mxu0 %v3855_v2 }
 0xb03   :  { %3432 = vmatpush3.bf16.msra.mxu0 %v3687_v3 }
 0xb04   :  { %3433 = vmatprep.subr.bf16.mxu0 %v3855_v2 }
 0xb07   :  { %3434 = vmatpush3.bf16.msra.mxu0 %v3688_v5 }
 0xb08   :  { %3439 = vmatprep.subr.bf16.mxu0 %v3855_v2 }
 0xbc8   :  { %v1393_v8 = vpop.f32.mrb[28].mxu1 }
 0xbc9   :  { %v1394_v9 = vadd.f32 %v2990_v6, %v1393_v8  ;;  %v3417_v10 = vpop.f32.mrb[29].mxu1 }
 0xbca   :  { %v1396_v11 = vpop.f32.mrb[30].mxu1 }
 0xbcb   :  { %v1400_v12 = vmul.f32 %v1394_v9, %v1394_v9  ;;  %v1397_v13 = vadd.f32 %v2990_v6, %v1396_v11  ;;  %v3418_v14 = vpop.f32.mrb[31].mxu1 }
 0xbcd   :  { %v1402_v15 = vmul.f32 %v1400_v12, %v1394_v9  ;;  %v1401_v16 = vmul.f32 %v1397_v13, %v1397_v13 }
 0xbcf   :  { %v1404_v4 = vmul.f32 0.044715, %v1402_v15  ;;  %v1403_v7 = vmul.f32 %v1401_v16, %v1397_v13 }
 0xbd1   :  { %v1406_v17 = vadd.f32 %v1404_v4, %v1394_v9  ;;  %v1405_v18 = vmul.f32 0.044715, %v1403_v7 }
 0xbd3   :  { %v1408_v21 = vmul.f32 0.7978846, %v1406_v17  ;;  %v1407_v24 = vadd.f32 %v1405_v18, %v1397_v13 }
 0xbd5   :  { %3801 = vtanh.f32 %v1408_v21  ;;  %v1409_v25 = vmul.f32 0.7978846, %v1407_v24  ;;  %v3010_v21 = vld [vmem:[%s4787_s10 + $0x1] ss:$0 sm:$0xff] }
 0xbd7   :  { %3803 = vtanh.f32 %v1409_v25 }
 0xbdf   :  { %v3802_v20 = vpop.eup %3801 }
 0xbe0   :  { %v1412_v26 = vadd.f32 1.0, %v3802_v20 }
 0xbe1   :  { %v3804_v22 = vpop.eup %3803 }
 0xbe2   :  { %v1414_v27 = vmul.f32 0.5, %v1412_v26  ;;  %v1413_v28 = vadd.f32 1.0, %v3804_v22  ;;  %v3011_v26 = vld [vmem:[%s4788_s11 + $0x1] ss:$0 sm:$0xff] }
 0xbe4   :  { %v1415_v30 = vmul.f32 0.5, %v1413_v28  ;;  %v1416_v31 = vmul.f32 %v1414_v27, %v1394_v9 }
 0xbe6   :  { %v1417_v32 = vmul.f32 %v1415_v30, %v1397_v13 }
 0xbe8   :  { %v1418_v34 = vpack.c.bf16 %v1417_v32, %v1416_v31 }
 0xbea   :  { %3436 = vmatmul.mubr.bf16.vlgmr.msra.gmra.mrb[20].mxu0 %v1418_v34 }
 0xbeb   :  { %3455 = vmatprep.mubr.msk.bf16.mxu0 %vm3856_vm0, %v3855_v2 }
 0xcbd   :  { %v1524_v38 = vpop.f32.mrb[20].mxu0 }
 0xcbe   :  { %v1525_v39 = vadd.f32 %v2999_v37, %v1524_v38  ;;  %v3437_v41 = vpop.f32.mrb[21].mxu0 }
 0xcbf   :  { %v1527_v42 = vpop.f32.mrb[22].mxu0 }
 0xcc0   :  { %v4403_v43 = vadd.f32 %v1525_v39, %v4305_v19  ;;  %v1528_v44 = vadd.f32 %v2999_v37, %v1527_v42  ;;  %v3438_v45 = vpop.f32.mrb[23].mxu0  ;;  %v3692_v19 = vld [vmem:[%s4827_s6 + $0xc8] ss:$12 sps:$4 sm:$0xff]  }
 0xcc1   :  { %3440 = vmatpush3.bf16.msra.mxu0 %v3692_v19 }
 0xcc2   :  { %v4406_v46 = vadd.f32 %v1528_v44, %v4308_v23  ;;  %1537 = vadd.xlane.f32.xlu0 %v4403_v43  ;;  %v1541_v47 = vmul.f32 %v4403_v43, %v4403_v43  ;;  %v3695_v23 = vld [vmem:[%s4827_s6 + $0xdc] ss:$12 sps:$4 sm:$0xff]   ;;  %3441 = vmatprep.subr.bf16.mxu0 %v3855_v2 }
 0xcc3   :  { %1743 = vmatprep.subr.bf16.mxu1 %v3695_v23 }
 0xcc4   :  { %1539 = vadd.xlane.f32.xlu1 %v4406_v46  ;;  %v1542_v48 = vmul.f32 %v4406_v46, %v4406_v46  ;;  %1744 = vmatpush1.bf16.msra.mxu1 %v3693_v49 }
 0xcc5   :  { %3442 = vmatpush3.bf16.msra.mxu0 %v3696_v50  ;;  %1745 = vmatprep.subr.bf16.mxu1 %v3699_v33 }
 0xcc6   :  { %1543 = vadd.xlane.f32.xlu0 %v1541_v47  ;;  %3443 = vmatprep.subr.bf16.mxu0 %v3855_v2 }
 0xcc8   :  { %1545 = vadd.xlane.f32.xlu1 %v1542_v48  ;;  %1746 = vmatpush1.bf16.msra.mxu1 %v3697_v51 }
 0xcc9   :  { %3444 = vmatpush3.bf16.msra.mxu0 %v3700_v52  ;;  %1747 = vmatprep.subr.bf16.mxu1 %v3703_v53  ;;  %v4513_v52 = vld [vmem:[%s4789_s9] sm:$0xff] }
 0xcca   :  { %3445 = vmatprep.subr.bf16.mxu0 %v3855_v2 }
 0xccc   :  { %1748 = vmatpush1.bf16.msra.mxu1 %v3701_v29 }
 0xccd   :  { %3446 = vmatpush3.bf16.msra.mxu0 %v3704_v54  ;;  %1749 = vmatprep.subr.bf16.mxu1 %v3707_v55  ;;  %v4520_v54 = vld [vmem:[%s4789_s9 + $0x8] sm:$0xff] }
 0xcce   :  { %3447 = vmatprep.subr.bf16.mxu0 %v3855_v2 }
 0xcd0   :  { %1750 = vmatpush1.bf16.msra.mxu1 %v3705_v56 }
 0xcd1   :  { %3448 = vmatpush3.bf16.msra.mxu0 %v3708_v57  ;;  %1751 = vmatprep.subr.bf16.mxu1 %v3711_v58 }
 0xcd2   :  { %3449 = vmatprep.subr.bf16.mxu0 %v3855_v2 }
 0xcd4   :  { %1752 = vmatpush1.bf16.msra.mxu1 %v3709_v59 }
 0xcd5   :  { %3450 = vmatpush3.bf16.msra.mxu0 %v3712_v60  ;;  %1753 = vmatprep.subr.bf16.mxu1 %v3715_v61 }
 0xcd6   :  { %3451 = vmatprep.subr.bf16.mxu0 %v3855_v2 }
 0xcd8   :  { %1754 = vmatpush1.bf16.msra.mxu1 %v3713_v62 }
 0xcd9   :  { %3452 = vmatpush3.bf16.msra.mxu0 %v3716_v63  ;;  %1755 = vmatprep.subr.bf16.mxu1 %v3719_v40 }
 0xcda   :  { %3453 = vmatprep.subr.bf16.mxu0 %v3855_v2 }
 0xcdc   :  { %1756 = vmatpush1.bf16.msra.mxu1 %v3717_v0 }
 0xcdd   :  { %3454 = vmatpush3.bf16.msra.mxu0 %v3720_v1  ;;  %3459 = vmatprep.subr.bf16.mxu1 %v3855_v2 }
 0xcde   :  { %3483 = vmatprep.subr.bf16.mxu0 %v3855_v2 }
 0xd4f   :  { %v1538_v3 = vpop.xlane.xlu0 %1537 }
 0xd50   :  { %v1547_v5 = vmul.f32 0.0078125, %v1538_v3 }
 0xd51   :  { %v1540_v6 = vpop.xlane.xlu1 %1539 }
 0xd52   :  { %v1548_v8 = vmul.f32 0.0078125, %v1540_v6  ;;  %v1551_v10 = vmul.f32 %v1547_v5, %v1547_v5  ;;  %v1555_v17 = vsub.f32 %v4403_v43, %v1547_v5 }
 0xd53   :  { %v1544_v9 = vpop.xlane.xlu0 %1543 }
 0xd54   :  { %v1549_v11 = vmul.f32 0.0078125, %v1544_v9  ;;  %v1552_v13 = vmul.f32 %v1548_v8, %v1548_v8  ;;  %v1556_v24 = vsub.f32 %v4406_v46, %v1548_v8 }
 0xd55   :  { %v1546_v12 = vpop.xlane.xlu1 %1545 }
 0xd56   :  { %v1553_v14 = vsub.f32 %v1549_v11, %v1551_v10  ;;  %v1550_v15 = vmul.f32 0.0078125, %v1546_v12 }
 0xd58   :  { %v1557_v16 = vadd.f32 1e-05, %v1553_v14  ;;  %v1554_v4 = vsub.f32 %v1550_v15, %v1552_v13 }
 0xd5a   :  { %3805 = vrsqrt.f32 %v1557_v16  ;;  %v1558_v7 = vadd.f32 1e-05, %v1554_v4 }
 0xd5c   :  { %3807 = vrsqrt.f32 %v1558_v7 }
 0xd64   :  { %v3806_v18 = vpop.eup %3805 }
 0xd65   :  { %v1561_v25 = vmul.f32 %v3806_v18, %v1555_v17 }
 0xd66   :  { %v3808_v20 = vpop.eup %3807 }
 0xd67   :  { %v1562_v22 = vmul.f32 %v3808_v20, %v1556_v24  ;;  %v1569_v27 = vmul.f32 %v3010_v21, %v1561_v25 }
 0xd69   :  { %v1570_v28 = vmul.f32 %v3010_v21, %v1562_v22  ;;  %v1577_v30 = vadd.f32 %v3011_v26, %v1569_v27 }
 0xd6b   :  { %v1578_v31 = vadd.f32 %v3011_v26, %v1570_v28 }
 0xd6d   :  { %v1579_v32 = vpack.c.bf16 %v1578_v31, %v1577_v30 }
 0xd6f   :  { %1774 = vmatmul.mubr.bf16.vlgmr.msra.gmra.mrb[32].mxu1 %v1579_v32  ;;  %3456 = vmatmul.mubr.bf16.vlgmr.msra.gmra.mrb[24].mxu0 %v1579_v32 }
 0xd70   :  { %3461 = vmatprep.mubr.msk.bf16.mxu1 %vm3856_vm0, %v3855_v2  ;;  %3485 = vmatprep.mubr.msk.bf16.mxu0 %vm3856_vm0, %v3855_v2 }
 0xe42   :  { %v1775_v34 = vpop.f32.mrb[32].mxu1  ;;  %v1818_v35 = vpop.f32.mrb[24].mxu0 }
 0xe43   :  { %v1777_v36 = vpop.f32.mrb[33].mxu1  ;;  %v3457_v37 = vpop.f32.mrb[25].mxu0 }
 0xe44   :  { %v1779_v38 = vpop.f32.mrb[34].mxu1  ;;  %v1821_v39 = vpop.f32.mrb[26].mxu0 }
 0xe45   :  { %v1825_v41 = vpack.c.bf16 %v1779_v38, %v1775_v34  ;;  %v4501_v42 = vpack.c.bf16 %v1821_v39, %v1818_v35  ;;  %v1781_v44 = vpop.f32.mrb[35].mxu1  ;;  %v3458_v45 = vpop.f32.mrb[27].mxu0 }
 0xe46   :  { %v1826_v47 = vpack.c.bf16 %v1781_v44, %v1777_v36 }
 0xe48   :  { %v1832_v48 = vsel %vm596_vm1, %v1826_v47, 0 }
 0xe49   :  { %3460 = vmatpush3.bf16.xpose.msra.mxu1 %v1832_v48 }
 0xe4a   :  { %3465 = vmatprep.subr.bf16.mxu1 %v3855_v2 }
 0xe50   :  { %3462 = vmatmul.mubr.msk.bf16.vlgmr.msra.gmra.mrb[36].mxu1 %vm596_vm1, %v1825_v41 }
 0xe51   :  { %3466 = vmatpush3.bf16.msra.mxu1 %v4501_v42  ;;  %3467 = vmatprep.mubr.msk.bf16.mxu1 %vm3856_vm0, %v3855_v2 }
 0xe52   :  { %3471 = vmatprep.subr.bf16.mxu1 %v3855_v2 }
 0xf23   :  { %v1868_v19 = vpop.f32.mrb[36].mxu1 }
 0xf24   :  { %v1875_v23 = vmul.f32 0.17677669, %v1868_v19  ;;  %v3463_v49 = vpop.f32.mrb[37].mxu1 }
 0xf25   :  { %v1871_v50 = vpop.f32.mrb[38].mxu1 }
 0xf26   :  { %v1876_v33 = vmul.f32 0.17677669, %v1871_v50  ;;  %v3464_v51 = vpop.f32.mrb[39].mxu1  ;;  %v1877_v53 = vadd.f32 %v4513_v52, %v1875_v23 }
 0xf28   :  { %v1879_v29 = vsel %vm648_vm2, %v1877_v53, -inf  ;;  %v1878_v55 = vadd.f32 %v4520_v54, %v1876_v33 }
 0xf29   :  { %1880 = vmax.xlane.f32.xlu0 %v1879_v29 }
 0xf2a   :  { %v1882_v56 = vsel %vm648_vm2, %v1878_v55, -inf }
 0xf2b   :  { %1883 = vmax.xlane.f32.xlu1 %v1882_v56 }
 0xfb6   :  { %v1881_v57 = vpop.xlane.xlu0 %1880 }
 0xfb7   :  { %v1885_v58 = vsub.f32 %v1877_v53, %v1881_v57 }
 0xfb8   :  { %v1884_v59 = vpop.xlane.xlu1 %1883 }
 0xfb9   :  { %v1887_v60 = vmul.f32 1.442695, %v1885_v58  ;;  %v1886_v61 = vsub.f32 %v1878_v55, %v1884_v59 }
 0xfbb   :  { %3809 = vpow2.f32 %v1887_v60  ;;  %v1889_v62 = vmul.f32 1.442695, %v1886_v61 }
 0xfbd   :  { %3811 = vpow2.f32 %v1889_v62 }
 0xfc5   :  { %v3810_v63 = vpop.eup %3809 }
 0xfc6   :  { %v1891_v40 = vsel %vm648_vm2, %v3810_v63, 0.0 }
 0xfc7   :  { %v3812_v0 = vpop.eup %3811  ;;  %1892 = vadd.xlane.f32.xlu0 %v1891_v40 }
 0xfc8   :  { %v1894_v1 = vsel %vm648_vm2, %v3812_v0, 0.0 }
 0xfc9   :  { %1895 = vadd.xlane.f32.xlu1 %v1894_v1 }
 0xfda   :  { %1947 = vrot.lane.b32.xlu1 %v1825_v41, %s3858_s8 }
 0xfdd   :  { %1950 = vrot.lane.b32.xlu0 %v1826_v47, %s3858_s8 }
 0xfde   :  { %2076 = vrot.lane.b32.xlu1 %v1826_v47, %s3859_s0 }
 0xfe1   :  { %2074 = vrot.lane.b32.xlu0 %v1825_v41, %s3859_s0 }
 0xfe2   :  { %2201 = vrot.lane.b32.xlu1 %v1826_v47, %s3860_s29 }
 0xfe5   :  { %2199 = vrot.lane.b32.xlu0 %v1825_v41, %s3860_s29 }
0x1054   :  { %v1893_v3 = vpop.xlane.xlu0 %1892 }
0x1055   :  { %3813 = vrcp.f32 %v1893_v3 }
0x1056   :  { %v1896_v5 = vpop.xlane.xlu1 %1895 }
0x1057   :  { %3815 = vrcp.f32 %v1896_v5 }
0x1058   :  { %v1951_v11 = vpop.permute.xlu0 %1950 }
0x1059   :  { %v1956_v4 = vsel %vm596_vm1, %v1951_v11, 0 }
0x105a   :  { %v1948_v6 = vpop.permute.xlu1 %1947 }
0x105c   :  { %v2075_v7 = vpop.permute.xlu0 %2074 }
0x105e   :  { %v2077_v8 = vpop.permute.xlu1 %2076 }
0x105f   :  { %v3814_v9 = vpop.eup %3813  ;;  %v2082_v10 = vsel %vm596_vm1, %v2077_v8, 0 }
0x1060   :  { %3484 = vmatpush3.bf16.xpose.msra.mxu0 %v2082_v10  ;;  %v1898_v13 = vmul.f32 %v3814_v9, %v3810_v63  ;;  %v2200_v18 = vpop.permute.xlu0 %2199 }
0x1061   :  { %v3816_v12 = vpop.eup %3815  ;;  %3495 = vmatprep.subr.bf16.mxu0 %v3855_v2 }
0x1062   :  { %v1900_v14 = vmul.f32 %v3816_v12, %v3812_v0  ;;  %v2202_v15 = vpop.permute.xlu1 %2201 }
0x1063   :  { %v2207_v17 = vsel %vm596_vm1, %v2202_v15, 0 }
0x1064   :  { %v1901_v16 = vpack.c.bf16 %v1900_v14, %v1898_v13 }
0x1066   :  { %3468 = vmatmul.mubr.msk.bf16.vlgmr.msra.gmra.mrb[40].mxu1 %vm648_vm2, %v1901_v16 }
0x1067   :  { %3472 = vmatpush3.bf16.xpose.msra.mxu1 %v1956_v4  ;;  %3486 = vmatmul.mubr.msk.bf16.vlgmr.msra.gmra.mrb[28].mxu0 %vm596_vm1, %v2075_v7 }
0x1068   :  { %3496 = vmatpush3.bf16.xpose.msra.mxu0 %v2207_v17  ;;  %3473 = vmatprep.mubr.msk.bf16.mxu1 %vm3856_vm0, %v3855_v2 }
0x1069   :  { %3497 = vmatprep.mubr.msk.bf16.mxu0 %vm3856_vm0, %v3855_v2  ;;  %3477 = vmatprep.subr.bf16.mxu1 %v3855_v2 }
0x106a   :  { %3507 = vmatprep.subr.bf16.mxu0 %v3855_v2 }
0x106e   :  { %3474 = vmatmul.mubr.msk.bf16.vlgmr.msra.gmra.mrb[44].mxu1 %vm596_vm1, %v1948_v6 }
0x106f   :  { %3498 = vmatmul.mubr.msk.bf16.vlgmr.msra.gmra.mrb[32].mxu0 %vm596_vm1, %v2200_v18  ;;  %3479 = vmatprep.mubr.msk.bf16.mxu1 %vm3856_vm0, %v3855_v2 }
0x1070   :  { %3523 = vmatprep.mubr.msk.bf16.mxu0 %vm3856_vm0, %v3855_v2 }
0x1139   :  { %v4550_v21 = vpop.f32.mrb[40].mxu1 }
0x113a   :  { %v3469_v24 = vpop.f32.mrb[41].mxu1  ;;  %v2118_v25 = vpop.f32.mrb[28].mxu0 }
0x113b   :  { %v4552_v20 = vpop.f32.mrb[42].mxu1  ;;  %v3487_v26 = vpop.f32.mrb[29].mxu0  ;;  %v2125_v38 = vmul.f32 0.17677669, %v2118_v25 }
0x113c   :  { %v3470_v22 = vpop.f32.mrb[43].mxu1  ;;  %v2121_v27 = vpop.f32.mrb[30].mxu0 }
0x113d   :  { %v3488_v28 = vpop.f32.mrb[31].mxu0  ;;  %v2126_v31 = vmul.f32 0.17677669, %v2121_v27  ;;  %v2127_v51 = vadd.f32 %v4513_v52, %v2125_v38 }
0x113f   :  { %v2128_v49 = vadd.f32 %v4520_v54, %v2126_v31  ;;  %v2129_v55 = vsel %vm648_vm2, %v2127_v51, -inf }
0x1141   :  { %v1992_v30 = vpop.f32.mrb[44].mxu1  ;;  %v2132_v53 = vsel %vm648_vm2, %v2128_v49, -inf }
0x1142   :  { %v1999_v32 = vmul.f32 0.17677669, %v1992_v30  ;;  %v3475_v34 = vpop.f32.mrb[45].mxu1  ;;  %v2243_v35 = vpop.f32.mrb[32].mxu0 }
0x1143   :  { %v1995_v36 = vpop.f32.mrb[46].mxu1  ;;  %v3499_v37 = vpop.f32.mrb[33].mxu0  ;;  %v2250_v50 = vmul.f32 0.17677669, %v2243_v35 }
0x1144   :  { %v2000_v39 = vmul.f32 0.17677669, %v1995_v36  ;;  %v3476_v41 = vpop.f32.mrb[47].mxu1  ;;  %v2246_v44 = vpop.f32.mrb[34].mxu0  ;;  %v2001_v45 = vadd.f32 %v4513_v52, %v1999_v32 }
0x1145   :  { %v3500_v47 = vpop.f32.mrb[35].mxu0  ;;  %v2251_v48 = vmul.f32 0.17677669, %v2246_v44  ;;  %v2252_v56 = vadd.f32 %v4513_v52, %v2250_v50 }
0x1146   :  { %v2003_v19 = vsel %vm648_vm2, %v2001_v45, -inf  ;;  %v2002_v23 = vadd.f32 %v4520_v54, %v2000_v39 }
0x1147   :  { %2004 = vmax.xlane.f32.xlu1 %v2003_v19  ;;  %v2253_v29 = vadd.f32 %v4520_v54, %v2251_v48  ;;  %v2254_v58 = vsel %vm648_vm2, %v2252_v56, -inf }
0x1148   :  { %v2006_v33 = vsel %vm648_vm2, %v2002_v23, -inf }
0x1149   :  { %2007 = vmax.xlane.f32.xlu0 %v2006_v33  ;;  %v2257_v57 = vsel %vm648_vm2, %v2253_v29, -inf }
0x114b   :  { %2133 = vmax.xlane.f32.xlu1 %v2132_v53 }
0x114d   :  { %2130 = vmax.xlane.f32.xlu0 %v2129_v55  ;;  %v3722_v55 = vld [vmem:[%s4790_s13 + $0x48] sm:$0xff]  }
0x114f   :  { %2258 = vmax.xlane.f32.xlu1 %v2257_v57  ;;  %v3724_v57 = vld [vmem:[%s4790_s13 + $0x58] sm:$0xff]  }
0x1151   :  { %2255 = vmax.xlane.f32.xlu0 %v2254_v58  ;;  %v3725_v58 = vld [vmem:[%s4790_s13 + $0x60] sm:$0xff]  }
0x11d4   :  { %v2005_v59 = vpop.xlane.xlu1 %2004 }
0x11d5   :  { %v2009_v3 = vsub.f32 %v2001_v45, %v2005_v59 }
0x11d6   :  { %v2008_v60 = vpop.xlane.xlu0 %2007 }
0x11d7   :  { %v2010_v63 = vsub.f32 %v2002_v23, %v2008_v60  ;;  %v2011_v11 = vmul.f32 1.442695, %v2009_v3  ;;  %v3728_v3 = vld [vmem:[%s4790_s13 + $0x78] sm:$0xff]  }
0x11d8   :  { %v2134_v61 = vpop.xlane.xlu1 %2133 }
0x11d9   :  { %v2136_v62 = vsub.f32 %v2128_v49, %v2134_v61  ;;  %v2013_v6 = vmul.f32 1.442695, %v2010_v63  ;;  %v3726_v61 = vld [vmem:[%s4790_s13 + $0x68] sm:$0xff]  }
0x11da   :  { %v2131_v40 = vpop.xlane.xlu0 %2130 }
0x11db   :  { %v2139_v0 = vmul.f32 1.442695, %v2136_v62  ;;  %v2135_v54 = vsub.f32 %v2127_v51, %v2131_v40 }
0x11dc   :  { %v2259_v1 = vpop.xlane.xlu1 %2258 }
0x11dd   :  { %3817 = vpow2.f32 %v2139_v0  ;;  %v2137_v5 = vmul.f32 1.442695, %v2135_v54  ;;  %v2261_v52 = vsub.f32 %v2253_v29, %v2259_v1  ;;  %v3721_v29 = vld [vmem:[%s4790_s13 + $0x40] sm:$0xff]   ;;  %v3727_v0 = vld [vmem:[%s4790_s13 + $0x70] sm:$0xff]  }
0x11de   :  { %v2256_v8 = vpop.xlane.xlu0 %2255  ;;  %3508 = vmatpush3.bf16.msra.mxu0 %v3721_v29 }
0x11df   :  { %3819 = vpow2.f32 %v2137_v5  ;;  %v2264_v9 = vmul.f32 1.442695, %v2261_v52  ;;  %v2260_v10 = vsub.f32 %v2252_v56, %v2256_v8  ;;  %3509 = vmatprep.subr.bf16.mxu0 %v3855_v2  ;;  %v3723_v56 = vld [vmem:[%s4790_s13 + $0x50] sm:$0xff]  }
0x11e1   :  { %3821 = vpow2.f32 %v2264_v9  ;;  %v2262_v12 = vmul.f32 1.442695, %v2260_v10 }
0x11e2   :  { %3823 = vpow2.f32 %v2013_v6  ;;  %3510 = vmatpush3.bf16.msra.mxu0 %v3722_v55 }
0x11e3   :  { %3825 = vpow2.f32 %v2262_v12  ;;  %3511 = vmatprep.subr.bf16.mxu0 %v3855_v2 }
0x11e4   :  { %3827 = vpow2.f32 %v2011_v11 }
0x11e6   :  { %3512 = vmatpush3.bf16.msra.mxu0 %v3723_v56 }
0x11e7   :  { %v3818_v13 = vpop.eup %3817  ;;  %3513 = vmatprep.subr.bf16.mxu0 %v3855_v2 }
0x11e8   :  { %v2144_v14 = vsel %vm648_vm2, %v3818_v13, 0.0 }
0x11e9   :  { %v3820_v15 = vpop.eup %3819  ;;  %2145 = vadd.xlane.f32.xlu1 %v2144_v14 }
0x11ea   :  { %v2141_v16 = vsel %vm648_vm2, %v3820_v15, 0.0  ;;  %3514 = vmatpush3.bf16.msra.mxu0 %v3724_v57 }
0x11eb   :  { %v3822_v4 = vpop.eup %3821  ;;  %2142 = vadd.xlane.f32.xlu0 %v2141_v16  ;;  %3515 = vmatprep.subr.bf16.mxu0 %v3855_v2 }
0x11ec   :  { %v3824_v7 = vpop.eup %3823  ;;  %v2269_v17 = vsel %vm648_vm2, %v3822_v4, 0.0 }
0x11ed   :  { %v3826_v18 = vpop.eup %3825  ;;  %2270 = vadd.xlane.f32.xlu1 %v2269_v17  ;;  %v2018_v26 = vsel %vm648_vm2, %v3824_v7, 0.0 }
0x11ee   :  { %v2266_v24 = vsel %vm648_vm2, %v3826_v18, 0.0  ;;  %v3828_v25 = vpop.eup %3827  ;;  %3516 = vmatpush3.bf16.msra.mxu0 %v3725_v58 }
0x11ef   :  { %2267 = vadd.xlane.f32.xlu0 %v2266_v24  ;;  %v2015_v22 = vsel %vm648_vm2, %v3828_v25, 0.0  ;;  %3517 = vmatprep.subr.bf16.mxu0 %v3855_v2 }
0x11f1   :  { %2019 = vadd.xlane.f32.xlu1 %v2018_v26 }
0x11f2   :  { %3518 = vmatpush3.bf16.msra.mxu0 %v3726_v61 }
0x11f3   :  { %2016 = vadd.xlane.f32.xlu0 %v2015_v22  ;;  %3519 = vmatprep.subr.bf16.mxu0 %v3855_v2 }
0x11f6   :  { %3520 = vmatpush3.bf16.msra.mxu0 %v3727_v0  ;;  %v3104_v0 = vld [vmem:[%s4793_s15 + $0x1] ss:$0 sm:$0xff] }
0x11f7   :  { %3521 = vmatprep.subr.bf16.mxu0 %v3855_v2 }
0x11fa   :  { %3522 = vmatpush3.bf16.msra.mxu0 %v3728_v3 }
0x11fb   :  { %3547 = vmatprep.subr.bf16.mxu0 %v3855_v2 }
0x1202   :  { %2152 = vrot.lane.b32.xlu1 %v4501_v42, %s3859_s0 }
0x1206   :  { %2277 = vrot.lane.b32.xlu1 %v4501_v42, %s3860_s29 }
0x1209   :  { %2027 = vrot.lane.b32.xlu0 %v4501_v42, %s3858_s8 }
0x1276   :  { %v2146_v27 = vpop.xlane.xlu1 %2145 }
0x1278   :  { %v2143_v28 = vpop.xlane.xlu0 %2142 }
0x127a   :  { %v2271_v30 = vpop.xlane.xlu1 %2270 }
0x127c   :  { %v2268_v31 = vpop.xlane.xlu0 %2267 }
0x127e   :  { %v2020_v32 = vpop.xlane.xlu1 %2019 }
0x127f   :  { %3829 = vrcp.f32 %v2020_v32 }
0x1280   :  { %v2017_v34 = vpop.xlane.xlu0 %2016 }
0x1281   :  { %3831 = vrcp.f32 %v2017_v34 }
0x1282   :  { %3833 = vrcp.f32 %v2143_v28  ;;  %v2153_v44 = vpop.permute.xlu1 %2152 }
0x1283   :  { %3835 = vrcp.f32 %v2146_v27 }
0x1284   :  { %v2028_v35 = vpop.permute.xlu0 %2027  ;;  %3837 = vrcp.f32 %v2268_v31 }
0x1285   :  { %3478 = vmatpush3.bf16.msra.mxu1 %v2028_v35  ;;  %3839 = vrcp.f32 %v2271_v30 }
0x1286   :  { %3489 = vmatprep.subr.bf16.mxu1 %v3855_v2  ;;  %v2278_v49 = vpop.permute.xlu1 %2277 }
0x1289   :  { %v3830_v36 = vpop.eup %3829 }
0x128a   :  { %v2024_v38 = vmul.f32 %v3830_v36, %v3824_v7 }
0x128b   :  { %v3832_v37 = vpop.eup %3831 }
0x128c   :  { %v2022_v39 = vmul.f32 %v3832_v37, %v3828_v25  ;;  %v3834_v41 = vpop.eup %3833 }
0x128d   :  { %v3836_v45 = vpop.eup %3835  ;;  %v2148_v47 = vmul.f32 %v3834_v41, %v3820_v15  ;;  %v3729_v41 = vld [vmem:[%s4792_s17 + $0x40] sm:$0xff]  }
0x128e   :  { %v2025_v42 = vpack.c.bf16 %v2024_v38, %v2022_v39  ;;  %v2150_v48 = vmul.f32 %v3836_v45, %v3818_v13  ;;  %v3838_v23 = vpop.eup %3837  ;;  %v3732_v45 = vld [vmem:[%s4792_s17 + $0x58] sm:$0xff]  }
0x128f   :  { %v3840_v50 = vpop.eup %3839  ;;  %v2273_v33 = vmul.f32 %v3838_v23, %v3826_v18  ;;  %v3736_v23 = vld [vmem:[%s4792_s17 + $0x78] sm:$0xff]  }
0x1290   :  { %3480 = vmatmul.mubr.msk.bf16.vlgmr.msra.gmra.mrb[48].mxu1 %vm648_vm2, %v2025_v42  ;;  %v2151_v19 = vpack.c.bf16 %v2150_v48, %v2148_v47  ;;  %v2275_v51 = vmul.f32 %v3840_v50, %v3822_v4  ;;  %v3733_v47 = vld [vmem:[%s4792_s17 + $0x60] sm:$0xff]   ;;  %v3734_v48 = vld [vmem:[%s4792_s17 + $0x68] sm:$0xff]  }
0x1291   :  { %3490 = vmatpush3.bf16.msra.mxu1 %v2153_v44  ;;  %3491 = vmatprep.mubr.msk.bf16.mxu1 %vm3856_vm0, %v3855_v2  ;;  %v3731_v44 = vld [vmem:[%s4792_s17 + $0x50] sm:$0xff]  }
0x1292   :  { %3501 = vmatprep.subr.bf16.mxu1 %v3855_v2  ;;  %v2276_v53 = vpack.c.bf16 %v2275_v51, %v2273_v33 }
0x1298   :  { %3492 = vmatmul.mubr.msk.bf16.vlgmr.msra.gmra.mrb[52].mxu1 %vm648_vm2, %v2151_v19  ;;  %v3735_v19 = vld [vmem:[%s4792_s17 + $0x70] sm:$0xff]  }
0x1299   :  { %3502 = vmatpush3.bf16.msra.mxu1 %v2278_v49  ;;  %3503 = vmatprep.mubr.msk.bf16.mxu1 %vm3856_vm0, %v3855_v2 }
0x129a   :  { %3527 = vmatprep.subr.bf16.mxu1 %v3855_v2 }
0x12a0   :  { %3504 = vmatmul.mubr.msk.bf16.vlgmr.msra.gmra.mrb[56].mxu1 %vm648_vm2, %v2276_v53 }
0x12a1   :  { %3543 = vmatprep.mubr.msk.bf16.mxu1 %vm3856_vm0, %v3855_v2  ;;  %3528 = vmatpush3.bf16.msra.mxu1 %v3729_v41 }
0x12a2   :  { %3529 = vmatprep.subr.bf16.mxu1 %v3855_v2 }
0x1363   :  { %v2067_v59 = vpop.f32.mrb[48].mxu1 }
0x1364   :  { %v3481_v60 = vpop.f32.mrb[49].mxu1 }
0x1365   :  { %v2070_v62 = vpop.f32.mrb[50].mxu1 }
0x1366   :  { %v3610_v63 = vpack.i.bf16 %v2070_v62, %v2067_v59  ;;  %v3482_v40 = vpop.f32.mrb[51].mxu1 }
0x1368   :  { %3611 = vrot.lane.b32.xlu0 %v3610_v63, %s3860_s29 }
0x136b   :  { %v2192_v54 = vpop.f32.mrb[52].mxu1 }
0x136c   :  { %v3493_v1 = vpop.f32.mrb[53].mxu1 }
0x136d   :  { %v2195_v5 = vpop.f32.mrb[54].mxu1 }
0x136e   :  { %v3615_v52 = vpack.i.bf16 %v2195_v5, %v2192_v54  ;;  %v3494_v6 = vpop.f32.mrb[55].mxu1 }
0x136f   :  { %v3105_v6 = vld [vmem:[%s4794_s16 + $0x1] ss:$0 sm:$0xff] }
0x1370   :  { %3616 = vrot.lane.b32.xlu1 %v3615_v52, %s3859_s0 }
0x1373   :  { %v2317_v8 = vpop.f32.mrb[56].mxu1 }
0x1374   :  { %v3505_v9 = vpop.f32.mrb[57].mxu1 }
0x1375   :  { %v2320_v10 = vpop.f32.mrb[58].mxu1 }
0x1376   :  { %v3620_v11 = vpack.i.bf16 %v2320_v10, %v2317_v8  ;;  %v3506_v12 = vpop.f32.mrb[59].mxu1 }
0x1377   :  { %v3737_v12 = vld [vmem:[%s4795_s19 + $0x40] sm:$0xff]  }
0x1378   :  { %3621 = vrot.lane.b32.xlu0 %v3620_v11, %s3858_s8 }
0x13da   :  { %v3612_v13 = vpop.permute.xlu0 %3611 }
0x13db   :  { %v3614_v15 = vunpack.i.h.bf16 %v3612_v13  ;;  %v3613_v16 = vunpack.i.l.bf16 %v3612_v13  ;;  %v3738_v13 = vld [vmem:[%s4795_s19 + $0x48] sm:$0xff]  }
0x13dd   :  { %v2349_v18 = vsel %vm596_vm1, %v4552_v20, %v3614_v15  ;;  %v2348_v24 = vsel %vm596_vm1, %v4550_v21, %v3613_v16  ;;  %v3101_v21 = vld [vmem:[%s4791_s14 + $0x1] ss:$0 sm:$0xff]  ;;  %v3740_v15 = vld [vmem:[%s4795_s19 + $0x58] sm:$0xff]  }
0x13de   :  { %v3741_v16 = vld [vmem:[%s4795_s19 + $0x60] sm:$0xff]  }
0x13e2   :  { %v3617_v14 = vpop.permute.xlu1 %3616 }
0x13e3   :  { %v3619_v4 = vunpack.i.h.bf16 %v3617_v14  ;;  %v3618_v7 = vunpack.i.l.bf16 %v3617_v14  ;;  %v3739_v14 = vld [vmem:[%s4795_s19 + $0x50] sm:$0xff]  }
0x13e5   :  { %v2351_v22 = vsel %vm1120_vm3, %v2349_v18, %v3619_v4  ;;  %v2350_v27 = vsel %vm1120_vm3, %v2348_v24, %v3618_v7  ;;  %v3742_v4 = vld [vmem:[%s4795_s19 + $0x68] sm:$0xff]   ;;  %v3743_v7 = vld [vmem:[%s4795_s19 + $0x70] sm:$0xff]   ;;  %v3123_v18 = vld [vmem:[%s4796_s18 + $0x1] ss:$0 sm:$0xff] }
0x13ea   :  { %v3622_v17 = vpop.permute.xlu0 %3621 }
0x13eb   :  { %v3624_v25 = vunpack.i.h.bf16 %v3622_v17  ;;  %v3623_v26 = vunpack.i.l.bf16 %v3622_v17  ;;  %v3744_v17 = vld [vmem:[%s4795_s19 + $0x78] sm:$0xff]  }
0x13ed   :  { %v2352_v28 = vsel %vm1123_vm4, %v2350_v27, %v3623_v26  ;;  %v2353_v30 = vsel %vm1123_vm4, %v2351_v22, %v3624_v25 }
0x13ee   :  { %v2354_v31 = vpack.c.bf16 %v2353_v30, %v2352_v28 }
0x13f0   :  { %3524 = vmatmul.mubr.bf16.vlgmr.msra.gmra.mrb[36].mxu0 %v2354_v31 }
0x13f1   :  { %3563 = vmatprep.mubr.msk.bf16.mxu0 %vm3856_vm0, %v3855_v2  ;;  %3548 = vmatpush3.bf16.msra.mxu0 %v3737_v12 }
0x13f2   :  { %3549 = vmatprep.subr.bf16.mxu0 %v3855_v2 }
0x13f5   :  { %3550 = vmatpush3.bf16.msra.mxu0 %v3738_v13 }
0x13f6   :  { %3551 = vmatprep.subr.bf16.mxu0 %v3855_v2 }
0x13f9   :  { %3552 = vmatpush3.bf16.msra.mxu0 %v3739_v14 }
0x13fa   :  { %3553 = vmatprep.subr.bf16.mxu0 %v3855_v2 }
0x13fd   :  { %3554 = vmatpush3.bf16.msra.mxu0 %v3740_v15 }
0x13fe   :  { %3555 = vmatprep.subr.bf16.mxu0 %v3855_v2 }
0x1401   :  { %3556 = vmatpush3.bf16.msra.mxu0 %v3741_v16 }
0x1402   :  { %3557 = vmatprep.subr.bf16.mxu0 %v3855_v2 }
0x1405   :  { %3558 = vmatpush3.bf16.msra.mxu0 %v3742_v4 }
0x1406   :  { %3559 = vmatprep.subr.bf16.mxu0 %v3855_v2 }
0x1409   :  { %3560 = vmatpush3.bf16.msra.mxu0 %v3743_v7 }
0x140a   :  { %3561 = vmatprep.subr.bf16.mxu0 %v3855_v2 }
0x140d   :  { %3562 = vmatpush3.bf16.msra.mxu0 %v3744_v17 }
0x14c3   :  { %v2454_v32 = vpop.f32.mrb[36].mxu0 }
0x14c4   :  { %v2461_v20 = vadd.f32 %v2454_v32, %v4403_v43  ;;  %v3525_v34 = vpop.f32.mrb[37].mxu0 }
0x14c5   :  { %v2457_v35 = vpop.f32.mrb[38].mxu0 }
0x14c6   :  { %v4639_v36 = vadd.f32 %v3101_v21, %v2461_v20  ;;  %v2462_v37 = vadd.f32 %v2457_v35, %v4406_v46  ;;  %v3526_v38 = vpop.f32.mrb[39].mxu0  ;;  %v3730_v46 = vld [vmem:[%s4792_s17 + $0x48] sm:$0xff]  }
0x14c7   :  { %3530 = vmatpush3.bf16.msra.mxu1 %v3730_v46 }
0x14c8   :  { %v4642_v39 = vadd.f32 %v3101_v21, %v2462_v37  ;;  %2477 = vadd.xlane.f32.xlu1 %v4639_v36  ;;  %v2481_v43 = vmul.f32 %v4639_v36, %v4639_v36  ;;  %3531 = vmatprep.subr.bf16.mxu1 %v3855_v2 }
0x14ca   :  { %2479 = vadd.xlane.f32.xlu0 %v4642_v39  ;;  %v2482_v42 = vmul.f32 %v4642_v39, %v4642_v39 }
0x14cb   :  { %3532 = vmatpush3.bf16.msra.mxu1 %v3731_v44 }
0x14cc   :  { %2485 = vadd.xlane.f32.xlu1 %v2482_v42  ;;  %3533 = vmatprep.subr.bf16.mxu1 %v3855_v2 }
0x14ce   :  { %2483 = vadd.xlane.f32.xlu0 %v2481_v43 }
0x14cf   :  { %3534 = vmatpush3.bf16.msra.mxu1 %v3732_v45 }
0x14d0   :  { %3535 = vmatprep.subr.bf16.mxu1 %v3855_v2 }
0x14d3   :  { %3536 = vmatpush3.bf16.msra.mxu1 %v3733_v47 }
0x14d4   :  { %3537 = vmatprep.subr.bf16.mxu1 %v3855_v2 }
0x14d7   :  { %3538 = vmatpush3.bf16.msra.mxu1 %v3734_v48 }
0x14d8   :  { %3539 = vmatprep.subr.bf16.mxu1 %v3855_v2 }
0x14db   :  { %3540 = vmatpush3.bf16.msra.mxu1 %v3735_v19 }
0x14dc   :  { %3541 = vmatprep.subr.bf16.mxu1 %v3855_v2 }
0x14df   :  { %3542 = vmatpush3.bf16.msra.mxu1 %v3736_v23 }
0x14e0   :  { %3567 = vmatprep.subr.bf16.mxu1 %v3855_v2 }
0x1555   :  { %v2478_v49 = vpop.xlane.xlu1 %2477 }
0x1556   :  { %v2487_v33 = vmul.f32 0.0078125, %v2478_v49  ;;  %v3149_v49 = vld [vmem:[%s4797_s20 + $0x1] ss:$0 sm:$0xff] }
0x1557   :  { %v2480_v50 = vpop.xlane.xlu0 %2479 }
0x1558   :  { %v2488_v51 = vmul.f32 0.0078125, %v2480_v50  ;;  %v2491_v57 = vmul.f32 %v2487_v33, %v2487_v33  ;;  %v2495_v54 = vsub.f32 %v4639_v36, %v2487_v33 }
0x1559   :  { %v2486_v53 = vpop.xlane.xlu1 %2485 }
0x155a   :  { %v2492_v29 = vmul.f32 %v2488_v51, %v2488_v51  ;;  %v2490_v55 = vmul.f32 0.0078125, %v2486_v53  ;;  %v2496_v63 = vsub.f32 %v4642_v39, %v2488_v51 }
0x155b   :  { %v2484_v56 = vpop.xlane.xlu0 %2483 }
0x155c   :  { %v2494_v58 = vsub.f32 %v2490_v55, %v2492_v29  ;;  %v2489_v59 = vmul.f32 0.0078125, %v2484_v56 }
0x155e   :  { %v2498_v60 = vadd.f32 1e-05, %v2494_v58  ;;  %v2493_v61 = vsub.f32 %v2489_v59, %v2491_v57 }
0x1560   :  { %3841 = vrsqrt.f32 %v2498_v60  ;;  %v2497_v62 = vadd.f32 1e-05, %v2493_v61  ;;  %v3745_v60 = vld [vmem:[%s4798_s23] sm:$0xff]   ;;  %v3748_v61 = vld [vmem:[%s4798_s23 + $0x18] sm:$0xff]  }
0x1562   :  { %3843 = vrsqrt.f32 %v2497_v62  ;;  %v3749_v62 = vld [vmem:[%s4798_s23 + $0x20] sm:$0xff]  }
0x156a   :  { %v3842_v40 = vpop.eup %3841 }
0x156b   :  { %v2502_v1 = vmul.f32 %v3842_v40, %v2496_v63  ;;  %v3750_v63 = vld [vmem:[%s4798_s23 + $0x28] sm:$0xff]   ;;  %v3751_v40 = vld [vmem:[%s4798_s23 + $0x30] sm:$0xff]  }
0x156c   :  { %v3844_v3 = vpop.eup %3843 }
0x156d   :  { %v2501_v5 = vmul.f32 %v3844_v3, %v2495_v54  ;;  %v2510_v52 = vmul.f32 %v3104_v0, %v2502_v1 }
0x156f   :  { %v2509_v8 = vmul.f32 %v3104_v0, %v2501_v5  ;;  %v2518_v10 = vadd.f32 %v3105_v6, %v2510_v52  ;;  %v3752_v0 = vld [vmem:[%s4798_s23 + $0x38] sm:$0xff]  }
0x1571   :  { %v2517_v9 = vadd.f32 %v3105_v6, %v2509_v8 }
0x1573   :  { %v2519_v11 = vpack.c.bf16 %v2518_v10, %v2517_v9 }
0x1575   :  { %3544 = vmatmul.mubr.bf16.vlgmr.msra.gmra.mrb[60].mxu1 %v2519_v11 }
0x1576   :  { %3583 = vmatprep.mubr.msk.bf16.mxu1 %vm3856_vm0, %v3855_v2  ;;  %3568 = vmatpush3.bf16.msra.mxu1 %v3745_v60 }
0x1577   :  { %3569 = vmatprep.subr.bf16.mxu1 %v3855_v2 }
0x1648   :  { %v2627_v24 = vpop.f32.mrb[60].mxu1 }
0x1649   :  { %v2628_v25 = vadd.f32 %v3123_v18, %v2627_v24  ;;  %v3545_v26 = vpop.f32.mrb[61].mxu1 }
0x164a   :  { %v2630_v22 = vpop.f32.mrb[62].mxu1  ;;  %v3159_v26 = vld [vmem:[%s4800_s22] ss:$0 sm:$0xff] }
0x164b   :  { %v2634_v27 = vmul.f32 %v2628_v25, %v2628_v25  ;;  %v2631_v28 = vadd.f32 %v3123_v18, %v2630_v22  ;;  %v3546_v30 = vpop.f32.mrb[63].mxu1 }
0x164d   :  { %v2636_v31 = vmul.f32 %v2634_v27, %v2628_v25  ;;  %v2635_v32 = vmul.f32 %v2631_v28, %v2631_v28 }
0x164f   :  { %v2638_v21 = vmul.f32 0.044715, %v2636_v31  ;;  %v2637_v20 = vmul.f32 %v2635_v32, %v2631_v28  ;;  %v3160_v31 = vld [vmem:[%s4801_s24] ss:$0 sm:$0xff] }
0x1651   :  { %v2640_v34 = vadd.f32 %v2638_v21, %v2628_v25  ;;  %v2639_v35 = vmul.f32 0.044715, %v2637_v20 }
0x1653   :  { %v2642_v37 = vmul.f32 0.7978846, %v2640_v34  ;;  %v2641_v38 = vadd.f32 %v2639_v35, %v2631_v28 }
0x1655   :  { %3845 = vtanh.f32 %v2642_v37  ;;  %v2643_v42 = vmul.f32 0.7978846, %v2641_v38 }
0x1657   :  { %3847 = vtanh.f32 %v2643_v42 }
0x165f   :  { %v3846_v43 = vpop.eup %3845 }
0x1660   :  { %v2646_v41 = vadd.f32 1.0, %v3846_v43 }
0x1661   :  { %v3848_v46 = vpop.eup %3847 }
0x1662   :  { %v2648_v44 = vmul.f32 0.5, %v2646_v41  ;;  %v2647_v45 = vadd.f32 1.0, %v3848_v46 }
0x1664   :  { %v2649_v47 = vmul.f32 0.5, %v2647_v45  ;;  %v2650_v48 = vmul.f32 %v2648_v44, %v2628_v25 }
0x1666   :  { %v2651_v19 = vmul.f32 %v2649_v47, %v2631_v28 }
0x1668   :  { %v2652_v23 = vpack.c.bf16 %v2651_v19, %v2650_v48 }
0x166a   :  { %3564 = vmatmul.mubr.bf16.vlgmr.msra.gmra.mrb[40].mxu0 %v2652_v23 }
0x173d   :  { %v2760_v50 = vpop.f32.mrb[40].mxu0 }
0x173e   :  { %v2761_v33 = vadd.f32 %v3149_v49, %v2760_v50  ;;  %v3565_v51 = vpop.f32.mrb[41].mxu0 }
0x173f   :  { %v2763_v53 = vpop.f32.mrb[42].mxu0 }
0x1740   :  { %v2767_v29 = vadd.f32 %v2761_v33, %v4639_v36  ;;  %v2764_v55 = vadd.f32 %v3149_v49, %v2763_v53  ;;  %v3566_v56 = vpop.f32.mrb[43].mxu0  ;;  %v3746_v36 = vld [vmem:[%s4798_s23 + $0x8] sm:$0xff]  }
0x1741   :  { %3570 = vmatpush3.bf16.msra.mxu1 %v3746_v36 }
0x1742   :  { %v2768_v57 = vadd.f32 %v2764_v55, %v4642_v39  ;;  %2771 = vadd.xlane.f32.xlu0 %v2767_v29  ;;  %v2775_v58 = vmul.f32 %v2767_v29, %v2767_v29  ;;  %3571 = vmatprep.subr.bf16.mxu1 %v3855_v2  ;;  %v3747_v39 = vld [vmem:[%s4798_s23 + $0x10] sm:$0xff]  }
0x1744   :  { %2773 = vadd.xlane.f32.xlu1 %v2768_v57  ;;  %v2776_v59 = vmul.f32 %v2768_v57, %v2768_v57 }
0x1745   :  { %3572 = vmatpush3.bf16.msra.mxu1 %v3747_v39 }
0x1746   :  { %2777 = vadd.xlane.f32.xlu0 %v2775_v58  ;;  %3573 = vmatprep.subr.bf16.mxu1 %v3855_v2 }
0x1748   :  { %2779 = vadd.xlane.f32.xlu1 %v2776_v59 }
0x1749   :  { %3574 = vmatpush3.bf16.msra.mxu1 %v3748_v61 }
0x174a   :  { %3575 = vmatprep.subr.bf16.mxu1 %v3855_v2 }
0x174d   :  { %3576 = vmatpush3.bf16.msra.mxu1 %v3749_v62 }
0x174e   :  { %3577 = vmatprep.subr.bf16.mxu1 %v3855_v2 }
0x1751   :  { %3578 = vmatpush3.bf16.msra.mxu1 %v3750_v63 }
0x1752   :  { %3579 = vmatprep.subr.bf16.mxu1 %v3855_v2 }
0x1755   :  { %3580 = vmatpush3.bf16.msra.mxu1 %v3751_v40 }
0x1756   :  { %3581 = vmatprep.subr.bf16.mxu1 %v3855_v2  ;;  %v3158_v2 = vld [vmem:[%s4799_s21] ss:$0 sm:$0xff] }
0x1759   :  { %3582 = vmatpush3.bf16.msra.mxu1 %v3752_v0 }
0x17cf   :  { %v2772_v54 = vpop.xlane.xlu0 %2771 }
0x17d0   :  { %v2781_v1 = vmul.f32 0.0078125, %v2772_v54 }
0x17d1   :  { %v2774_v3 = vpop.xlane.xlu1 %2773 }
0x17d2   :  { %v2782_v5 = vmul.f32 0.0078125, %v2774_v3  ;;  %v2785_v6 = vmul.f32 %v2781_v1, %v2781_v1  ;;  %v2789_v16 = vsub.f32 %v2767_v29, %v2781_v1 }
0x17d3   :  { %v2778_v52 = vpop.xlane.xlu0 %2777 }
0x17d4   :  { %v2783_v8 = vmul.f32 0.0078125, %v2778_v52  ;;  %v2786_v10 = vmul.f32 %v2782_v5, %v2782_v5  ;;  %v2790_v7 = vsub.f32 %v2768_v57, %v2782_v5 }
0x17d5   :  { %v2780_v9 = vpop.xlane.xlu1 %2779 }
0x17d6   :  { %v2787_v11 = vsub.f32 %v2783_v8, %v2785_v6  ;;  %v2784_v12 = vmul.f32 0.0078125, %v2780_v9 }
0x17d8   :  { %v2791_v13 = vadd.f32 1e-05, %v2787_v11  ;;  %v2788_v14 = vsub.f32 %v2784_v12, %v2786_v10 }
0x17da   :  { %3849 = vrsqrt.f32 %v2791_v13  ;;  %v2792_v15 = vadd.f32 1e-05, %v2788_v14 }
0x17dc   :  { %3851 = vrsqrt.f32 %v2792_v15 }
0x17e4   :  { %v3850_v4 = vpop.eup %3849 }
0x17e5   :  { %v2795_v17 = vmul.f32 %v3850_v4, %v2789_v16 }
0x17e6   :  { %v3852_v18 = vpop.eup %3851 }
0x17e7   :  { %v2796_v24 = vmul.f32 %v3852_v18, %v2790_v7  ;;  %v2803_v25 = vmul.f32 %v3158_v2, %v2795_v17 }
0x17e9   :  { %v2804_v22 = vmul.f32 %v3158_v2, %v2796_v24  ;;  %v2811_v27 = vadd.f32 %v3159_v26, %v2803_v25 }
0x17eb   :  { %v2812_v28 = vadd.f32 %v3159_v26, %v2804_v22 }
0x17ed   :  { %v2813_v30 = vpack.c.bf16 %v2812_v28, %v2811_v27 }
0x17ef   :  { %3584 = vmatmul.mubr.bf16.vlgmr.msra.gmra.mrb[64].mxu1 %v2813_v30 }
0x18c2   :  { %v2919_v32 = vpop.f32.mrb[64].mxu1 }
0x18c3   :  { %v2920_v21 = vadd.f32 %v3160_v31, %v2919_v32  ;;  %v3585_v20 = vpop.f32.mrb[65].mxu1 }
0x18c4   :  { %v2922_v34 = vpop.f32.mrb[66].mxu1 }
0x18c5   :  { %2926 = vst [vmem:[%s4802_s25] sm:$0xff] %v2920_v21  ;;  %v2923_v35 = vadd.f32 %v3160_v31, %v2922_v34  ;;  %v3586_v37 = vpop.f32.mrb[67].mxu1 }
0x18c7   :  { %2927 = vst [vmem:[%s4802_s25 + $0x8] sm:$0xff] %v2923_v35 }

</bundles_post_ra>
